<compile_context>
chip_gen: v5e
topology: v5e:2x2
jax: 0.10.0
libtpu: 0.0.40
codegen_flags: <defaults>
</compile_context>

<pallas_src>
import functools

import jax
import jax.numpy as jnp
from jax.experimental import pallas as pl
from jax.experimental.pallas import tpu as pltpu

C_IN = 3      # input point coordinates
C1 = 128      # first_conv hidden channels
C2 = 256      # first_conv output / encoder output channels
C3 = 512      # second_conv hidden channels
BN_EPS = 1e-5


def _encoder_kernel(x_ref, w1_ref, b1_ref, w2_ref, b2_ref,
                    w23_ref, w3g_ref, bg_ref, w4_ref, b4_ref, o_ref):
    # x_ref : (tg * N, 3)   points of tg groups (channels-last)
    # w1    : (3, 128)      b1: (1, 128)   [BN1 folded]
    # w2    : (128, 256)    b2: (1, 256)
    # w23   : (128, 512)    == W2 @ W3_local   (fused local half, BN2 folded)
    # w3g   : (256, 512)    global-feature half of the 512->512 conv (BN2 folded)
    # bg    : (1, 512)      == b3_folded + b2 @ W3_local
    # w4    : (512, 256)    b4: (1, 256)
    # o_ref : (tg, 256)
    tg = o_ref.shape[0]
    rows = x_ref.shape[0]
    n = rows // tg

    x = x_ref[...].astype(jnp.bfloat16)                                  # (rows, 3)

    # ---- first_conv: Conv1d(3,128,1) + BN(128) [folded] + ReLU ----
    h = jnp.dot(x, w1_ref[...], preferred_element_type=jnp.float32)
    h = jnp.maximum(h + b1_ref[...], 0.0)                                # (rows, 128) f32
    h_bf = h.astype(jnp.bfloat16)

    # ---- Conv1d(128,256,1): feature (only needed for the per-group max) ----
    feat = jnp.dot(h_bf, w2_ref[...],
                   preferred_element_type=jnp.float32) + b2_ref[...]     # (rows, 256) f32

    # ---- per-group max over the N points ----
    gmax = jnp.max(feat.reshape(tg, n, C2), axis=1)                      # (tg, 256) f32

    # ---- second_conv: Conv1d(512,512,1) + BN(512) [folded] + ReLU ----
    #   global half: once per group, broadcast over its N points
    #   local  half: fused h @ (W2 @ W3_local)
    gcon = jnp.dot(gmax.astype(jnp.bfloat16), w3g_ref[...],
                   preferred_element_type=jnp.float32) + bg_ref[...]     # (tg, 512)
    h2 = jnp.dot(h_bf, w23_ref[...], preferred_element_type=jnp.float32)  # (rows, 512)
    h2 = h2 + jnp.broadcast_to(gcon[:, None, :], (tg, n, C3)).reshape(rows, C3)
    h2 = jnp.maximum(h2, 0.0)

    # ---- Conv1d(512,256,1) ----
    out = jnp.dot(h2.astype(jnp.bfloat16), w4_ref[...],
                  preferred_element_type=jnp.float32) + b4_ref[...]      # (rows, 256)

    # ---- final per-group max ----
    o_ref[...] = jnp.max(out.reshape(tg, n, C2), axis=1).astype(o_ref.dtype)


def _fold_bn(w, b, gamma, beta, mean, var, eps=BN_EPS):
    """Fold an eval-mode BatchNorm1d into the preceding 1x1 conv (w: (in,out))."""
    scale = gamma / jnp.sqrt(var + eps)
    return w * scale[None, :], b * scale + (beta - mean * scale)


@functools.partial(jax.jit, static_argnames=("tg",))
def encoder_forward(point_groups, params, *, tg=64):
    """point_groups: (B, G, N, 3) -> (B, G, 256).

    Conv weights are stored as (in, out) == W_pt[:, :, 0].T so x @ W matches
    the PyTorch Conv1d(kernel=1)."""
    B, G, N, _ = point_groups.shape
    M = B * G

    # Fold eval-mode BatchNorm into the preceding 1x1 convs.
    w1, b1 = _fold_bn(params["w1"], params["b1"], params["bn1_gamma"],
                      params["bn1_beta"], params["bn1_mean"], params["bn1_var"])
    w3, b3 = _fold_bn(params["w3"], params["b3"], params["bn2_gamma"],
                      params["bn2_beta"], params["bn2_mean"], params["bn2_var"])
    w2, b2 = params["w2"], params["b2"]
    w4, b4 = params["w4"], params["b4"]

    # Split W3 into global / local halves (concat order is [global, local]),
    # fuse W2 into the local half, and fold b2 @ W3l into the per-group bias.
    w3g, w3l = w3[:C2], w3[C2:]
    w23 = w2 @ w3l                      # (128, 512)
    bg = b3 + b2 @ w3l                  # (512,)

    # bf16 weights: MXU-native, halves VMEM; accumulation stays f32 in-kernel.
    w1, w2, w23, w3g, w4 = (w.astype(jnp.bfloat16) for w in (w1, w2, w23, w3g, w4))

    tg = min(tg, M)                 # groups per grid step
    grid = (pl.cdiv(M, tg),)        # ragged last block handled by Pallas masking

    x2 = point_groups.reshape(M * N, C_IN)
    b1 = b1.reshape(1, C1)
    b2 = b2.reshape(1, C2)
    bg = bg.reshape(1, C3)
    b4 = b4.reshape(1, C2)

    weight_bytes = 2 * (C_IN * C1 + C1 * C2 + C1 * C3 + C2 * C3 + C3 * C2) \
        + 4 * (C1 + C2 + C3 + C2)
    cost = pl.CostEstimate(
        flops=2 * M * N * (C_IN * C1 + C1 * C2 + C1 * C3 + C3 * C2)
              + 2 * M * C2 * C3,
        transcendentals=0,
        bytes_accessed=M * N * C_IN * 4 + M * C2 * 4 + weight_bytes,
    )

    out = pl.pallas_call(
        _encoder_kernel,
        out_shape=jax.ShapeDtypeStruct((M, C2), point_groups.dtype),
        grid_spec=pltpu.PrefetchScalarGridSpec(
            num_scalar_prefetch=0,
            grid=grid,
            in_specs=[
                pl.BlockSpec((tg * N, C_IN), lambda i: (i, 0)),   # points tile
                pl.BlockSpec((C_IN, C1), lambda i: (0, 0)),       # w1
                pl.BlockSpec((1, C1), lambda i: (0, 0)),          # b1
                pl.BlockSpec((C1, C2), lambda i: (0, 0)),         # w2
                pl.BlockSpec((1, C2), lambda i: (0, 0)),          # b2
                pl.BlockSpec((C1, C3), lambda i: (0, 0)),         # w23 (fused)
                pl.BlockSpec((C2, C3), lambda i: (0, 0)),         # w3 global half
                pl.BlockSpec((1, C3), lambda i: (0, 0)),          # bg
                pl.BlockSpec((C3, C2), lambda i: (0, 0)),         # w4
                pl.BlockSpec((1, C2), lambda i: (0, 0)),          # b4
            ],
            out_specs=pl.BlockSpec((tg, C2), lambda i: (i, 0)),
        ),
        compiler_params=pltpu.CompilerParams(
            dimension_semantics=("parallel",),
        ),
        cost_estimate=cost,
    )(x2, w1, b1, w2, b2, w23, w3g, bg, w4, b4)

    return out.reshape(B, G, C2)


def init_params(key, dtype=jnp.float32):
    """Deterministic synthetic parameters matching the PyTorch module shapes."""
    ks = jax.random.split(key, 12)

    def lin(k, fan_in, fan_out):
        bound = 1.0 / (fan_in ** 0.5)
        kw, kb = jax.random.split(k)
        w = jax.random.uniform(kw, (fan_in, fan_out), dtype, -bound, bound)
        b = jax.random.uniform(kb, (fan_out,), dtype, -bound, bound)
        return w, b

    w1, b1 = lin(ks[0], C_IN, C1)
    w2, b2 = lin(ks[1], C1, C2)
    w3, b3 = lin(ks[2], C3, C3)
    w4, b4 = lin(ks[3], C3, C2)
    return dict(
        w1=w1, b1=b1, w2=w2, b2=b2, w3=w3, b3=b3, w4=w4, b4=b4,
        # BatchNorm eval-mode parameters (affine + running stats).
        bn1_gamma=jax.random.uniform(ks[4], (C1,), dtype, 0.5, 1.5),
        bn1_beta=jax.random.uniform(ks[5], (C1,), dtype, -0.1, 0.1),
        bn1_mean=jax.random.uniform(ks[6], (C1,), dtype, -0.1, 0.1),
        bn1_var=jax.random.uniform(ks[7], (C1,), dtype, 0.5, 1.5),
        bn2_gamma=jax.random.uniform(ks[8], (C3,), dtype, 0.5, 1.5),
        bn2_beta=jax.random.uniform(ks[9], (C3,), dtype, -0.1, 0.1),
        bn2_mean=jax.random.uniform(ks[10], (C3,), dtype, -0.1, 0.1),
        bn2_var=jax.random.uniform(ks[11], (C3,), dtype, 0.5, 1.5),
    )


def encoder_reference(point_groups, params):
    """Pure f32 JAX reference matching the PyTorch forward (eval-mode BN)."""
    B, G, N, _ = point_groups.shape
    x = point_groups.reshape(B * G, N, C_IN)

    def bn(h, g, b, m, v):
        return (h - m) / jnp.sqrt(v + BN_EPS) * g + b

    h = x @ params["w1"] + params["b1"]
    h = jnp.maximum(bn(h, params["bn1_gamma"], params["bn1_beta"],
                       params["bn1_mean"], params["bn1_var"]), 0.0)
    feat = h @ params["w2"] + params["b2"]                           # (M, N, 256)
    gmax = jnp.max(feat, axis=1, keepdims=True)                      # (M, 1, 256)
    cat = jnp.concatenate([jnp.broadcast_to(gmax, feat.shape), feat], axis=-1)
    h2 = cat @ params["w3"] + params["b3"]
    h2 = jnp.maximum(bn(h2, params["bn2_gamma"], params["bn2_beta"],
                        params["bn2_mean"], params["bn2_var"]), 0.0)
    out = h2 @ params["w4"] + params["b4"]
    return jnp.max(out, axis=1).reshape(B, G, C2)


if __name__ == "__main__":
    key = jax.random.PRNGKey(0)
    kx, kp = jax.random.split(key)

    # Small shapes consistent with the module: (batch=2, groups=4, points=32, xyz=3)
    B, G, N = 2, 4, 32
    point_groups = jax.random.normal(kx, (B, G, N, C_IN), dtype=jnp.float32)
    params = init_params(kp)

    out = encoder_forward(point_groups, params)
    jax.block_until_ready(out)

    ref = encoder_reference(point_groups, params)
    assert out.shape == (B, G, C2), f"bad shape {out.shape}"
    # bf16 matmuls (f32 accumulation) + fused/folded weights vs pure-f32 reference.
    assert jnp.allclose(out, ref, atol=5e-2, rtol=5e-2), (
        f"mismatch vs reference, max abs err = {jnp.max(jnp.abs(out - ref))}")

    print("KERNEL_OK")
</pallas_src>

<mosaic_0001>
module attributes {stable_mosaic.version = 11 : i64} {
  func.func @_encoder_kernel(%arg0: i32, %arg1: memref<256x3xf32, #tpu.memory_space<vmem>>, %arg2: memref<3x128xbf16, #tpu.memory_space<vmem>>, %arg3: memref<1x128xf32, #tpu.memory_space<vmem>>, %arg4: memref<128x256xbf16, #tpu.memory_space<vmem>>, %arg5: memref<1x256xf32, #tpu.memory_space<vmem>>, %arg6: memref<128x512xbf16, #tpu.memory_space<vmem>>, %arg7: memref<256x512xbf16, #tpu.memory_space<vmem>>, %arg8: memref<1x512xf32, #tpu.memory_space<vmem>>, %arg9: memref<512x256xbf16, #tpu.memory_space<vmem>>, %arg10: memref<1x256xf32, #tpu.memory_space<vmem>>, %arg11: memref<8x256xf32, #tpu.memory_space<vmem>>) attributes {dimension_semantics = [#tpu.dimension_semantics<parallel>], iteration_bounds = array<i64: 1>, scalar_prefetch = 0 : i64, scratch_operands = 0 : i64, tpu.core_type = #tpu.core_type<tc>, window_params = [{transform_indices = @transform_0, window_bounds = array<i64: 256, 3>}, {pipeline_mode = #tpu.pipeline_mode<synchronous>, transform_indices = @transform_1, window_bounds = array<i64: 3, 128>}, {pipeline_mode = #tpu.pipeline_mode<synchronous>, transform_indices = @transform_2, window_bounds = array<i64: 1, 128>}, {pipeline_mode = #tpu.pipeline_mode<synchronous>, transform_indices = @transform_3, window_bounds = array<i64: 128, 256>}, {pipeline_mode = #tpu.pipeline_mode<synchronous>, transform_indices = @transform_4, window_bounds = array<i64: 1, 256>}, {pipeline_mode = #tpu.pipeline_mode<synchronous>, transform_indices = @transform_5, window_bounds = array<i64: 128, 512>}, {pipeline_mode = #tpu.pipeline_mode<synchronous>, transform_indices = @transform_6, window_bounds = array<i64: 256, 512>}, {pipeline_mode = #tpu.pipeline_mode<synchronous>, transform_indices = @transform_7, window_bounds = array<i64: 1, 512>}, {pipeline_mode = #tpu.pipeline_mode<synchronous>, transform_indices = @transform_8, window_bounds = array<i64: 512, 256>}, {pipeline_mode = #tpu.pipeline_mode<synchronous>, transform_indices = @transform_9, window_bounds = array<i64: 1, 256>}, {transform_indices = @transform_10, window_bounds = array<i64: 8, 256>}]} {
    %c0 = arith.constant 0 : index
    %c0_0 = arith.constant 0 : index
    %0 = vector.load %arg1[%c0, %c0_0] : memref<256x3xf32, #tpu.memory_space<vmem>>, vector<256x3xf32>
    %1 = arith.truncf %0 : vector<256x3xf32> to vector<256x3xbf16>
    %c0_1 = arith.constant 0 : index
    %c0_2 = arith.constant 0 : index
    %2 = vector.load %arg2[%c0_1, %c0_2] : memref<3x128xbf16, #tpu.memory_space<vmem>>, vector<3x128xbf16>
    %cst = arith.constant dense<0.000000e+00> : vector<256x128xf32>
    %3 = tpu.matmul %1, %2, %cst {dimension_numbers = #tpu.dot_dimension_numbers<[1], [0], [0], [1], [0, 0, 1, 1], [], []>} : vector<256x3xbf16>, vector<3x128xbf16>, vector<256x128xf32> -> vector<256x128xf32>
    %c0_3 = arith.constant 0 : index
    %c0_4 = arith.constant 0 : index
    %4 = vector.load %arg3[%c0_3, %c0_4] : memref<1x128xf32, #tpu.memory_space<vmem>>, vector<1x128xf32>
    %5 = vector.broadcast %4 : vector<1x128xf32> to vector<256x128xf32>
    %6 = arith.addf %3, %5 : vector<256x128xf32>
    %cst_5 = arith.constant 0.000000e+00 : f32
    %7 = vector.broadcast %cst_5 : f32 to vector<256x128xf32>
    %8 = arith.maximumf %6, %7 : vector<256x128xf32>
    %9 = arith.truncf %8 : vector<256x128xf32> to vector<256x128xbf16>
    %c0_6 = arith.constant 0 : index
    %c0_7 = arith.constant 0 : index
    %10 = vector.load %arg4[%c0_6, %c0_7] : memref<128x256xbf16, #tpu.memory_space<vmem>>, vector<128x256xbf16>
    %cst_8 = arith.constant dense<0.000000e+00> : vector<256x256xf32>
    %11 = tpu.matmul %9, %10, %cst_8 {dimension_numbers = #tpu.dot_dimension_numbers<[1], [0], [0], [1], [0, 0, 1, 1], [], []>} : vector<256x128xbf16>, vector<128x256xbf16>, vector<256x256xf32> -> vector<256x256xf32>
    %c0_9 = arith.constant 0 : index
    %c0_10 = arith.constant 0 : index
    %12 = vector.load %arg5[%c0_9, %c0_10] : memref<1x256xf32, #tpu.memory_space<vmem>>, vector<1x256xf32>
    %13 = vector.broadcast %12 : vector<1x256xf32> to vector<256x256xf32>
    %14 = arith.addf %11, %13 : vector<256x256xf32>
    %15 = vector.shape_cast %14 : vector<256x256xf32> to vector<8x32x256xf32>
    %cst_11 = arith.constant dense<0xFF800000> : vector<8x256xf32>
    %16 = vector.multi_reduction <maximumf>, %15, %cst_11 [1] : vector<8x32x256xf32> to vector<8x256xf32>
    %17 = arith.truncf %16 : vector<8x256xf32> to vector<8x256xbf16>
    %c0_12 = arith.constant 0 : index
    %c0_13 = arith.constant 0 : index
    %18 = vector.load %arg7[%c0_12, %c0_13] : memref<256x512xbf16, #tpu.memory_space<vmem>>, vector<256x512xbf16>
    %cst_14 = arith.constant dense<0.000000e+00> : vector<8x512xf32>
    %19 = tpu.matmul %17, %18, %cst_14 {dimension_numbers = #tpu.dot_dimension_numbers<[1], [0], [0], [1], [0, 0, 1, 1], [], []>} : vector<8x256xbf16>, vector<256x512xbf16>, vector<8x512xf32> -> vector<8x512xf32>
    %c0_15 = arith.constant 0 : index
    %c0_16 = arith.constant 0 : index
    %20 = vector.load %arg8[%c0_15, %c0_16] : memref<1x512xf32, #tpu.memory_space<vmem>>, vector<1x512xf32>
    %21 = vector.broadcast %20 : vector<1x512xf32> to vector<8x512xf32>
    %22 = arith.addf %19, %21 : vector<8x512xf32>
    %c0_17 = arith.constant 0 : index
    %c0_18 = arith.constant 0 : index
    %23 = vector.load %arg6[%c0_17, %c0_18] : memref<128x512xbf16, #tpu.memory_space<vmem>>, vector<128x512xbf16>
    %cst_19 = arith.constant dense<0.000000e+00> : vector<256x512xf32>
    %24 = tpu.matmul %9, %23, %cst_19 {dimension_numbers = #tpu.dot_dimension_numbers<[1], [0], [0], [1], [0, 0, 1, 1], [], []>} : vector<256x128xbf16>, vector<128x512xbf16>, vector<256x512xf32> -> vector<256x512xf32>
    %25 = vector.shape_cast %22 : vector<8x512xf32> to vector<8x1x512xf32>
    %26 = vector.shape_cast %25 : vector<8x1x512xf32> to vector<8x1x512xf32>
    %27 = vector.broadcast %26 : vector<8x1x512xf32> to vector<8x32x512xf32>
    %28 = vector.shape_cast %27 : vector<8x32x512xf32> to vector<256x512xf32>
    %29 = arith.addf %24, %28 : vector<256x512xf32>
    %cst_20 = arith.constant 0.000000e+00 : f32
    %30 = vector.broadcast %cst_20 : f32 to vector<256x512xf32>
    %31 = arith.maximumf %29, %30 : vector<256x512xf32>
    %32 = arith.truncf %31 : vector<256x512xf32> to vector<256x512xbf16>
    %c0_21 = arith.constant 0 : index
    %c0_22 = arith.constant 0 : index
    %33 = vector.load %arg9[%c0_21, %c0_22] : memref<512x256xbf16, #tpu.memory_space<vmem>>, vector<512x256xbf16>
    %cst_23 = arith.constant dense<0.000000e+00> : vector<256x256xf32>
    %34 = tpu.matmul %32, %33, %cst_23 {dimension_numbers = #tpu.dot_dimension_numbers<[1], [0], [0], [1], [0, 0, 1, 1], [], []>} : vector<256x512xbf16>, vector<512x256xbf16>, vector<256x256xf32> -> vector<256x256xf32>
    %c0_24 = arith.constant 0 : index
    %c0_25 = arith.constant 0 : index
    %35 = vector.load %arg10[%c0_24, %c0_25] : memref<1x256xf32, #tpu.memory_space<vmem>>, vector<1x256xf32>
    %36 = vector.broadcast %35 : vector<1x256xf32> to vector<256x256xf32>
    %37 = arith.addf %34, %36 : vector<256x256xf32>
    %38 = vector.shape_cast %37 : vector<256x256xf32> to vector<8x32x256xf32>
    %cst_26 = arith.constant dense<0xFF800000> : vector<8x256xf32>
    %39 = vector.multi_reduction <maximumf>, %38, %cst_26 [1] : vector<8x32x256xf32> to vector<8x256xf32>
    %c0_27 = arith.constant 0 : index
    %c0_28 = arith.constant 0 : index
    %40 = vector.load %arg11[%c0_27, %c0_28] : memref<8x256xf32, #tpu.memory_space<vmem>>, vector<8x256xf32>
    tpu.vector_store %arg11[%c0_27, %c0_28], %39 {strides = array<i32>} : memref<8x256xf32, #tpu.memory_space<vmem>>, vector<8x256xf32>,
    return
  }
  func.func @transform_0(%arg0: i32) -> (i32, i32) {
    %c0_i32 = arith.constant 0 : i32
    %c0_i32_0 = arith.constant 0 : i32
    return %arg0, %c0_i32 : i32, i32
  }
  func.func @transform_1(%arg0: i32) -> (i32, i32) {
    %c0_i32 = arith.constant 0 : i32
    %c0_i32_0 = arith.constant 0 : i32
    %c0_i32_1 = arith.constant 0 : i32
    return %c0_i32, %c0_i32_0 : i32, i32
  }
  func.func @transform_2(%arg0: i32) -> (i32, i32) {
    %c0_i32 = arith.constant 0 : i32
    %c0_i32_0 = arith.constant 0 : i32
    %c0_i32_1 = arith.constant 0 : i32
    return %c0_i32, %c0_i32_0 : i32, i32
  }
  func.func @transform_3(%arg0: i32) -> (i32, i32) {
    %c0_i32 = arith.constant 0 : i32
    %c0_i32_0 = arith.constant 0 : i32
    %c0_i32_1 = arith.constant 0 : i32
    return %c0_i32, %c0_i32_0 : i32, i32
  }
  func.func @transform_4(%arg0: i32) -> (i32, i32) {
    %c0_i32 = arith.constant 0 : i32
    %c0_i32_0 = arith.constant 0 : i32
    %c0_i32_1 = arith.constant 0 : i32
    return %c0_i32, %c0_i32_0 : i32, i32
  }
  func.func @transform_5(%arg0: i32) -> (i32, i32) {
    %c0_i32 = arith.constant 0 : i32
    %c0_i32_0 = arith.constant 0 : i32
    %c0_i32_1 = arith.constant 0 : i32
    return %c0_i32, %c0_i32_0 : i32, i32
  }
  func.func @transform_6(%arg0: i32) -> (i32, i32) {
    %c0_i32 = arith.constant 0 : i32
    %c0_i32_0 = arith.constant 0 : i32
    %c0_i32_1 = arith.constant 0 : i32
    return %c0_i32, %c0_i32_0 : i32, i32
  }
  func.func @transform_7(%arg0: i32) -> (i32, i32) {
    %c0_i32 = arith.constant 0 : i32
    %c0_i32_0 = arith.constant 0 : i32
    %c0_i32_1 = arith.constant 0 : i32
    return %c0_i32, %c0_i32_0 : i32, i32
  }
  func.func @transform_8(%arg0: i32) -> (i32, i32) {
    %c0_i32 = arith.constant 0 : i32
    %c0_i32_0 = arith.constant 0 : i32
    %c0_i32_1 = arith.constant 0 : i32
    return %c0_i32, %c0_i32_0 : i32, i32
  }
  func.func @transform_9(%arg0: i32) -> (i32, i32) {
    %c0_i32 = arith.constant 0 : i32
    %c0_i32_0 = arith.constant 0 : i32
    %c0_i32_1 = arith.constant 0 : i32
    return %c0_i32, %c0_i32_0 : i32, i32
  }
  func.func @transform_10(%arg0: i32) -> (i32, i32) {
    %c0_i32 = arith.constant 0 : i32
    %c0_i32_0 = arith.constant 0 : i32
    return %arg0, %c0_i32 : i32, i32
  }
}

</mosaic_0001>

<bundles_post_ra>
// kernel: encoder_forward.1
= control target key start
LH: loop header
LB: loop body
LE: loop exit
PB: predicated region body
PF: predicated region fallthrough
CT: control target
= control target key end

     0   :  { %vm138_vm0 = vcmask 1040384   ;;  %vm139_vm1 = vcmask 1041408   ;;  %v4309_v1 = vmov 65535   ;;  %vm89_vm2 = vcmask 23552   ;;  %s6853_s1 = inlined_call_operand.vmem [shape: bf16[3,128], index: 1, kind: input, shape index: {}]   ;;  %s6854_s0 = inlined_call_operand.vmem [shape: f32[256,3], index: 0, kind: input, shape index: {}]   ;;  %s6855_s2 = inlined_call_operand.vmem [shape: f32[1,128], index: 2, kind: input, shape index: {}]   ;;  %s6856_s3 = inlined_call_operand.vmem [shape: bf16[128,256], index: 3, kind: input, shape index: {}]   ;;  %s6857_s5 = inlined_call_operand.vmem [shape: bf16[128,512], index: 5, kind: input, shape index: {}]   ;;  %s6858_s4 = inlined_call_operand.vmem [shape: f32[1,256], index: 4, kind: input, shape index: {}]   ;;  %s6859_s6 = inlined_call_operand.vmem [shape: bf16[256,512], index: 6, kind: input, shape index: {}]   ;;  %s6860_s7 = inlined_call_operand.vmem [shape: f32[1,512], index: 7, kind: input, shape index: {}]   ;;  %s6861_s8 = inlined_call_operand.vmem [shape: bf16[512,256], index: 8, kind: input, shape index: {}]   ;;  %s6862_s9 = inlined_call_operand.vmem [shape: f32[1,256], index: 9, kind: input, shape index: {}]   ;;  %s6863_s10 = inlined_call_operand.vmem [shape: f32[8,256], index: 10, kind: output, shape index: {}]  }
   0x1   :  { %v84_v0 = vld [vmem:[%s6853_s1] sm:$0x3]  ;;  %v140_v2 = vsel %vm138_vm0, 4294967295, %v4309_v1  ;;  %v37_v4 = vld [vmem:[%s6854_s0 + $0x8] sm:$0xff]  ;;  %v38_v8 = vld [vmem:[%s6854_s0 + $0x10] sm:$0xff]  ;;  %vm828_vm3 = vcmask 1041409  }
   0x2   :  { %v36_v3 = vld [vmem:[%s6854_s0] sm:$0xff]  ;;  %v141_v5 = vsel %vm139_vm1, %v140_v2, 0  ;;  %v39_v9 = vld [vmem:[%s6854_s0 + $0x18] sm:$0xff]  ;;  %v41_v12 = vld [vmem:[%s6854_s0 + $0x28] sm:$0xff]  ;;  %vm830_vm4 = vcmask 1042434   ;;  %vm832_vm5 = vcmask 1043459  }
   0x3   :  { %v143_v6 = vand.u32 %v141_v5, %v84_v0  ;;  %v68_v7 = vpack.c.bf16 %v37_v4, %v36_v3  ;;  %v69_v10 = vpack.c.bf16 %v39_v9, %v38_v8  ;;  %v40_v11 = vld [vmem:[%s6854_s0 + $0x20] sm:$0xff]  ;;  %v42_v14 = vld [vmem:[%s6854_s0 + $0x30] sm:$0xff]  ;;  %v43_v15 = vld [vmem:[%s6854_s0 + $0x38] sm:$0xff]  ;;  %vm834_vm6 = vcmask 1044484  }
   0x4   :  { %v70_v13 = vpack.c.bf16 %v41_v12, %v40_v11  ;;  %v71_v16 = vpack.c.bf16 %v43_v15, %v42_v14  ;;  %v44_v17 = vld [vmem:[%s6854_s0 + $0x40] sm:$0xff]  ;;  %v45_v18 = vld [vmem:[%s6854_s0 + $0x48] sm:$0xff]  ;;  %v3485_v20 = vld [vmem:[%s6856_s3 + $0x70] sm:$0xf]  ;;  %vm836_vm7 = vcmask 1045509   ;;  %vm838_vm8 = vcmask 1046534  }
   0x5   :  { %152 = vmatpush.bf16.msra.mxu0 %v143_v6  ;;  %v72_v19 = vpack.c.bf16 %v45_v18, %v44_v17  ;;  %v4146_v21 = vld [vmem:[%s6856_s3 + $0x74] sm:$0xf0]  ;;  %v4145_v22 = vld [vmem:[%s6856_s3 + $0x74] sm:$0xf]  ;;  %v3487_v24 = vld [vmem:[%s6856_s3 + $0x78] sm:$0xf0] }
   0x6   :  { %v3486_v23 = vor.u32 %v4146_v21, %v3485_v20  ;;  %v3490_v25 = vor.u32 %v4145_v22, %v3487_v24  ;;  %v46_v26 = vld [vmem:[%s6854_s0 + $0x50] sm:$0xff]  ;;  %v47_v27 = vld [vmem:[%s6854_s0 + $0x58] sm:$0xff]  ;;  %v3477_v29 = vld [vmem:[%s6856_s3 + $0x60] sm:$0xf]  ;;  %vm840_vm9 = vcmask 1047559   ;;  %vm1340_vm10 = vcmask 1046528  }
   0x7   :  { %v73_v28 = vpack.c.bf16 %v47_v27, %v46_v26  ;;  %v4144_v30 = vld [vmem:[%s6856_s3 + $0x64] sm:$0xf0]  ;;  %v4143_v31 = vld [vmem:[%s6856_s3 + $0x64] sm:$0xf]  ;;  %v3479_v33 = vld [vmem:[%s6856_s3 + $0x68] sm:$0xf0] }
   0x8   :  { %3411 = vmatmul.msk.bf16.vlgmr.msra.gmra.mxu0 %vm89_vm2, %v68_v7  ;;  %384 = vmatpush.bf16.msra.mxu1 %v3486_v23  ;;  %v3478_v32 = vor.u32 %v4144_v30, %v3477_v29  ;;  %v3482_v34 = vor.u32 %v4143_v31, %v3479_v33  ;;  %v3469_v35 = vld [vmem:[%s6856_s3 + $0x50] sm:$0xf]  ;;  %v4142_v36 = vld [vmem:[%s6856_s3 + $0x54] sm:$0xf0]  ;;  %v4141_v37 = vld [vmem:[%s6856_s3 + $0x54] sm:$0xf] }
   0x9   :  { %473 = vmatpush.bf16.msra.mxu2 %v3490_v25  ;;  %v3470_v38 = vor.u32 %v4142_v36, %v3469_v35  ;;  %v3471_v39 = vld [vmem:[%s6856_s3 + $0x58] sm:$0xf0]  ;;  %v3461_v41 = vld [vmem:[%s6856_s3 + $0x40] sm:$0xf]  ;;  %v4140_v42 = vld [vmem:[%s6856_s3 + $0x44] sm:$0xf0] }
   0xa   :  { %v3474_v40 = vor.u32 %v4141_v37, %v3471_v39  ;;  %v4139_v43 = vld [vmem:[%s6856_s3 + $0x44] sm:$0xf]  ;;  %v3463_v44 = vld [vmem:[%s6856_s3 + $0x48] sm:$0xf0]  ;;  %v3462_v45 = vor.u32 %v4140_v42, %v3461_v41  ;;  %v3453_v49 = vld [vmem:[%s6856_s3 + $0x30] sm:$0xf] }
   0xb   :  { %v3466_v46 = vor.u32 %v4139_v43, %v3463_v44  ;;  %v48_v47 = vld [vmem:[%s6854_s0 + $0x60] sm:$0xff]  ;;  %v49_v48 = vld [vmem:[%s6854_s0 + $0x68] sm:$0xff]  ;;  %v4138_v50 = vld [vmem:[%s6856_s3 + $0x34] sm:$0xf0]  ;;  %vm1321_vm11 = vcmask 1042433   ;;  %vm1326_vm12 = vcmask 1043458  }
   0xc   :  { %385 = vmatpush.bf16.msra.mxu1 %v3478_v32  ;;  %v4137_v51 = vld [vmem:[%s6856_s3 + $0x34] sm:$0xf]  ;;  %v3454_v52 = vor.u32 %v4138_v50, %v3453_v49  ;;  %v3455_v53 = vld [vmem:[%s6856_s3 + $0x38] sm:$0xf0]  ;;  %v74_v54 = vpack.c.bf16 %v49_v48, %v48_v47  ;;  %v3445_v56 = vld [vmem:[%s6856_s3 + $0x20] sm:$0xf] }
   0xd   :  { %474 = vmatpush.bf16.msra.mxu2 %v3482_v34  ;;  %v3458_v55 = vor.u32 %v4137_v51, %v3455_v53  ;;  %v4136_v57 = vld [vmem:[%s6856_s3 + $0x24] sm:$0xf0]  ;;  %v4135_v58 = vld [vmem:[%s6856_s3 + $0x24] sm:$0xf]  ;;  %v3447_v60 = vld [vmem:[%s6856_s3 + $0x28] sm:$0xf0] }
   0xe   :  { %v3446_v59 = vor.u32 %v4136_v57, %v3445_v56  ;;  %v3450_v61 = vor.u32 %v4135_v58, %v3447_v60  ;;  %v3437_v62 = vld [vmem:[%s6856_s3 + $0x10] sm:$0xf]  ;;  %v4134_v63 = vld [vmem:[%s6856_s3 + $0x14] sm:$0xf0]  ;;  %v4133_v0 = vld [vmem:[%s6856_s3 + $0x14] sm:$0xf] }
   0xf   :  { %v3438_v1 = vor.u32 %v4134_v63, %v3437_v62  ;;  %v3439_v2 = vld [vmem:[%s6856_s3 + $0x18] sm:$0xf0]  ;;  %v3429_v4 = vld [vmem:[%s6856_s3] sm:$0xf]  ;;  %v4132_v5 = vld [vmem:[%s6856_s3 + $0x4] sm:$0xf0] }
  0x10   :  { %386 = vmatpush.bf16.msra.mxu1 %v3470_v38  ;;  %v3442_v3 = vor.u32 %v4133_v0, %v3439_v2  ;;  %v4131_v6 = vld [vmem:[%s6856_s3 + $0x4] sm:$0xf]  ;;  %v3430_v7 = vor.u32 %v4132_v5, %v3429_v4  ;;  %v3431_v8 = vld [vmem:[%s6856_s3 + $0x8] sm:$0xf0]  ;;  %v51_v11 = vld [vmem:[%s6854_s0 + $0x78] sm:$0xff]  ;;  %vm1331_vm13 = vcmask 1044483  }
  0x11   :  { %475 = vmatpush.bf16.msra.mxu2 %v3474_v40  ;;  %v3434_v9 = vor.u32 %v4131_v6, %v3431_v8  ;;  %v53_v14 = vld [vmem:[%s6854_s0 + $0x88] sm:$0xff]  ;;  %v4531_v17 = vld [vmem:[%s6855_s2] ss:$0 sm:$0xff]  ;;  %v54_v23 = vld [vmem:[%s6854_s0 + $0x90] sm:$0xff]  ;;  %vm1336_vm14 = vcmask 1045508   ;;  %vm1342_vm15 = vcmask 1046533  }
  0x12   :  { %v55_v24 = vld [vmem:[%s6854_s0 + $0x98] sm:$0xff]  ;;  %v56_v33 = vld [vmem:[%s6854_s0 + $0xa0] sm:$0xff]  ;;  %v57_v34 = vld [vmem:[%s6854_s0 + $0xa8] sm:$0xff] }
  0x13   :  { %v77_v26 = vpack.c.bf16 %v55_v24, %v54_v23  ;;  %v78_v36 = vpack.c.bf16 %v57_v34, %v56_v33  ;;  %v58_v43 = vld [vmem:[%s6854_s0 + $0xb0] sm:$0xff]  ;;  %v59_v44 = vld [vmem:[%s6854_s0 + $0xb8] sm:$0xff]  ;;  %v60_v53 = vld [vmem:[%s6854_s0 + $0xc0] sm:$0xff] }
  0x14   :  { %387 = vmatpush.bf16.msra.mxu1 %v3462_v45  ;;  %v3861_v58 = vld [vmem:[%s6857_s5 + $0xe0] sm:$0xf]  ;;  %v4237_v62 = vld [vmem:[%s6857_s5 + $0xcc] sm:$0xf0]  ;;  %v65_v33 = vld [vmem:[%s6854_s0 + $0xe8] sm:$0xff] }
  0x15   :  { %476 = vmatpush.bf16.msra.mxu2 %v3466_v46  ;;  %v79_v46 = vpack.c.bf16 %v59_v44, %v58_v43  ;;  %v4233_v4 = vld [vmem:[%s6857_s5 + $0xac] sm:$0xf0] }
  0x16   :  { %v62_v8 = vld [vmem:[%s6854_s0 + $0xd0] sm:$0xff] }
  0x18   :  { %3412 = vmatmul.msk.bf16.gmra.mxu0 %vm89_vm2, %v69_v10  ;;  %388 = vmatpush.bf16.msra.mxu1 %v3454_v52  ;;  %v50_v10 = vld [vmem:[%s6854_s0 + $0x70] sm:$0xff] }
  0x19   :  { %477 = vmatpush.bf16.msra.mxu2 %v3458_v55  ;;  %v75_v12 = vpack.c.bf16 %v51_v11, %v50_v10  ;;  %v3813_v11 = vld [vmem:[%s6857_s5 + $0x80] sm:$0xf] }
  0x1c   :  { %389 = vmatpush.bf16.msra.mxu1 %v3446_v59  ;;  %v4241_v59 = vld [vmem:[%s6857_s5 + $0xec] sm:$0xf0] }
  0x1d   :  { %478 = vmatpush.bf16.msra.mxu2 %v3450_v61  ;;  %v3862_v60 = vor.u32 %v4241_v59, %v3861_v58  ;;  %v3845_v61 = vld [vmem:[%s6857_s5 + $0xc0] sm:$0xf] }
  0x1e   :  { %v3846_v63 = vor.u32 %v4237_v62, %v3845_v61 }
  0x1f   :  { %1579 = vmatpush.bf16.msrb.mxu0 %v3862_v60 }
  0x20   :  { %390 = vmatpush.bf16.msra.mxu1 %v3438_v1 }
  0x21   :  { %479 = vmatpush.bf16.msra.mxu2 %v3442_v3  ;;  %v3829_v3 = vld [vmem:[%s6857_s5 + $0xa0] sm:$0xf] }
  0x22   :  { %v3830_v5 = vor.u32 %v4233_v4, %v3829_v3  ;;  %v298_v3 = vld [vmem:[%s6858_s4] sm:$0x3] }
  0x23   :  { %1580 = vmatpush.bf16.msrb.mxu0 %v3846_v63 }
  0x24   :  { %391 = vmatpush.bf16.msra.mxu1 %v3430_v7 }
  0x25   :  { %480 = vmatpush.bf16.msra.mxu2 %v3434_v9  ;;  %v63_v9 = vld [vmem:[%s6854_s0 + $0xd8] sm:$0xff] }
  0x27   :  { %1581 = vmatpush.bf16.msrb.mxu0 %v3830_v5  ;;  %v4689_v5 = vperm.slane %v298_v3, 0 }
  0x28   :  { %3413 = vmatmul.msk.bf16.gmra.mxu0 %vm89_vm2, %v70_v13  ;;  %v52_v13 = vld [vmem:[%s6854_s0 + $0x80] sm:$0xff] }
  0x29   :  { %v76_v15 = vpack.c.bf16 %v53_v14, %v52_v13  ;;  %v81_v14 = vpack.c.bf16 %v63_v9, %v62_v8 }
  0x38   :  { %3414 = vmatmul.msk.bf16.gmra.mxu0 %vm89_vm2, %v71_v16 }
  0x48   :  { %3415 = vmatmul.msk.bf16.gmra.mxu0 %vm89_vm2, %v72_v19 }
  0x58   :  { %3416 = vmatmul.msk.bf16.gmra.mxu0 %vm89_vm2, %v73_v28 }
  0x68   :  { %3417 = vmatmul.msk.bf16.gmra.mxu0 %vm89_vm2, %v74_v54  ;;  %v61_v54 = vld [vmem:[%s6854_s0 + $0xc8] sm:$0xff] }
  0x69   :  { %v80_v56 = vpack.c.bf16 %v61_v54, %v60_v53 }
  0x78   :  { %3418 = vmatmul.msk.bf16.gmra.mxu0 %vm89_vm2, %v75_v12  ;;  %v4229_v12 = vld [vmem:[%s6857_s5 + $0x8c] sm:$0xf0] }
  0x79   :  { %v3814_v13 = vor.u32 %v4229_v12, %v3813_v11  ;;  %v4695_v12 = vperm.slane %v298_v3, 1 }
  0x7b   :  { %1582 = vmatpush.bf16.msrb.mxu0 %v3814_v13 }
  0x85   :  { %v154_v16 = vpop.f32.mrf.mxu0 }
  0x86   :  { %v155_v18 = vadd.f32 %v4531_v17, %v154_v16  ;;  %v3797_v16 = vld [vmem:[%s6857_s5 + $0x60] sm:$0xf] }
  0x88   :  { %3419 = vmatmul.msk.bf16.gmra.mxu0 %vm89_vm2, %v76_v15  ;;  %v234_v21 = vmax.f32 %v155_v18, 0.0  ;;  %v4225_v18 = vld [vmem:[%s6857_s5 + $0x6c] sm:$0xf0] }
  0x8d   :  { %v156_v19 = vpop.f32.mrf.mxu0 }
  0x8e   :  { %v157_v20 = vadd.f32 %v4531_v17, %v156_v19  ;;  %v3798_v19 = vor.u32 %v4225_v18, %v3797_v16 }
  0x90   :  { %v235_v22 = vmax.f32 %v157_v20, 0.0  ;;  %1583 = vmatpush.bf16.msrb.mxu0 %v3798_v19  ;;  %v3781_v20 = vld [vmem:[%s6857_s5 + $0x40] sm:$0xf] }
  0x92   :  { %v4542_v25 = vpack.c.bf16 %v235_v22, %v234_v21  ;;  %v4221_v21 = vld [vmem:[%s6857_s5 + $0x4c] sm:$0xf0] }
  0x93   :  { %v3782_v22 = vor.u32 %v4221_v21, %v3781_v20 }
  0x94   :  { %392 = vmatmul.bf16.vlgmr.msra.gmra.mxu1 %v4542_v25  ;;  %481 = vmatmul.bf16.vlgmr.msra.gmra.mxu2 %v4542_v25 }
  0x95   :  { %v159_v27 = vpop.f32.mrf.mxu0  ;;  %1584 = vmatpush.bf16.msrb.mxu0 %v3782_v22 }
  0x96   :  { %v160_v28 = vadd.f32 %v4531_v17, %v159_v27  ;;  %v3765_v27 = vld [vmem:[%s6857_s5 + $0x20] sm:$0xf] }
  0x98   :  { %3420 = vmatmul.msk.bf16.gmra.mxu0 %vm89_vm2, %v77_v26  ;;  %v236_v31 = vmax.f32 %v160_v28, 0.0  ;;  %v4217_v28 = vld [vmem:[%s6857_s5 + $0x2c] sm:$0xf0] }
  0x9d   :  { %v161_v29 = vpop.f32.mrf.mxu0 }
  0x9e   :  { %v162_v30 = vadd.f32 %v4531_v17, %v161_v29  ;;  %v3766_v29 = vor.u32 %v4217_v28, %v3765_v27 }
  0xa0   :  { %v237_v32 = vmax.f32 %v162_v30, 0.0  ;;  %1585 = vmatpush.bf16.msrb.mxu0 %v3766_v29 }
  0xa2   :  { %v4555_v35 = vpack.c.bf16 %v237_v32, %v236_v31  ;;  %v64_v32 = vld [vmem:[%s6854_s0 + $0xe0] sm:$0xff] }
  0xa4   :  { %397 = vmatmul.bf16.gmra.mxu1 %v4555_v35  ;;  %486 = vmatmul.bf16.gmra.mxu2 %v4555_v35 }
  0xa5   :  { %v164_v37 = vpop.f32.mrf.mxu0 }
  0xa6   :  { %v165_v38 = vadd.f32 %v4531_v17, %v164_v37  ;;  %v4213_v37 = vld [vmem:[%s6857_s5 + $0xc] sm:$0xf0] }
  0xa8   :  { %3421 = vmatmul.msk.bf16.gmra.mxu0 %vm89_vm2, %v78_v36  ;;  %v238_v41 = vmax.f32 %v165_v38, 0.0  ;;  %v3749_v36 = vld [vmem:[%s6857_s5] sm:$0xf] }
  0xa9   :  { %v3750_v38 = vor.u32 %v4213_v37, %v3749_v36 }
  0xab   :  { %1586 = vmatpush.bf16.msrb.mxu0 %v3750_v38 }
  0xad   :  { %v166_v39 = vpop.f32.mrf.mxu0 }
  0xae   :  { %v167_v40 = vadd.f32 %v4531_v17, %v166_v39  ;;  %v82_v39 = vpack.c.bf16 %v65_v33, %v64_v32 }
  0xb0   :  { %v239_v42 = vmax.f32 %v167_v40, 0.0 }
  0xb2   :  { %v4568_v45 = vpack.c.bf16 %v239_v42, %v238_v41 }
  0xb4   :  { %402 = vmatmul.bf16.gmra.mxu1 %v4568_v45  ;;  %491 = vmatmul.bf16.gmra.mxu2 %v4568_v45 }
  0xb5   :  { %v169_v47 = vpop.f32.mrf.mxu0 }
  0xb6   :  { %v170_v48 = vadd.f32 %v4531_v17, %v169_v47  ;;  %v66_v47 = vld [vmem:[%s6854_s0 + $0xf0] sm:$0xff] }
  0xb8   :  { %3422 = vmatmul.msk.bf16.gmra.mxu0 %vm89_vm2, %v79_v46  ;;  %v240_v51 = vmax.f32 %v170_v48, 0.0  ;;  %v67_v48 = vld [vmem:[%s6854_s0 + $0xf8] sm:$0xff] }
  0xbd   :  { %v171_v49 = vpop.f32.mrf.mxu0 }
  0xbe   :  { %v172_v50 = vadd.f32 %v4531_v17, %v171_v49 }
  0xc0   :  { %v241_v52 = vmax.f32 %v172_v50, 0.0  ;;  %v83_v50 = vpack.c.bf16 %v67_v48, %v66_v47 }
  0xc2   :  { %v4581_v55 = vpack.c.bf16 %v241_v52, %v240_v51 }
  0xc4   :  { %407 = vmatmul.bf16.gmra.mxu1 %v4581_v55  ;;  %496 = vmatmul.bf16.gmra.mxu2 %v4581_v55 }
  0xc5   :  { %v174_v57 = vpop.f32.mrf.mxu0 }
  0xc6   :  { %v175_v0 = vadd.f32 %v4531_v17, %v174_v57 }
  0xc8   :  { %3423 = vmatmul.msk.bf16.gmra.mxu0 %vm89_vm2, %v80_v56  ;;  %v242_v6 = vmax.f32 %v175_v0, 0.0 }
  0xcd   :  { %v176_v1 = vpop.f32.mrf.mxu0 }
  0xce   :  { %v177_v2 = vadd.f32 %v4531_v17, %v176_v1 }
  0xd0   :  { %v243_v7 = vmax.f32 %v177_v2, 0.0 }
  0xd2   :  { %v4612_v10 = vpack.c.bf16 %v243_v7, %v242_v6 }
  0xd4   :  { %412 = vmatmul.bf16.gmra.mxu1 %v4612_v10  ;;  %501 = vmatmul.bf16.gmra.mxu2 %v4612_v10 }
  0xd5   :  { %v179_v15 = vpop.f32.mrf.mxu0 }
  0xd6   :  { %v180_v23 = vadd.f32 %v4531_v17, %v179_v15 }
  0xd8   :  { %3424 = vmatmul.msk.bf16.gmra.mxu0 %vm89_vm2, %v81_v14  ;;  %v244_v30 = vmax.f32 %v180_v23, 0.0 }
  0xdd   :  { %v181_v24 = vpop.f32.mrf.mxu0 }
  0xde   :  { %v182_v26 = vadd.f32 %v4531_v17, %v181_v24 }
  0xe0   :  { %v245_v31 = vmax.f32 %v182_v26, 0.0 }
  0xe2   :  { %v4649_v34 = vpack.c.bf16 %v245_v31, %v244_v30 }
  0xe4   :  { %417 = vmatmul.bf16.gmra.mxu1 %v4649_v34  ;;  %506 = vmatmul.bf16.gmra.mxu2 %v4649_v34 }
  0xe5   :  { %v184_v40 = vpop.f32.mrf.mxu0 }
  0xe6   :  { %v185_v41 = vadd.f32 %v4531_v17, %v184_v40 }
  0xe8   :  { %3425 = vmatmul.msk.bf16.gmra.mxu0 %vm89_vm2, %v82_v39  ;;  %v246_v44 = vmax.f32 %v185_v41, 0.0 }
  0xed   :  { %v186_v42 = vpop.f32.mrf.mxu0 }
  0xee   :  { %v187_v43 = vadd.f32 %v4531_v17, %v186_v42 }
  0xf0   :  { %v247_v46 = vmax.f32 %v187_v43, 0.0 }
  0xf2   :  { %v4668_v49 = vpack.c.bf16 %v247_v46, %v246_v44 }
  0xf4   :  { %422 = vmatmul.bf16.gmra.mxu1 %v4668_v49  ;;  %511 = vmatmul.bf16.gmra.mxu2 %v4668_v49 }
  0xf5   :  { %v189_v51 = vpop.f32.mrf.mxu0 }
  0xf6   :  { %v190_v52 = vadd.f32 %v4531_v17, %v189_v51 }
  0xf8   :  { %3426 = vmatmul.msk.bf16.gmra.mxu0 %vm89_vm2, %v83_v50  ;;  %v248_v56 = vmax.f32 %v190_v52, 0.0 }
  0xfd   :  { %v191_v53 = vpop.f32.mrf.mxu0 }
  0xfe   :  { %v192_v54 = vadd.f32 %v4531_v17, %v191_v53 }
 0x100   :  { %v249_v57 = vmax.f32 %v192_v54, 0.0 }
 0x102   :  { %v4675_v58 = vpack.c.bf16 %v249_v57, %v248_v56 }
 0x104   :  { %427 = vmatmul.bf16.gmra.mxu1 %v4675_v58  ;;  %516 = vmatmul.bf16.gmra.mxu2 %v4675_v58 }
 0x105   :  { %v194_v59 = vpop.f32.mrf.mxu0 }
 0x106   :  { %v195_v60 = vadd.f32 %v4531_v17, %v194_v59 }
 0x108   :  { %1587 = vmatmul.bf16.vlgmr.msrb.gmra.mxu0 %v4542_v25  ;;  %v250_v63 = vmax.f32 %v195_v60, 0.0 }
 0x10d   :  { %v196_v61 = vpop.f32.mrf.mxu0 }
 0x10e   :  { %v197_v62 = vadd.f32 %v4531_v17, %v196_v61 }
 0x110   :  { %v251_v0 = vmax.f32 %v197_v62, 0.0 }
 0x111   :  { %v393_v1 = vpop.f32.mrf.mxu1 }
 0x112   :  { %v4682_v2 = vpack.c.bf16 %v251_v0, %v250_v63  ;;  %v394_v8 = vadd.f32 %v393_v1, %v4689_v5 }
 0x114   :  { %432 = vmatmul.bf16.gmra.mxu1 %v4682_v2  ;;  %521 = vmatmul.bf16.gmra.mxu2 %v4682_v2 }
 0x115   :  { %v199_v4 = vpop.f32.mrf.mxu0 }
 0x116   :  { %v200_v11 = vadd.f32 %v4531_v17, %v199_v4 }
 0x117   :  { %v482_v6 = vpop.f32.mrf.mxu2 }
 0x118   :  { %1592 = vmatmul.bf16.gmra.mxu0 %v4555_v35  ;;  %v252_v18 = vmax.f32 %v200_v11, 0.0  ;;  %v483_v19 = vadd.f32 %v482_v6, %v4695_v12 }
 0x119   :  { %v395_v7 = vpop.f32.mrf.mxu1 }
 0x11a   :  { %v396_v9 = vadd.f32 %v395_v7, %v4689_v5 }
 0x11c   :  { %v562_v13 = vmax.f32 %v394_v8, %v396_v9 }
 0x11d   :  { %v201_v14 = vpop.f32.mrf.mxu0 }
 0x11e   :  { %v202_v15 = vadd.f32 %v4531_v17, %v201_v14 }
 0x11f   :  { %v484_v16 = vpop.f32.mrf.mxu2 }
 0x120   :  { %v253_v20 = vmax.f32 %v202_v15, 0.0  ;;  %v485_v21 = vadd.f32 %v484_v16, %v4695_v12 }
 0x121   :  { %v398_v22 = vpop.f32.mrf.mxu1 }
 0x122   :  { %v4700_v23 = vpack.c.bf16 %v253_v20, %v252_v18  ;;  %v571_v24 = vmax.f32 %v483_v19, %v485_v21  ;;  %v399_v26 = vadd.f32 %v398_v22, %v4689_v5 }
 0x124   :  { %6916 = vst [vmem:[#allocation2_spill] sm:$0xff] %v4700_v23  ;;  %v563_v27 = vmax.f32 %v562_v13, %v399_v26  ;;  %437 = vmatmul.bf16.gmra.mxu1 %v4700_v23  ;;  %526 = vmatmul.bf16.gmra.mxu2 %v4700_v23 }
 0x125   :  { %v204_v28 = vpop.f32.mrf.mxu0 }
 0x126   :  { %v205_v36 = vadd.f32 %v4531_v17, %v204_v28 }
 0x127   :  { %v487_v29 = vpop.f32.mrf.mxu2 }
 0x128   :  { %v488_v30 = vadd.f32 %v487_v29, %v4695_v12  ;;  %1597 = vmatmul.bf16.gmra.mxu0 %v4568_v45  ;;  %v254_v41 = vmax.f32 %v205_v36, 0.0 }
 0x129   :  { %v400_v31 = vpop.f32.mrf.mxu1 }
 0x12a   :  { %v572_v32 = vmax.f32 %v571_v24, %v488_v30  ;;  %v401_v33 = vadd.f32 %v400_v31, %v4689_v5 }
 0x12c   :  { %v564_v37 = vmax.f32 %v563_v27, %v401_v33 }
 0x12d   :  { %v206_v38 = vpop.f32.mrf.mxu0 }
 0x12e   :  { %v207_v39 = vadd.f32 %v4531_v17, %v206_v38  ;;  %v565_v60 = vrot.slane %v564_v37, 4 }
 0x12f   :  { %v489_v40 = vpop.f32.mrf.mxu2 }
 0x130   :  { %v255_v42 = vmax.f32 %v207_v39, 0.0  ;;  %v490_v43 = vadd.f32 %v489_v40, %v4695_v12  ;;  %v566_v8 = vmax.f32 %v564_v37, %v565_v60 }
 0x131   :  { %v403_v44 = vpop.f32.mrf.mxu1 }
 0x132   :  { %v4711_v46 = vpack.c.bf16 %v255_v42, %v254_v41  ;;  %v573_v47 = vmax.f32 %v572_v32, %v490_v43  ;;  %v404_v52 = vadd.f32 %v403_v44, %v4689_v5  ;;  %v567_v14 = vrot.slane %v566_v8, 2  ;;  %v4239_v44 = vld [vmem:[%s6857_s5 + $0xe4] sm:$0xf] }
 0x134   :  { %6917 = vst [vmem:[#allocation3_spill] sm:$0xff] %v4711_v46  ;;  %442 = vmatmul.bf16.gmra.mxu1 %v4711_v46  ;;  %531 = vmatmul.bf16.gmra.mxu2 %v4711_v46  ;;  %v574_v11 = vrot.slane %v573_v47, 4  ;;  %v568_v22 = vmax.f32 %v566_v8, %v567_v14 }
 0x135   :  { %v209_v48 = vpop.f32.mrf.mxu0 }
 0x136   :  { %v210_v54 = vadd.f32 %v4531_v17, %v209_v48  ;;  %v575_v18 = vmax.f32 %v573_v47, %v574_v11  ;;  %v569_v31 = vrot.slane %v568_v22, 1  ;;  %v3863_v47 = vld [vmem:[%s6857_s5 + $0xf0] sm:$0xf0] }
 0x137   :  { %v492_v50 = vpop.f32.mrf.mxu2  ;;  %v3866_v48 = vor.u32 %v4239_v44, %v3863_v47 }
 0x138   :  { %1602 = vmatmul.bf16.gmra.mxu0 %v4581_v55  ;;  %v256_v62 = vmax.f32 %v210_v54, 0.0  ;;  %v493_v63 = vadd.f32 %v492_v50, %v4695_v12  ;;  %v576_v27 = vrot.slane %v575_v18, 2  ;;  %v3869_v50 = vld [vmem:[%s6857_s5 + $0xe8] sm:$0xf] }
 0x139   :  { %v405_v51 = vpop.f32.mrf.mxu1  ;;  %1668 = vmatpush.bf16.msrb.mxu1 %v3866_v48 }
 0x13a   :  { %v406_v53 = vadd.f32 %v405_v51, %v4689_v5  ;;  %v577_v39 = vmax.f32 %v575_v18, %v576_v27  ;;  %v4242_v51 = vld [vmem:[%s6857_s5 + $0xf4] sm:$0xf0] }
 0x13b   :  { %v4234_v27 = vld [vmem:[%s6857_s5 + $0xb4] sm:$0xf0] }
 0x13c   :  { %v580_v56 = vmax.f32 %v404_v52, %v406_v53  ;;  %v570_v52 = vmax.f32 %v568_v22, %v569_v31  ;;  %v3837_v22 = vld [vmem:[%s6857_s5 + $0xa8] sm:$0xf] }
 0x13d   :  { %v211_v57 = vpop.f32.mrf.mxu0 }
 0x13e   :  { %v212_v59 = vadd.f32 %v4531_v17, %v211_v57  ;;  %v578_v57 = vrot.slane %v577_v39, 1 }
 0x13f   :  { %v494_v61 = vpop.f32.mrf.mxu2 }
 0x140   :  { %v257_v0 = vmax.f32 %v212_v59, 0.0  ;;  %v495_v1 = vadd.f32 %v494_v61, %v4695_v12  ;;  %v579_v11 = vmax.f32 %v577_v39, %v578_v57 }
 0x141   :  { %v408_v3 = vpop.f32.mrf.mxu1 }
 0x142   :  { %v4722_v4 = vpack.c.bf16 %v257_v0, %v256_v62  ;;  %v589_v6 = vmax.f32 %v493_v63, %v495_v1  ;;  %v409_v7 = vadd.f32 %v408_v3, %v4689_v5  ;;  %v4235_v62 = vld [vmem:[%s6857_s5 + $0xc4] sm:$0xf]  ;;  %v3847_v63 = vld [vmem:[%s6857_s5 + $0xd0] sm:$0xf0]  ;;  %v3853_v3 = vld [vmem:[%s6857_s5 + $0xc8] sm:$0xf] }
 0x143   :  { %v3850_v1 = vor.u32 %v4235_v62, %v3847_v63 }
 0x144   :  { %6918 = vst [vmem:[#allocation4_spill] sm:$0xff] %v4722_v4  ;;  %v581_v9 = vmax.f32 %v580_v56, %v409_v7  ;;  %447 = vmatmul.bf16.gmra.mxu1 %v4722_v4  ;;  %536 = vmatmul.bf16.gmra.mxu2 %v4722_v4  ;;  %v3870_v56 = vor.u32 %v4242_v51, %v3869_v50  ;;  %v4230_v51 = vld [vmem:[%s6857_s5 + $0x94] sm:$0xf0] }
 0x145   :  { %v214_v13 = vpop.f32.mrf.mxu0  ;;  %v706_v7 = vpack.c.bf16 %v570_v52, %v570_v52  ;;  %1669 = vmatpush.bf16.msrb.mxu1 %v3850_v1  ;;  %v3799_v1 = vld [vmem:[%s6857_s5 + $0x70] sm:$0xf0] }
 0x146   :  { %v215_v24 = vadd.f32 %v4531_v17, %v214_v13  ;;  %1757 = vmatpush.bf16.msrb.mxu2 %v3870_v56 }
 0x147   :  { %v497_v15 = vpop.f32.mrf.mxu2 }
 0x148   :  { %v498_v16 = vadd.f32 %v497_v15, %v4695_v12  ;;  %1607 = vmatmul.bf16.gmra.mxu0 %v4612_v10  ;;  %v258_v33 = vmax.f32 %v215_v24, 0.0 }
 0x149   :  { %v410_v19 = vpop.f32.mrf.mxu1 }
 0x14a   :  { %v590_v20 = vmax.f32 %v589_v6, %v498_v16  ;;  %v411_v21 = vadd.f32 %v410_v19, %v4689_v5  ;;  %v4238_v6 = vld [vmem:[%s6857_s5 + $0xd4] sm:$0xf0] }
 0x14b   :  { %v3854_v14 = vor.u32 %v4238_v6, %v3853_v3  ;;  %v3805_v3 = vld [vmem:[%s6857_s5 + $0x68] sm:$0xf] }
 0x14c   :  { %v582_v26 = vmax.f32 %v581_v9, %v411_v21  ;;  %v3831_v21 = vld [vmem:[%s6857_s5 + $0xb0] sm:$0xf0] }
 0x14d   :  { %v216_v28 = vpop.f32.mrf.mxu0  ;;  %1758 = vmatpush.bf16.msrb.mxu2 %v3854_v14  ;;  %v4219_v14 = vld [vmem:[%s6857_s5 + $0x44] sm:$0xf] }
 0x14e   :  { %v583_v29 = vrot.slane %v582_v26, 4  ;;  %v217_v30 = vadd.f32 %v4531_v17, %v216_v28  ;;  %v812_v28 = vunpack.c.l.b16 %v706_v7  ;;  %v4226_v7 = vld [vmem:[%s6857_s5 + $0x74] sm:$0xf0] }
 0x14f   :  { %v499_v32 = vpop.f32.mrf.mxu2 }
 0x150   :  { %v584_v36 = vmax.f32 %v582_v26, %v583_v29  ;;  %v259_v37 = vmax.f32 %v217_v30, 0.0  ;;  %v500_v38 = vadd.f32 %v499_v32, %v4695_v12  ;;  %v707_v32 = vpack.c.bf16 %v579_v11, %v579_v11 }
 0x151   :  { %v413_v40 = vpop.f32.mrf.mxu1  ;;  %v3806_v11 = vor.u32 %v4226_v7, %v3805_v3 }
 0x152   :  { %v585_v41 = vrot.slane %v584_v36, 2  ;;  %v4733_v42 = vpack.c.bf16 %v259_v37, %v258_v33  ;;  %v591_v43 = vmax.f32 %v590_v20, %v500_v38  ;;  %v414_v18 = vadd.f32 %v413_v40, %v4689_v5  ;;  %v4231_v20 = vld [vmem:[%s6857_s5 + $0xa4] sm:$0xf] }
 0x153   :  { %v3834_v26 = vor.u32 %v4231_v20, %v3831_v21  ;;  %v4227_v40 = vld [vmem:[%s6857_s5 + $0x84] sm:$0xf]  ;;  %v813_v57 = vunpack.c.l.b16 %v707_v32  ;;  %v4222_v20 = vld [vmem:[%s6857_s5 + $0x54] sm:$0xf0] }
 0x154   :  { %6919 = vst [vmem:[#allocation5_spill] sm:$0xff] %v4733_v42  ;;  %v586_v53 = vmax.f32 %v584_v36, %v585_v41  ;;  %v592_v54 = vrot.slane %v591_v43, 4  ;;  %452 = vmatmul.bf16.gmra.mxu1 %v4733_v42  ;;  %541 = vmatmul.bf16.gmra.mxu2 %v4733_v42  ;;  %v3838_v36 = vor.u32 %v4234_v27, %v3837_v22  ;;  %v3815_v41 = vld [vmem:[%s6857_s5 + $0x90] sm:$0xf0] }
 0x155   :  { %v219_v59 = vpop.f32.mrf.mxu0  ;;  %1670 = vmatpush.bf16.msrb.mxu1 %v3834_v26  ;;  %v3818_v50 = vor.u32 %v4227_v40, %v3815_v41 }
 0x156   :  { %v587_v60 = vrot.slane %v586_v53, 1  ;;  %v593_v61 = vmax.f32 %v591_v43, %v592_v54  ;;  %v220_v24 = vadd.f32 %v4531_v17, %v219_v59  ;;  %v3821_v43 = vld [vmem:[%s6857_s5 + $0x88] sm:$0xf]  ;;  %1759 = vmatpush.bf16.msrb.mxu2 %v3838_v36 }
 0x157   :  { %v502_v0 = vpop.f32.mrf.mxu2  ;;  %v3822_v56 = vor.u32 %v4230_v51, %v3821_v43  ;;  %v4211_v43 = vld [vmem:[%s6857_s5 + $0x4] sm:$0xf]  ;;  %v3757_v51 = vld [vmem:[%s6857_s5 + $0x8] sm:$0xf] }
 0x158   :  { %v588_v8 = vmax.f32 %v586_v53, %v587_v60  ;;  %v594_v9 = vrot.slane %v593_v61, 2  ;;  %1612 = vmatmul.bf16.gmra.mxu0 %v4649_v34  ;;  %v260_v44 = vmax.f32 %v220_v24, 0.0  ;;  %v503_v47 = vadd.f32 %v502_v0, %v4695_v12  ;;  %v4223_v0 = vld [vmem:[%s6857_s5 + $0x64] sm:$0xf] }
 0x159   :  { %v415_v13 = vpop.f32.mrf.mxu1  ;;  %1671 = vmatpush.bf16.msrb.mxu1 %v3818_v50  ;;  %v3802_v6 = vor.u32 %v4223_v0, %v3799_v1 }
 0x15a   :  { %v708_v15 = vpack.c.bf16 %v588_v8, %v588_v8  ;;  %v595_v16 = vmax.f32 %v593_v61, %v594_v9  ;;  %v416_v19 = vadd.f32 %v415_v13, %v4689_v5  ;;  %1760 = vmatpush.bf16.msrb.mxu2 %v3822_v56 }
 0x15c   :  { %v814_v29 = vunpack.c.l.b16 %v708_v15  ;;  %v596_v30 = vrot.slane %v595_v16, 1  ;;  %v598_v31 = vmax.f32 %v414_v18, %v416_v19  ;;  %v3783_v15 = vld [vmem:[%s6857_s5 + $0x50] sm:$0xf0] }
 0x15d   :  { %v221_v33 = vpop.f32.mrf.mxu0  ;;  %1672 = vmatpush.bf16.msrb.mxu1 %v3802_v6  ;;  %v3786_v19 = vor.u32 %v4219_v14, %v3783_v15 }
 0x15e   :  { %v4778_v37 = vsel %vm828_vm3, %v814_v29, %v812_v28  ;;  %v597_v38 = vmax.f32 %v595_v16, %v596_v30  ;;  %v222_v39 = vadd.f32 %v4531_v17, %v221_v33  ;;  %v3789_v16 = vld [vmem:[%s6857_s5 + $0x48] sm:$0xf]  ;;  %1761 = vmatpush.bf16.msrb.mxu2 %v3806_v11  ;;  %v4215_v28 = vld [vmem:[%s6857_s5 + $0x24] sm:$0xf]  ;;  %v3767_v29 = vld [vmem:[%s6857_s5 + $0x30] sm:$0xf0] }
 0x15f   :  { %v504_v48 = vpop.f32.mrf.mxu2  ;;  %v3790_v22 = vor.u32 %v4222_v20, %v3789_v16  ;;  %v3773_v30 = vld [vmem:[%s6857_s5 + $0x28] sm:$0xf]  ;;  %v3770_v32 = vor.u32 %v4215_v28, %v3767_v29  ;;  %v4218_v33 = vld [vmem:[%s6857_s5 + $0x34] sm:$0xf0] }
 0x160   :  { %v709_v52 = vpack.c.bf16 %v597_v38, %v597_v38  ;;  %v261_v53 = vmax.f32 %v222_v39, 0.0  ;;  %v505_v54 = vadd.f32 %v504_v48, %v4695_v12  ;;  %v3774_v38 = vor.u32 %v4218_v33, %v3773_v30 }
 0x161   :  { %v418_v59 = vpop.f32.mrf.mxu1  ;;  %1673 = vmatpush.bf16.msrb.mxu1 %v3786_v19 }
 0x162   :  { %v815_v60 = vunpack.c.l.b16 %v709_v52  ;;  %v4795_v61 = vpack.c.bf16 %v261_v53, %v260_v44  ;;  %v607_v62 = vmax.f32 %v503_v47, %v505_v54  ;;  %v419_v63 = vadd.f32 %v418_v59, %v4689_v5  ;;  %1762 = vmatpush.bf16.msrb.mxu2 %v3790_v22  ;;  %v3751_v44 = vld [vmem:[%s6857_s5 + $0x10] sm:$0xf0]  ;;  %v4214_v52 = vld [vmem:[%s6857_s5 + $0x14] sm:$0xf0] }
 0x163   :  { %v3754_v50 = vor.u32 %v4211_v43, %v3751_v44 }
 0x164   :  { %6920 = vst [vmem:[#allocation6_spill] sm:$0xff] %v4795_v61  ;;  %v4811_v8 = vsel %vm828_vm3, %v815_v60, %v813_v57  ;;  %v599_v9 = vmax.f32 %v598_v31, %v419_v63  ;;  %457 = vmatmul.bf16.gmra.mxu1 %v4795_v61  ;;  %546 = vmatmul.bf16.gmra.mxu2 %v4795_v61 }
 0x165   :  { %v224_v13 = vpop.f32.mrf.mxu0  ;;  %1674 = vmatpush.bf16.msrb.mxu1 %v3770_v32  ;;  %v3758_v57 = vor.u32 %v4214_v52, %v3757_v51 }
 0x166   :  { %v225_v31 = vadd.f32 %v4531_v17, %v224_v13  ;;  %1763 = vmatpush.bf16.msrb.mxu2 %v3774_v38 }
 0x167   :  { %v507_v18 = vpop.f32.mrf.mxu2 }
 0x168   :  { %v508_v21 = vadd.f32 %v507_v18, %v4695_v12  ;;  %1617 = vmatmul.bf16.gmra.mxu0 %v4668_v49  ;;  %v262_v47 = vmax.f32 %v225_v31, 0.0 }
 0x169   :  { %v420_v24 = vpop.f32.mrf.mxu1  ;;  %1675 = vmatpush.bf16.msrb.mxu1 %v3754_v50 }
 0x16a   :  { %v608_v26 = vmax.f32 %v607_v62, %v508_v21  ;;  %v421_v27 = vadd.f32 %v420_v24, %v4689_v5  ;;  %1764 = vmatpush.bf16.msrb.mxu2 %v3758_v57 }
 0x16c   :  { %v600_v36 = vmax.f32 %v599_v9, %v421_v27 }
 0x16d   :  { %v226_v39 = vpop.f32.mrf.mxu0 }
 0x16e   :  { %v601_v40 = vrot.slane %v600_v36, 4  ;;  %v227_v41 = vadd.f32 %v4531_v17, %v226_v39 }
 0x16f   :  { %v509_v48 = vpop.f32.mrf.mxu2 }
 0x170   :  { %v602_v53 = vmax.f32 %v600_v36, %v601_v40  ;;  %v263_v54 = vmax.f32 %v227_v41, 0.0  ;;  %v510_v56 = vadd.f32 %v509_v48, %v4695_v12 }
 0x171   :  { %v423_v59 = vpop.f32.mrf.mxu1 }
 0x172   :  { %v603_v60 = vrot.slane %v602_v53, 2  ;;  %v4857_v62 = vpack.c.bf16 %v263_v54, %v262_v47  ;;  %v609_v63 = vmax.f32 %v608_v26, %v510_v56  ;;  %v424_v18 = vadd.f32 %v423_v59, %v4689_v5 }
 0x174   :  { %6921 = vst [vmem:[#allocation7_spill] sm:$0xff] %v4857_v62  ;;  %v604_v0 = vmax.f32 %v602_v53, %v603_v60  ;;  %v610_v1 = vrot.slane %v609_v63, 4  ;;  %462 = vmatmul.bf16.gmra.mxu1 %v4857_v62  ;;  %551 = vmatmul.bf16.gmra.mxu2 %v4857_v62 }
 0x175   :  { %v229_v3 = vpop.f32.mrf.mxu0 }
 0x176   :  { %v605_v6 = vrot.slane %v604_v0, 1  ;;  %v611_v7 = vmax.f32 %v609_v63, %v610_v1  ;;  %v230_v20 = vadd.f32 %v4531_v17, %v229_v3 }
 0x177   :  { %v512_v9 = vpop.f32.mrf.mxu2 }
 0x178   :  { %v606_v11 = vmax.f32 %v604_v0, %v605_v6  ;;  %v612_v13 = vrot.slane %v611_v7, 2  ;;  %1622 = vmatmul.bf16.gmra.mxu0 %v4675_v58  ;;  %v264_v30 = vmax.f32 %v230_v20, 0.0  ;;  %v513_v33 = vadd.f32 %v512_v9, %v4695_v12 }
 0x179   :  { %v425_v14 = vpop.f32.mrf.mxu1 }
 0x17a   :  { %v710_v15 = vpack.c.bf16 %v606_v11, %v606_v11  ;;  %v613_v16 = vmax.f32 %v611_v7, %v612_v13  ;;  %v426_v19 = vadd.f32 %v425_v14, %v4689_v5 }
 0x17c   :  { %v816_v21 = vunpack.c.l.b16 %v710_v15  ;;  %v614_v22 = vrot.slane %v613_v16, 1  ;;  %v616_v24 = vmax.f32 %v424_v18, %v426_v19 }
 0x17d   :  { %v231_v26 = vpop.f32.mrf.mxu0 }
 0x17e   :  { %v831_v27 = vsel %vm830_vm4, %v816_v21, %v4778_v37  ;;  %v615_v28 = vmax.f32 %v613_v16, %v614_v22  ;;  %v232_v29 = vadd.f32 %v4531_v17, %v231_v26 }
 0x17f   :  { %v514_v31 = vpop.f32.mrf.mxu2 }
 0x180   :  { %v711_v32 = vpack.c.bf16 %v615_v28, %v615_v28  ;;  %v265_v36 = vmax.f32 %v232_v29, 0.0  ;;  %v515_v38 = vadd.f32 %v514_v31, %v4695_v12 }
 0x181   :  { %v428_v39 = vpop.f32.mrf.mxu1 }
 0x182   :  { %v817_v40 = vunpack.c.l.b16 %v711_v32  ;;  %v4870_v41 = vpack.c.bf16 %v265_v36, %v264_v30  ;;  %v625_v43 = vmax.f32 %v513_v33, %v515_v38  ;;  %v429_v44 = vadd.f32 %v428_v39, %v4689_v5 }
 0x184   :  { %6922 = vst [vmem:[#allocation8_spill] sm:$0xff] %v4870_v41  ;;  %v843_v37 = vsel %vm830_vm4, %v817_v40, %v4811_v8  ;;  %v617_v47 = vmax.f32 %v616_v24, %v429_v44  ;;  %467 = vmatmul.bf16.gmra.mxu1 %v4870_v41  ;;  %556 = vmatmul.bf16.gmra.mxu2 %v4870_v41 }
 0x187   :  { %v517_v17 = vpop.f32.mrf.mxu2 }
 0x188   :  { %v518_v48 = vadd.f32 %v517_v17, %v4695_v12  ;;  %1627 = vmatmul.bf16.gmra.mxu0 %v4682_v2 }
 0x189   :  { %v430_v50 = vpop.f32.mrf.mxu1 }
 0x18a   :  { %v626_v51 = vmax.f32 %v625_v43, %v518_v48  ;;  %v431_v52 = vadd.f32 %v430_v50, %v4689_v5 }
 0x18c   :  { %v618_v53 = vmax.f32 %v617_v47, %v431_v52 }
 0x18e   :  { %v619_v54 = vrot.slane %v618_v53, 4 }
 0x18f   :  { %v519_v56 = vpop.f32.mrf.mxu2 }
 0x190   :  { %v620_v57 = vmax.f32 %v618_v53, %v619_v54  ;;  %v520_v8 = vadd.f32 %v519_v56, %v4695_v12  ;;  %v4897_v53 = vpop.f32.mrf.mxu0 }
 0x191   :  { %v433_v59 = vpop.f32.mrf.mxu1 }
 0x192   :  { %v621_v60 = vrot.slane %v620_v57, 2  ;;  %v627_v63 = vmax.f32 %v626_v51, %v520_v8  ;;  %v434_v16 = vadd.f32 %v433_v59, %v4689_v5 }
 0x194   :  { %v622_v0 = vmax.f32 %v620_v57, %v621_v60  ;;  %v628_v1 = vrot.slane %v627_v63, 4  ;;  %1676 = vmatmul.bf16.vlgmr.msrb.gmra.mxu1 %v4542_v25  ;;  %1765 = vmatmul.bf16.vlgmr.msrb.gmra.mxu2 %v4542_v25 }
 0x196   :  { %v623_v3 = vrot.slane %v622_v0, 1  ;;  %v629_v6 = vmax.f32 %v627_v63, %v628_v1 }
 0x197   :  { %v522_v7 = vpop.f32.mrf.mxu2 }
 0x198   :  { %v624_v9 = vmax.f32 %v622_v0, %v623_v3  ;;  %v630_v11 = vrot.slane %v629_v6, 2  ;;  %1632 = vmatmul.bf16.gmra.mxu0 %v4700_v23  ;;  %v523_v29 = vadd.f32 %v522_v7, %v4695_v12 }
 0x199   :  { %v435_v13 = vpop.f32.mrf.mxu1 }
 0x19a   :  { %v712_v14 = vpack.c.bf16 %v624_v9, %v624_v9  ;;  %v631_v15 = vmax.f32 %v629_v6, %v630_v11  ;;  %v436_v18 = vadd.f32 %v435_v13, %v4689_v5  ;;  %v4904_v13 = vpop.f32.mrf.mxu0 }
 0x19c   :  { %v818_v19 = vunpack.c.l.b16 %v712_v14  ;;  %v632_v20 = vrot.slane %v631_v15, 1  ;;  %v634_v21 = vmax.f32 %v434_v16, %v436_v18 }
 0x19e   :  { %v833_v22 = vsel %vm832_vm5, %v818_v19, %v831_v27  ;;  %v633_v24 = vmax.f32 %v631_v15, %v632_v20 }
 0x19f   :  { %v524_v26 = vpop.f32.mrf.mxu2 }
 0x1a0   :  { %v713_v28 = vpack.c.bf16 %v633_v24, %v633_v24  ;;  %v525_v30 = vadd.f32 %v524_v26, %v4695_v12 }
 0x1a1   :  { %v438_v31 = vpop.f32.mrf.mxu1 }
 0x1a2   :  { %v819_v32 = vunpack.c.l.b16 %v713_v28  ;;  %v643_v33 = vmax.f32 %v523_v29, %v525_v30  ;;  %v439_v36 = vadd.f32 %v438_v31, %v4689_v5 }
 0x1a4   :  { %v844_v38 = vsel %vm832_vm5, %v819_v32, %v843_v37  ;;  %v635_v39 = vmax.f32 %v634_v21, %v439_v36  ;;  %1681 = vmatmul.bf16.gmra.mxu1 %v4555_v35  ;;  %1770 = vmatmul.bf16.gmra.mxu2 %v4555_v35 }
 0x1a7   :  { %v527_v27 = vpop.f32.mrf.mxu2 }
 0x1a8   :  { %v528_v40 = vadd.f32 %v527_v27, %v4695_v12  ;;  %1637 = vmatmul.bf16.gmra.mxu0 %v4711_v46  ;;  %v4923_v27 = vpop.f32.mrf.mxu0 }
 0x1a9   :  { %v440_v43 = vpop.f32.mrf.mxu1 }
 0x1aa   :  { %v644_v44 = vmax.f32 %v643_v33, %v528_v40  ;;  %v441_v47 = vadd.f32 %v440_v43, %v4689_v5  ;;  %v4177_v33 = vld [vmem:[%s6859_s6 + $0xec] sm:$0xf0] }
 0x1ac   :  { %v636_v17 = vmax.f32 %v635_v39, %v441_v47  ;;  %v4173_v47 = vld [vmem:[%s6859_s6 + $0xcc] sm:$0xf0] }
 0x1ae   :  { %v637_v48 = vrot.slane %v636_v17, 4 }
 0x1af   :  { %v529_v50 = vpop.f32.mrf.mxu2 }
 0x1b0   :  { %v638_v51 = vmax.f32 %v636_v17, %v637_v48  ;;  %v530_v37 = vadd.f32 %v529_v50, %v4695_v12 }
 0x1b1   :  { %v443_v52 = vpop.f32.mrf.mxu1 }
 0x1b2   :  { %v639_v54 = vrot.slane %v638_v51, 2  ;;  %v645_v56 = vmax.f32 %v644_v44, %v530_v37  ;;  %v444_v9 = vadd.f32 %v443_v52, %v4689_v5  ;;  %v3589_v44 = vld [vmem:[%s6859_s6 + $0xc0] sm:$0xf]  ;;  %v4169_v52 = vld [vmem:[%s6859_s6 + $0xac] sm:$0xf0] }
 0x1b3   :  { %v3573_v37 = vld [vmem:[%s6859_s6 + $0xa0] sm:$0xf] }
 0x1b4   :  { %v640_v57 = vmax.f32 %v638_v51, %v639_v54  ;;  %v646_v8 = vrot.slane %v645_v56, 4  ;;  %1686 = vmatmul.bf16.gmra.mxu1 %v4568_v45  ;;  %1775 = vmatmul.bf16.gmra.mxu2 %v4568_v45  ;;  %v3574_v54 = vor.u32 %v4169_v52, %v3573_v37  ;;  %v4149_v37 = vld [vmem:[%s6859_s6 + $0xc] sm:$0xf0] }
 0x1b6   :  { %v641_v59 = vrot.slane %v640_v57, 1  ;;  %v647_v60 = vmax.f32 %v645_v56, %v646_v8  ;;  %v4940_v8 = vpop.f32.mrf.mxu0 }
 0x1b7   :  { %v532_v63 = vpop.f32.mrf.mxu2 }
 0x1b8   :  { %v642_v0 = vmax.f32 %v640_v57, %v641_v59  ;;  %v648_v1 = vrot.slane %v647_v60, 2  ;;  %1642 = vmatmul.bf16.gmra.mxu0 %v4722_v4  ;;  %v533_v24 = vadd.f32 %v532_v63, %v4695_v12  ;;  %v3557_v63 = vld [vmem:[%s6859_s6 + $0x80] sm:$0xf] }
 0x1b9   :  { %v445_v3 = vpop.f32.mrf.mxu1 }
 0x1ba   :  { %v714_v6 = vpack.c.bf16 %v642_v0, %v642_v0  ;;  %v649_v7 = vmax.f32 %v647_v60, %v648_v1  ;;  %v446_v11 = vadd.f32 %v445_v3, %v4689_v5  ;;  %v4165_v0 = vld [vmem:[%s6859_s6 + $0x8c] sm:$0xf0] }
 0x1bb   :  { %v3558_v3 = vor.u32 %v4165_v0, %v3557_v63  ;;  %v3717_v0 = vld [vmem:[%s6859_s6 + $0x1c0] sm:$0xf] }
 0x1bc   :  { %v820_v14 = vunpack.c.l.b16 %v714_v6  ;;  %v650_v15 = vrot.slane %v649_v7, 1  ;;  %v652_v16 = vmax.f32 %v444_v9, %v446_v11 }
 0x1be   :  { %v651_v18 = vmax.f32 %v649_v7, %v650_v15  ;;  %v4907_v19 = vsel %vm834_vm6, %v820_v14, %v833_v22  ;;  %v3605_v22 = vld [vmem:[%s6859_s6 + $0xe0] sm:$0xf]  ;;  %v4161_v15 = vld [vmem:[%s6859_s6 + $0x6c] sm:$0xf0] }
 0x1bf   :  { %v534_v20 = vpop.f32.mrf.mxu2  ;;  %v3606_v39 = vor.u32 %v4177_v33, %v3605_v22  ;;  %v3541_v14 = vld [vmem:[%s6859_s6 + $0x60] sm:$0xf] }
 0x1c0   :  { %v715_v21 = vpack.c.bf16 %v651_v18, %v651_v18  ;;  %v535_v26 = vadd.f32 %v534_v20, %v4695_v12 }
 0x1c1   :  { %v448_v28 = vpop.f32.mrf.mxu1  ;;  %1173 = vmatpush.bf16.msra.mxu3 %v3606_v39 }
 0x1c2   :  { %v821_v29 = vunpack.c.l.b16 %v715_v21  ;;  %v661_v30 = vmax.f32 %v533_v24, %v535_v26  ;;  %v449_v31 = vadd.f32 %v448_v28, %v4689_v5  ;;  %v3525_v28 = vld [vmem:[%s6859_s6 + $0x40] sm:$0xf] }
 0x1c4   :  { %v653_v32 = vmax.f32 %v652_v16, %v449_v31  ;;  %1691 = vmatmul.bf16.gmra.mxu1 %v4581_v55  ;;  %1780 = vmatmul.bf16.gmra.mxu2 %v4581_v55  ;;  %v4921_v36 = vsel %vm834_vm6, %v821_v29, %v844_v38  ;;  %v3590_v38 = vor.u32 %v4173_v47, %v3589_v44  ;;  %v4157_v29 = vld [vmem:[%s6859_s6 + $0x4c] sm:$0xf0] }
 0x1c5   :  { %v3542_v16 = vor.u32 %v4161_v15, %v3541_v14  ;;  %v3526_v31 = vor.u32 %v4157_v29, %v3525_v28  ;;  %v4153_v44 = vld [vmem:[%s6859_s6 + $0x2c] sm:$0xf0]  ;;  %v3685_v15 = vld [vmem:[%s6859_s6 + $0x180] sm:$0xf] }
 0x1c6   :  { %1174 = vmatpush.bf16.msra.mxu3 %v3590_v38  ;;  %v3669_v29 = vld [vmem:[%s6859_s6 + $0x160] sm:$0xf] }
 0x1c7   :  { %v537_v40 = vpop.f32.mrf.mxu2 }
 0x1c8   :  { %v538_v43 = vadd.f32 %v537_v40, %v4695_v12  ;;  %1647 = vmatmul.bf16.gmra.mxu0 %v4733_v42 }
 0x1c9   :  { %v450_v17 = vpop.f32.mrf.mxu1 }
 0x1ca   :  { %v662_v48 = vmax.f32 %v661_v30, %v538_v43  ;;  %v451_v50 = vadd.f32 %v450_v17, %v4689_v5  ;;  %1175 = vmatpush.bf16.msra.mxu3 %v3574_v54  ;;  %v3509_v43 = vld [vmem:[%s6859_s6 + $0x20] sm:$0xf] }
 0x1cb   :  { %v3510_v47 = vor.u32 %v4153_v44, %v3509_v43  ;;  %v3653_v43 = vld [vmem:[%s6859_s6 + $0x140] sm:$0xf]  ;;  %v4189_v44 = vld [vmem:[%s6859_s6 + $0x14c] sm:$0xf0] }
 0x1cc   :  { %v654_v51 = vmax.f32 %v653_v32, %v451_v50  ;;  %v4968_v32 = vpop.f32.mrf.mxu0 }
 0x1ce   :  { %v655_v56 = vrot.slane %v654_v51, 4  ;;  %1176 = vmatpush.bf16.msra.mxu3 %v3558_v3  ;;  %v4205_v3 = vld [vmem:[%s6859_s6 + $0x1cc] sm:$0xf0] }
 0x1cf   :  { %v539_v57 = vpop.f32.mrf.mxu2 }
 0x1d0   :  { %v656_v59 = vmax.f32 %v654_v51, %v655_v56  ;;  %v540_v60 = vadd.f32 %v539_v57, %v4695_v12  ;;  %v3493_v51 = vld [vmem:[%s6859_s6] sm:$0xf] }
 0x1d1   :  { %v4949_v1 = vpop.f32.mrf.mxu1  ;;  %v3494_v54 = vor.u32 %v4149_v37, %v3493_v51  ;;  %v3733_v56 = vld [vmem:[%s6859_s6 + $0x1e0] sm:$0xf] }
 0x1d2   :  { %v657_v6 = vrot.slane %v656_v59, 2  ;;  %v663_v7 = vmax.f32 %v662_v48, %v540_v60  ;;  %1177 = vmatpush.bf16.msra.mxu3 %v3542_v16  ;;  %v4197_v16 = vld [vmem:[%s6859_s6 + $0x18c] sm:$0xf0] }
 0x1d4   :  { %v658_v9 = vmax.f32 %v656_v59, %v657_v6  ;;  %v664_v11 = vrot.slane %v663_v7, 4  ;;  %1696 = vmatmul.bf16.gmra.mxu1 %v4612_v10  ;;  %1785 = vmatmul.bf16.gmra.mxu2 %v4612_v10  ;;  %v4994_v60 = vpop.f32.mrf.mxu0  ;;  %v3718_v6 = vor.u32 %v4205_v3, %v3717_v0 }
 0x1d6   :  { %v659_v18 = vrot.slane %v658_v9, 1  ;;  %v665_v20 = vmax.f32 %v663_v7, %v664_v11  ;;  %1178 = vmatpush.bf16.msra.mxu3 %v3526_v31  ;;  %v4201_v11 = vld [vmem:[%s6859_s6 + $0x1ac] sm:$0xf0] }
 0x1d7   :  { %v4959_v21 = vpop.f32.mrf.mxu2  ;;  %v4193_v31 = vld [vmem:[%s6859_s6 + $0x16c] sm:$0xf0] }
 0x1d8   :  { %v660_v24 = vmax.f32 %v658_v9, %v659_v18  ;;  %v666_v26 = vrot.slane %v665_v20, 2  ;;  %1652 = vmatmul.bf16.gmra.mxu0 %v4795_v61 }
 0x1d9   :  { %v455_v30 = vpop.f32.mrf.mxu1 }
 0x1da   :  { %v716_v22 = vpack.c.bf16 %v660_v24, %v660_v24  ;;  %v667_v33 = vmax.f32 %v665_v20, %v666_v26  ;;  %1179 = vmatpush.bf16.msra.mxu3 %v3510_v47  ;;  %v3686_v20 = vor.u32 %v4197_v16, %v3685_v15  ;;  %v456_v26 = vadd.f32 %v455_v30, %v4689_v5 }
 0x1db   :  { %v3654_v47 = vor.u32 %v4189_v44, %v3653_v43 }
 0x1dc   :  { %v822_v39 = vunpack.c.l.b16 %v716_v22  ;;  %v668_v40 = vrot.slane %v667_v33, 1  ;;  %v5021_v18 = vpop.f32.mrf.mxu0  ;;  %v3670_v22 = vor.u32 %v4193_v31, %v3669_v29 }
 0x1de   :  { %v669_v17 = vmax.f32 %v667_v33, %v668_v40  ;;  %v4978_v38 = vsel %vm836_vm7, %v822_v39, %v4907_v19  ;;  %v4209_v19 = vld [vmem:[%s6859_s6 + $0x1ec] sm:$0xf0]  ;;  %1180 = vmatpush.bf16.msra.mxu3 %v3494_v54  ;;  %v454_v33 = vadd.f32 %v4949_v1, %v4689_v5 }
 0x1df   :  { %v4980_v48 = vpop.f32.mrf.mxu2  ;;  %v3734_v59 = vor.u32 %v4209_v19, %v3733_v56  ;;  %v4185_v54 = vld [vmem:[%s6859_s6 + $0x12c] sm:$0xf0] }
 0x1e0   :  { %v717_v50 = vpack.c.bf16 %v669_v17, %v669_v17  ;;  %v670_v30 = vmax.f32 %v454_v33, %v456_v26  ;;  %v545_v3 = vadd.f32 %v4980_v48, %v4695_v12 }
 0x1e1   :  { %v458_v52 = vpop.f32.mrf.mxu1 }
 0x1e2   :  { %v823_v57 = vunpack.c.l.b16 %v717_v50  ;;  %1186 = vmatpush.bf16.msrb.mxu3 %v3734_v59  ;;  %v459_v39 = vadd.f32 %v458_v52, %v4689_v5  ;;  %v3637_v52 = vld [vmem:[%s6859_s6 + $0x120] sm:$0xf]  ;;  %v4181_v59 = vld [vmem:[%s6859_s6 + $0x10c] sm:$0xf0] }
 0x1e3   :  { %v3638_v56 = vor.u32 %v4185_v54, %v3637_v52 }
 0x1e4   :  { %1701 = vmatmul.bf16.gmra.mxu1 %v4649_v34  ;;  %1790 = vmatmul.bf16.gmra.mxu2 %v4649_v34  ;;  %v5000_v63 = vsel %vm836_vm7, %v823_v57, %v4921_v36  ;;  %v3701_v36 = vld [vmem:[%s6859_s6 + $0x1a0] sm:$0xf]  ;;  %v671_v1 = vmax.f32 %v670_v30, %v459_v39  ;;  %v5042_v50 = vpop.f32.mrf.mxu0 }
 0x1e5   :  { %v3702_v14 = vor.u32 %v4201_v11, %v3701_v36  ;;  %v3621_v57 = vld [vmem:[%s6859_s6 + $0x100] sm:$0xf] }
 0x1e6   :  { %1187 = vmatpush.bf16.msrb.mxu3 %v3718_v6  ;;  %v3622_v0 = vor.u32 %v4181_v59, %v3621_v57 }
 0x1e7   :  { %v547_v7 = vpop.f32.mrf.mxu2 }
 0x1e8   :  { %1657 = vmatmul.bf16.gmra.mxu0 %v4857_v62  ;;  %v548_v36 = vadd.f32 %v547_v7, %v4695_v12 }
 0x1e9   :  { %v460_v9 = vpop.f32.mrf.mxu1 }
 0x1ea   :  { %1188 = vmatpush.bf16.msrb.mxu3 %v3702_v14  ;;  %v461_v40 = vadd.f32 %v460_v9, %v4689_v5  ;;  %v543_v9 = vadd.f32 %v4959_v21, %v4695_v12 }
 0x1ec   :  { %v672_v51 = vmax.f32 %v671_v1, %v461_v40  ;;  %v679_v15 = vmax.f32 %v543_v9, %v545_v3 }
 0x1ee   :  { %1189 = vmatpush.bf16.msrb.mxu3 %v3686_v20  ;;  %v673_v19 = vrot.slane %v672_v51, 4  ;;  %v680_v26 = vmax.f32 %v679_v15, %v548_v36 }
 0x1ef   :  { %v549_v24 = vpop.f32.mrf.mxu2 }
 0x1f0   :  { %v674_v11 = vmax.f32 %v672_v51, %v673_v19  ;;  %v550_v16 = vadd.f32 %v549_v24, %v4695_v12 }
 0x1f1   :  { %v463_v28 = vpop.f32.mrf.mxu1 }
 0x1f2   :  { %1190 = vmatpush.bf16.msrb.mxu3 %v3670_v22  ;;  %v675_v48 = vrot.slane %v674_v11, 2  ;;  %v464_v29 = vadd.f32 %v463_v28, %v4689_v5  ;;  %v681_v31 = vmax.f32 %v680_v26, %v550_v16 }
 0x1f4   :  { %1706 = vmatmul.bf16.gmra.mxu1 %v4668_v49  ;;  %1795 = vmatmul.bf16.gmra.mxu2 %v4668_v49  ;;  %v676_v33 = vmax.f32 %v674_v11, %v675_v48  ;;  %v682_v43 = vrot.slane %v681_v31, 4 }
 0x1f6   :  { %1191 = vmatpush.bf16.msrb.mxu3 %v3654_v47  ;;  %v677_v51 = vrot.slane %v676_v33, 1  ;;  %v683_v52 = vmax.f32 %v681_v31, %v682_v43  ;;  %v3591_v43 = vld [vmem:[%s6859_s6 + $0xd0] sm:$0xf0] }
 0x1f7   :  { %v552_v17 = vpop.f32.mrf.mxu2 }
 0x1f8   :  { %1662 = vmatmul.bf16.gmra.mxu0 %v4870_v41  ;;  %v553_v44 = vadd.f32 %v552_v17, %v4695_v12  ;;  %v678_v59 = vmax.f32 %v676_v33, %v677_v51  ;;  %v3575_v51 = vld [vmem:[%s6859_s6 + $0xb0] sm:$0xf0] }
 0x1f9   :  { %v465_v37 = vpop.f32.mrf.mxu1 }
 0x1fa   :  { %1192 = vmatpush.bf16.msrb.mxu3 %v3638_v56  ;;  %v466_v20 = vadd.f32 %v465_v37, %v4689_v5  ;;  %v718_v17 = vpack.c.bf16 %v678_v59, %v678_v59 }
 0x1fc   :  { %v688_v22 = vmax.f32 %v464_v29, %v466_v20  ;;  %v824_v20 = vunpack.c.l.b16 %v718_v17  ;;  %v4175_v29 = vld [vmem:[%s6859_s6 + $0xe4] sm:$0xf] }
 0x1fd   :  { %v4155_v17 = vld [vmem:[%s6859_s6 + $0x44] sm:$0xf] }
 0x1fe   :  { %1193 = vmatpush.bf16.msrb.mxu3 %v3622_v0 }
 0x1ff   :  { %v554_v6 = vpop.f32.mrf.mxu2 }
 0x200   :  { %v555_v30 = vadd.f32 %v554_v6, %v4695_v12  ;;  %v684_v6 = vrot.slane %v683_v52, 2 }
 0x201   :  { %v468_v14 = vpop.f32.mrf.mxu1 }
 0x202   :  { %v469_v21 = vadd.f32 %v468_v14, %v4689_v5  ;;  %v697_v28 = vmax.f32 %v553_v44, %v555_v30  ;;  %v685_v14 = vmax.f32 %v683_v52, %v684_v6 }
 0x204   :  { %1711 = vmatmul.bf16.gmra.mxu1 %v4675_v58  ;;  %1800 = vmatmul.bf16.gmra.mxu2 %v4675_v58  ;;  %v689_v24 = vmax.f32 %v688_v22, %v469_v21  ;;  %v3607_v21 = vld [vmem:[%s6859_s6 + $0xf0] sm:$0xf0]  ;;  %v839_v22 = vsel %vm838_vm8, %v824_v20, %v4978_v38 }
 0x205   :  { %v3495_v20 = vld [vmem:[%s6859_s6 + $0x10] sm:$0xf0] }
 0x207   :  { %v557_v7 = vpop.f32.mrf.mxu2 }
 0x208   :  { %v558_v47 = vadd.f32 %v557_v7, %v4695_v12 }
 0x209   :  { %v470_v39 = vpop.f32.mrf.mxu1 }
 0x20a   :  { %v471_v40 = vadd.f32 %v470_v39, %v4689_v5  ;;  %v698_v56 = vmax.f32 %v697_v28, %v558_v47  ;;  %v3610_v39 = vor.u32 %v4175_v29, %v3607_v21  ;;  %v4203_v21 = vld [vmem:[%s6859_s6 + $0x1c4] sm:$0xf] }
 0x20c   :  { %v690_v1 = vmax.f32 %v689_v24, %v471_v40  ;;  %v4171_v40 = vld [vmem:[%s6859_s6 + $0xc4] sm:$0xf] }
 0x20d   :  { %v3594_v47 = vor.u32 %v4171_v40, %v3591_v43  ;;  %v4195_v43 = vld [vmem:[%s6859_s6 + $0x184] sm:$0xf] }
 0x20e   :  { %v691_v37 = vrot.slane %v690_v1, 4 }
 0x20f   :  { %v559_v54 = vpop.f32.mrf.mxu2 }
 0x210   :  { %v692_v19 = vmax.f32 %v690_v1, %v691_v37  ;;  %v560_v57 = vadd.f32 %v559_v54, %v4695_v12  ;;  %v686_v12 = vrot.slane %v685_v14, 1  ;;  %v4167_v1 = vld [vmem:[%s6859_s6 + $0xa4] sm:$0xf] }
 0x211   :  { %v3578_v37 = vor.u32 %v4167_v1, %v3575_v51  ;;  %v4163_v54 = vld [vmem:[%s6859_s6 + $0x84] sm:$0xf]  ;;  %v3671_v51 = vld [vmem:[%s6859_s6 + $0x170] sm:$0xf0] }
 0x212   :  { %v693_v0 = vrot.slane %v692_v19, 2  ;;  %v699_v3 = vmax.f32 %v698_v56, %v560_v57  ;;  %v687_v30 = vmax.f32 %v685_v14, %v686_v12  ;;  %v3559_v56 = vld [vmem:[%s6859_s6 + $0x90] sm:$0xf0]  ;;  %v4191_v1 = vld [vmem:[%s6859_s6 + $0x164] sm:$0xf] }
 0x213   :  { %v3562_v57 = vor.u32 %v4163_v54, %v3559_v56  ;;  %v3511_v14 = vld [vmem:[%s6859_s6 + $0x30] sm:$0xf0] }
 0x214   :  { %v694_v5 = vmax.f32 %v692_v19, %v693_v0  ;;  %v700_v9 = vrot.slane %v699_v3, 4  ;;  %1716 = vmatmul.bf16.gmra.mxu1 %v4682_v2  ;;  %1805 = vmatmul.bf16.gmra.mxu2 %v4682_v2  ;;  %v719_v38 = vpack.c.bf16 %v687_v30, %v687_v30  ;;  %v4159_v0 = vld [vmem:[%s6859_s6 + $0x64] sm:$0xf]  ;;  %v3703_v30 = vld [vmem:[%s6859_s6 + $0x1b0] sm:$0xf0] }
 0x215   :  { %v3655_v54 = vld [vmem:[%s6859_s6 + $0x150] sm:$0xf0] }
 0x216   :  { %v695_v36 = vrot.slane %v694_v5, 1  ;;  %v701_v11 = vmax.f32 %v699_v3, %v700_v9  ;;  %v825_v52 = vunpack.c.l.b16 %v719_v38  ;;  %v3543_v3 = vld [vmem:[%s6859_s6 + $0x70] sm:$0xf0] }
 0x218   :  { %v696_v15 = vmax.f32 %v694_v5, %v695_v36  ;;  %v702_v16 = vrot.slane %v701_v11, 2  ;;  %v847_v59 = vsel %vm838_vm8, %v825_v52, %v5000_v63  ;;  %v3546_v5 = vor.u32 %v4159_v0, %v3543_v3  ;;  %v3527_v63 = vld [vmem:[%s6859_s6 + $0x50] sm:$0xf0]  ;;  %v4187_v52 = vld [vmem:[%s6859_s6 + $0x144] sm:$0xf] }
 0x219   :  { %v3530_v36 = vor.u32 %v4155_v17, %v3527_v63  ;;  %v3658_v56 = vor.u32 %v4187_v52, %v3655_v54  ;;  %v3613_v17 = vld [vmem:[%s6859_s6 + $0xe8] sm:$0xf]  ;;  %v4178_v63 = vld [vmem:[%s6859_s6 + $0xf4] sm:$0xf0] }
 0x21a   :  { %v720_v26 = vpack.c.bf16 %v696_v15, %v696_v15  ;;  %v703_v48 = vmax.f32 %v701_v11, %v702_v16  ;;  %v4151_v11 = vld [vmem:[%s6859_s6 + $0x24] sm:$0xf]  ;;  %v4154_v52 = vld [vmem:[%s6859_s6 + $0x34] sm:$0xf0] }
 0x21b   :  { %v3514_v15 = vor.u32 %v4151_v11, %v3511_v14  ;;  %v4147_v16 = vld [vmem:[%s6859_s6 + $0x4] sm:$0xf]  ;;  %v3614_v11 = vor.u32 %v4178_v63, %v3613_v17  ;;  %v3597_v14 = vld [vmem:[%s6859_s6 + $0xc8] sm:$0xf] }
 0x21c   :  { %v826_v31 = vunpack.c.l.b16 %v720_v26  ;;  %v704_v7 = vrot.slane %v703_v48, 1  ;;  %v4207_v26 = vld [vmem:[%s6859_s6 + $0x1e4] sm:$0xf]  ;;  %v3498_v12 = vor.u32 %v4147_v16, %v3495_v20 }
 0x21e   :  { %v841_v33 = vsel %vm840_vm9, %v826_v31, %v839_v22  ;;  %v705_v44 = vmax.f32 %v703_v48, %v704_v7  ;;  %v3735_v48 = vld [vmem:[%s6859_s6 + $0x1f0] sm:$0xf0]  ;;  %v5151_v7 = vpop.f32.mrf.mxu1  ;;  %v5153_v22 = vpop.f32.mrf.mxu2 }
 0x21f   :  { %v5084_v24 = vpack.c.b16 %v841_v33, %v841_v33  ;;  %v3738_v29 = vor.u32 %v4207_v26, %v3735_v48  ;;  %v3719_v31 = vld [vmem:[%s6859_s6 + $0x1d0] sm:$0xf0]  ;;  %v3581_v48 = vld [vmem:[%s6859_s6 + $0xa8] sm:$0xf] }
 0x220   :  { %v721_v28 = vpack.c.bf16 %v705_v44, %v705_v44  ;;  %v3722_v33 = vor.u32 %v4203_v21, %v3719_v31  ;;  %v3687_v44 = vld [vmem:[%s6859_s6 + $0x190] sm:$0xf0]  ;;  %v3565_v21 = vld [vmem:[%s6859_s6 + $0x88] sm:$0xf]  ;;  %v4166_v31 = vld [vmem:[%s6859_s6 + $0x94] sm:$0xf0] }
 0x221   :  { %1181 = vmatmul.bf16.vlgmr.msra.gmra.mxu3 %v5084_v24 }
 0x222   :  { %1199 = vmatpush.bf16.msra.mxu3 %v3610_v39  ;;  %v827_v19 = vunpack.c.l.b16 %v721_v28  ;;  %v4199_v39 = vld [vmem:[%s6859_s6 + $0x1a4] sm:$0xf] }
 0x223   :  { %v3706_v40 = vor.u32 %v4199_v39, %v3703_v30  ;;  %v3549_v39 = vld [vmem:[%s6859_s6 + $0x68] sm:$0xf]  ;;  %v4162_v30 = vld [vmem:[%s6859_s6 + $0x74] sm:$0xf0] }
 0x224   :  { %1721 = vmatmul.bf16.gmra.mxu1 %v4700_v23  ;;  %1810 = vmatmul.bf16.gmra.mxu2 %v4700_v23  ;;  %v848_v6 = vsel %vm840_vm9, %v827_v19, %v847_v59  ;;  %v4183_v19 = vld [vmem:[%s6859_s6 + $0x124] sm:$0xf]  ;;  %v4053_v23 = vld [vmem:[%s6861_s8 + $0x160] sm:$0xf] }
 0x225   :  { %v5116_v9 = vpack.c.b16 %v848_v6, %v848_v6  ;;  %v4179_v6 = vld [vmem:[%s6859_s6 + $0x104] sm:$0xf] }
 0x226   :  { %1200 = vmatpush.bf16.msra.mxu3 %v3594_v47  ;;  %v3690_v47 = vor.u32 %v4195_v43, %v3687_v44  ;;  %v5170_v38 = vpop.f32.mrf.mxu1  ;;  %v5178_v28 = vpop.f32.mrf.mxu2  ;;  %v3550_v44 = vor.u32 %v4162_v30, %v3549_v39  ;;  %v3677_v39 = vld [vmem:[%s6859_s6 + $0x168] sm:$0xf]  ;;  %v4194_v30 = vld [vmem:[%s6859_s6 + $0x174] sm:$0xf0] }
 0x22a   :  { %1201 = vmatpush.bf16.msra.mxu3 %v3578_v37  ;;  %v3674_v37 = vor.u32 %v4191_v1, %v3671_v51  ;;  %v4158_v1 = vld [vmem:[%s6859_s6 + $0x54] sm:$0xf0] }
 0x22e   :  { %1202 = vmatpush.bf16.msra.mxu3 %v3562_v57  ;;  %v3639_v57 = vld [vmem:[%s6859_s6 + $0x130] sm:$0xf0]  ;;  %v5192_v59 = vpop.f32.mrf.mxu1  ;;  %v5194_v0 = vpop.f32.mrf.mxu2 }
 0x22f   :  { %v3642_v3 = vor.u32 %v4183_v19, %v3639_v57  ;;  %v3501_v57 = vld [vmem:[%s6859_s6 + $0x8] sm:$0xf] }
 0x231   :  { %1194 = vmatmul.bf16.vlgmr.msrb.gmra.mxu3 %v5116_v9 }
 0x232   :  { %1203 = vmatpush.bf16.msra.mxu3 %v3546_v5  ;;  %v3623_v5 = vld [vmem:[%s6859_s6 + $0x110] sm:$0xf0] }
 0x234   :  { %1726 = vmatmul.bf16.gmra.mxu1 %v4711_v46  ;;  %1815 = vmatmul.bf16.gmra.mxu2 %v4711_v46 }
 0x236   :  { %1204 = vmatpush.bf16.msra.mxu3 %v3530_v36  ;;  %v3626_v36 = vor.u32 %v4179_v6, %v3623_v5  ;;  %v5216_v16 = vpop.f32.mrf.mxu1  ;;  %v5218_v26 = vpop.f32.mrf.mxu2  ;;  %v3741_v6 = vld [vmem:[%s6859_s6 + $0x1e8] sm:$0xf]  ;;  %v4210_v5 = vld [vmem:[%s6859_s6 + $0x1f4] sm:$0xf0] }
 0x237   :  { %v3742_v63 = vor.u32 %v4210_v5, %v3741_v6  ;;  %v3629_v6 = vld [vmem:[%s6859_s6 + $0x108] sm:$0xf]  ;;  %v4182_v5 = vld [vmem:[%s6859_s6 + $0x114] sm:$0xf0] }
 0x23a   :  { %1205 = vmatpush.bf16.msra.mxu3 %v3514_v15  ;;  %v4174_v15 = vld [vmem:[%s6859_s6 + $0xd4] sm:$0xf0] }
 0x23b   :  { %v3598_v20 = vor.u32 %v4174_v15, %v3597_v14 }
 0x23e   :  { %1206 = vmatpush.bf16.msra.mxu3 %v3498_v12  ;;  %v4170_v12 = vld [vmem:[%s6859_s6 + $0xb4] sm:$0xf0]  ;;  %v5243_v43 = vpop.f32.mrf.mxu2 }
 0x241   :  { %1207 = vmatmul.bf16.vlgmr.msra.gmra.mxu3 %v5084_v24 }
 0x242   :  { %1212 = vmatpush.bf16.msrb.mxu3 %v3738_v29  ;;  %v3582_v29 = vor.u32 %v4170_v12, %v3581_v48  ;;  %v4202_v48 = vld [vmem:[%s6859_s6 + $0x1b4] sm:$0xf0] }
 0x244   :  { %1731 = vmatmul.bf16.gmra.mxu1 %v4722_v4  ;;  %1820 = vmatmul.bf16.gmra.mxu2 %v4722_v4 }
 0x246   :  { %1213 = vmatpush.bf16.msrb.mxu3 %v3722_v33  ;;  %v3566_v33 = vor.u32 %v4166_v31, %v3565_v21  ;;  %v5259_v19 = vpop.f32.mrf.mxu2  ;;  %v3693_v21 = vld [vmem:[%s6859_s6 + $0x188] sm:$0xf]  ;;  %v4198_v31 = vld [vmem:[%s6859_s6 + $0x194] sm:$0xf0] }
 0x24a   :  { %1214 = vmatpush.bf16.msrb.mxu3 %v3706_v40  ;;  %v5241_v40 = vpop.f32.mrf.mxu1 }
 0x24e   :  { %1215 = vmatpush.bf16.msrb.mxu3 %v3690_v47  ;;  %v3533_v47 = vld [vmem:[%s6859_s6 + $0x48] sm:$0xf]  ;;  %v5289_v12 = vpop.f32.mrf.mxu2 }
 0x24f   :  { %v3534_v51 = vor.u32 %v4158_v1, %v3533_v47  ;;  %v3678_v1 = vor.u32 %v4194_v30, %v3677_v39  ;;  %v3567_v39 = vld [vmem:[%s6859_s6 + $0x98] sm:$0xf0] }
 0x252   :  { %1216 = vmatpush.bf16.msrb.mxu3 %v3674_v37  ;;  %v3517_v37 = vld [vmem:[%s6859_s6 + $0x28] sm:$0xf]  ;;  %v5257_v54 = vpop.f32.mrf.mxu1 }
 0x254   :  { %1736 = vmatmul.bf16.gmra.mxu1 %v4733_v42  ;;  %1825 = vmatmul.bf16.gmra.mxu2 %v4733_v42 }
 0x256   :  { %1217 = vmatpush.bf16.msrb.mxu3 %v3658_v56  ;;  %v3518_v56 = vor.u32 %v4154_v52, %v3517_v37  ;;  %v5307_v47 = vpop.f32.mrf.mxu2  ;;  %v4190_v37 = vld [vmem:[%s6859_s6 + $0x154] sm:$0xf0] }
 0x25a   :  { %1218 = vmatpush.bf16.msrb.mxu3 %v3642_v3  ;;  %v4150_v3 = vld [vmem:[%s6859_s6 + $0x14] sm:$0xf0]  ;;  %v5281_v15 = vpop.f32.mrf.mxu1 }
 0x25b   :  { %v3502_v17 = vor.u32 %v4150_v3, %v3501_v57  ;;  %v4186_v57 = vld [vmem:[%s6859_s6 + $0x134] sm:$0xf0] }
 0x25e   :  { %1219 = vmatpush.bf16.msrb.mxu3 %v3626_v36  ;;  %v3725_v36 = vld [vmem:[%s6859_s6 + $0x1c8] sm:$0xf] }
 0x261   :  { %1220 = vmatmul.bf16.vlgmr.msrb.gmra.mxu3 %v5116_v9 }
 0x262   :  { %1225 = vmatpush.bf16.msra.mxu3 %v3614_v11  ;;  %v4206_v11 = vld [vmem:[%s6859_s6 + $0x1d4] sm:$0xf0] }
 0x263   :  { %v3726_v14 = vor.u32 %v4206_v11, %v3725_v36  ;;  %v3630_v36 = vor.u32 %v4182_v5, %v3629_v6  ;;  %v4152_v6 = vld [vmem:[%s6859_s6 + $0x2c] sm:$0xf]  ;;  %v3519_v5 = vld [vmem:[%s6859_s6 + $0x38] sm:$0xf0] }
 0x264   :  { %1741 = vmatmul.bf16.gmra.mxu1 %v4795_v61  ;;  %1830 = vmatmul.bf16.gmra.mxu2 %v4795_v61 }
 0x266   :  { %1226 = vmatpush.bf16.msra.mxu3 %v3598_v20  ;;  %v3709_v20 = vld [vmem:[%s6859_s6 + $0x1a8] sm:$0xf] }
 0x26a   :  { %1227 = vmatpush.bf16.msra.mxu3 %v3582_v29  ;;  %v3710_v29 = vor.u32 %v4202_v48, %v3709_v20  ;;  %v3599_v20 = vld [vmem:[%s6859_s6 + $0xd8] sm:$0xf0] }
 0x26e   :  { %1228 = vmatpush.bf16.msra.mxu3 %v3566_v33  ;;  %v3694_v33 = vor.u32 %v4198_v31, %v3693_v21  ;;  %v3583_v21 = vld [vmem:[%s6859_s6 + $0xb8] sm:$0xf0] }
 0x272   :  { %1229 = vmatpush.bf16.msra.mxu3 %v3550_v44  ;;  %v5304_v44 = vpop.f32.mrf.mxu1 }
 0x274   :  { %1746 = vmatmul.bf16.gmra.mxu1 %v4857_v62  ;;  %1835 = vmatmul.bf16.gmra.mxu2 %v4857_v62 }
 0x276   :  { %1230 = vmatpush.bf16.msra.mxu3 %v3534_v51  ;;  %v3661_v51 = vld [vmem:[%s6859_s6 + $0x148] sm:$0xf] }
 0x277   :  { %v3662_v52 = vor.u32 %v4190_v37, %v3661_v51  ;;  %v3551_v51 = vld [vmem:[%s6859_s6 + $0x78] sm:$0xf0] }
 0x27a   :  { %1231 = vmatpush.bf16.msra.mxu3 %v3518_v56  ;;  %v3645_v56 = vld [vmem:[%s6859_s6 + $0x128] sm:$0xf] }
 0x27b   :  { %v3646_v3 = vor.u32 %v4186_v57, %v3645_v56  ;;  %v3535_v56 = vld [vmem:[%s6859_s6 + $0x58] sm:$0xf0] }
 0x27e   :  { %1232 = vmatpush.bf16.msra.mxu3 %v3502_v17  ;;  %v4176_v17 = vld [vmem:[%s6859_s6 + $0xec] sm:$0xf] }
 0x281   :  { %1233 = vmatmul.bf16.vlgmr.msra.gmra.mxu3 %v5084_v24 }
 0x282   :  { %1238 = vmatpush.bf16.msrb.mxu3 %v3742_v63  ;;  %v3615_v63 = vld [vmem:[%s6859_s6 + $0xf8] sm:$0xf0] }
 0x283   :  { %v3618_v11 = vor.u32 %v4176_v17, %v3615_v63  ;;  %v3522_v17 = vor.u32 %v4152_v6, %v3519_v5  ;;  %v4148_v63 = vld [vmem:[%s6859_s6 + $0xc] sm:$0xf]  ;;  %v3695_v6 = vld [vmem:[%s6859_s6 + $0x198] sm:$0xf0] }
 0x284   :  { %1751 = vmatmul.bf16.gmra.mxu1 %v4870_v41  ;;  %1840 = vmatmul.bf16.gmra.mxu2 %v4870_v41 }
 0x286   :  { %1239 = vmatpush.bf16.msrb.mxu3 %v3726_v14  ;;  %v4172_v14 = vld [vmem:[%s6859_s6 + $0xcc] sm:$0xf] }
 0x287   :  { %v3602_v48 = vor.u32 %v4172_v14, %v3599_v20  ;;  %v4208_v20 = vld [vmem:[%s6859_s6 + $0x1ec] sm:$0xf] }
 0x28a   :  { %1240 = vmatpush.bf16.msrb.mxu3 %v3710_v29  ;;  %v4168_v29 = vld [vmem:[%s6859_s6 + $0xac] sm:$0xf] }
 0x28b   :  { %v3586_v31 = vor.u32 %v4168_v29, %v3583_v21 }
 0x28e   :  { %1241 = vmatpush.bf16.msrb.mxu3 %v3694_v33  ;;  %v4164_v33 = vld [vmem:[%s6859_s6 + $0x8c] sm:$0xf] }
 0x28f   :  { %v3570_v30 = vor.u32 %v4164_v33, %v3567_v39  ;;  %v4204_v33 = vld [vmem:[%s6859_s6 + $0x1cc] sm:$0xf]  ;;  %v3727_v39 = vld [vmem:[%s6859_s6 + $0x1d8] sm:$0xf0] }
 0x292   :  { %1242 = vmatpush.bf16.msrb.mxu3 %v3678_v1  ;;  %v4160_v1 = vld [vmem:[%s6859_s6 + $0x6c] sm:$0xf] }
 0x293   :  { %v3554_v37 = vor.u32 %v4160_v1, %v3551_v51  ;;  %v3730_v1 = vor.u32 %v4204_v33, %v3727_v39  ;;  %v4184_v39 = vld [vmem:[%s6859_s6 + $0x12c] sm:$0xf] }
 0x296   :  { %1243 = vmatpush.bf16.msrb.mxu3 %v3662_v52  ;;  %v4156_v52 = vld [vmem:[%s6859_s6 + $0x4c] sm:$0xf] }
 0x29a   :  { %1244 = vmatpush.bf16.msrb.mxu3 %v3646_v3  ;;  %v3538_v3 = vor.u32 %v4156_v52, %v3535_v56  ;;  %v3711_v52 = vld [vmem:[%s6859_s6 + $0x1b8] sm:$0xf0] }
 0x29e   :  { %1245 = vmatpush.bf16.msrb.mxu3 %v3630_v36  ;;  %v3503_v36 = vld [vmem:[%s6859_s6 + $0x18] sm:$0xf0] }
 0x29f   :  { %v3506_v29 = vor.u32 %v4148_v63, %v3503_v36  ;;  %v4192_v63 = vld [vmem:[%s6859_s6 + $0x16c] sm:$0xf] }
 0x2a1   :  { %1246 = vmatmul.bf16.vlgmr.msrb.gmra.mxu3 %v5116_v9 }
 0x2a2   :  { %1251 = vmatpush.bf16.msra.mxu3 %v3618_v11  ;;  %v5380_v11 = vld [vmem:[%s6860_s7] sm:$0xf] }
 0x2a3   :  { %v788_v21 = vperm.slane %v5380_v11, 0 }
 0x2a4   :  { %v1182_v57 = vpop.f32.mrf.mxu3 }
 0x2a6   :  { %1252 = vmatpush.bf16.msra.mxu3 %v3602_v48  ;;  %v3743_v48 = vld [vmem:[%s6859_s6 + $0x1f8] sm:$0xf0] }
 0x2aa   :  { %1253 = vmatpush.bf16.msra.mxu3 %v3586_v31  ;;  %v3746_v31 = vor.u32 %v4208_v20, %v3743_v48  ;;  %v4188_v20 = vld [vmem:[%s6859_s6 + $0x14c] sm:$0xf]  ;;  %v3663_v48 = vld [vmem:[%s6859_s6 + $0x158] sm:$0xf0] }
 0x2ac   :  { %v1184_v14 = vpop.f32.mrf.mxu3 }
 0x2ad   :  { %v5416_v14 = vpop.f32.mrf.mxu0 }
 0x2ae   :  { %1254 = vmatpush.bf16.msra.mxu3 %v3570_v30  ;;  %v1183_v30 = vadd.f32 %v1182_v57, %v788_v21  ;;  %v4196_v57 = vld [vmem:[%s6859_s6 + $0x18c] sm:$0xf]  ;;  %v5426_v21 = vpop.f32.mrf.mxu2 }
 0x2af   :  { %v3698_v5 = vor.u32 %v4196_v57, %v3695_v6 }
 0x2b2   :  { %1255 = vmatpush.bf16.msra.mxu3 %v3554_v37  ;;  %v4200_v37 = vld [vmem:[%s6859_s6 + $0x1ac] sm:$0xf] }
 0x2b4   :  { %v1195_v51 = vpop.f32.mrf.mxu3 }
 0x2b5   :  { %v5401_v56 = vadd.f32 %v1195_v51, %v1183_v30  ;;  %v3647_v30 = vld [vmem:[%s6859_s6 + $0x138] sm:$0xf0]  ;;  %v4180_v51 = vld [vmem:[%s6859_s6 + $0x10c] sm:$0xf]  ;;  %v5446_v57 = vpop.f32.mrf.mxu0 }
 0x2b6   :  { %1256 = vmatpush.bf16.msra.mxu3 %v3538_v3  ;;  %v3714_v3 = vor.u32 %v4200_v37, %v3711_v52  ;;  %v3631_v37 = vld [vmem:[%s6859_s6 + $0x118] sm:$0xf0]  ;;  %v4240_v52 = vld [vmem:[%s6857_s5 + $0xec] sm:$0xf] }
 0x2ba   :  { %1257 = vmatpush.bf16.msra.mxu3 %v3522_v17 }
 0x2bc   :  { %v1197_v17 = vpop.f32.mrf.mxu3 }
 0x2be   :  { %1258 = vmatpush.bf16.msra.mxu3 %v3506_v29  ;;  %v5424_v29 = vpop.f32.mrf.mxu1 }
 0x2c1   :  { %1259 = vmatmul.bf16.vlgmr.msra.gmra.mxu3 %v5084_v24  ;;  %v3679_v24 = vld [vmem:[%s6859_s6 + $0x178] sm:$0xf0] }
 0x2c2   :  { %1264 = vmatpush.bf16.msrb.mxu3 %v3746_v31  ;;  %v3682_v36 = vor.u32 %v4192_v63, %v3679_v24  ;;  %v3666_v31 = vor.u32 %v4188_v20, %v3663_v48  ;;  %v4061_v24 = vld [vmem:[%s6861_s8 + $0x170] sm:$0xf]  ;;  %v5456_v20 = vpop.f32.mrf.mxu2  ;;  %v4236_v48 = vld [vmem:[%s6857_s5 + $0xcc] sm:$0xf] }
 0x2c4   :  { %v1208_v33 = vpop.f32.mrf.mxu3 }
 0x2c6   :  { %1265 = vmatpush.bf16.msrb.mxu3 %v3730_v1  ;;  %v3650_v1 = vor.u32 %v4184_v39, %v3647_v30  ;;  %v5448_v6 = vpop.f32.mrf.mxu1  ;;  %v3933_v30 = vld [vmem:[%s6861_s8 + $0x70] sm:$0xf] }
 0x2ca   :  { %1266 = vmatpush.bf16.msrb.mxu3 %v3714_v3  ;;  %v3871_v3 = vld [vmem:[%s6857_s5 + $0xf8] sm:$0xf0] }
 0x2cb   :  { %v3874_v63 = vor.u32 %v4240_v52, %v3871_v3  ;;  %v3997_v52 = vld [vmem:[%s6861_s8 + $0xf0] sm:$0xf]  ;;  %v4274_v3 = vld [vmem:[%s6861_s8 + $0xf4] sm:$0xf0] }
 0x2cc   :  { %v1210_v17 = vpop.f32.mrf.mxu3 }
 0x2cd   :  { %v3839_v17 = vld [vmem:[%s6857_s5 + $0xb8] sm:$0xf0] }
 0x2ce   :  { %1267 = vmatpush.bf16.msrb.mxu3 %v3698_v5  ;;  %v3634_v5 = vor.u32 %v4180_v51, %v3631_v37 }
 0x2d2   :  { %1268 = vmatpush.bf16.msrb.mxu3 %v3682_v36  ;;  %v4290_v36 = vld [vmem:[%s6861_s8 + $0x174] sm:$0xf0] }
 0x2d3   :  { %v4062_v39 = vor.u32 %v4290_v36, %v4061_v24  ;;  %v3998_v24 = vor.u32 %v4274_v3, %v3997_v52  ;;  %v4220_v3 = vld [vmem:[%s6857_s5 + $0x4c] sm:$0xf] }
 0x2d5   :  { %2695 = vmatpush.bf16.msra.mxu2 %v4062_v39  ;;  %2606 = vmatpush.bf16.msra.mxu1 %v3998_v24  ;;  %v3823_v39 = vld [vmem:[%s6857_s5 + $0x98] sm:$0xf0] }
 0x2d6   :  { %1269 = vmatpush.bf16.msrb.mxu3 %v3666_v31  ;;  %v3855_v31 = vld [vmem:[%s6857_s5 + $0xd8] sm:$0xf0] }
 0x2d7   :  { %v3858_v51 = vor.u32 %v4236_v48, %v3855_v31  ;;  %v5485_v48 = vpop.f32.mrf.mxu1  ;;  %v4228_v31 = vld [vmem:[%s6857_s5 + $0x8c] sm:$0xf] }
 0x2da   :  { %1270 = vmatpush.bf16.msrb.mxu3 %v3650_v1  ;;  %v4258_v1 = vld [vmem:[%s6861_s8 + $0x74] sm:$0xf0] }
 0x2db   :  { %v3934_v37 = vor.u32 %v4258_v1, %v3933_v30  ;;  %v5493_v30 = vpop.f32.mrf.mxu2  ;;  %v4224_v1 = vld [vmem:[%s6857_s5 + $0x6c] sm:$0xf] }
 0x2dc   :  { %6923 = vst [vmem:[#allocation9_spill] sm:$0xff] %v5493_v30 }
 0x2dd   :  { %2517 = vmatpush.bf16.msra.mxu0 %v3934_v37  ;;  %v789_v37 = vperm.slane %v5380_v11, 1 }
 0x2de   :  { %1271 = vmatpush.bf16.msrb.mxu3 %v3634_v5  ;;  %v4232_v5 = vld [vmem:[%s6857_s5 + $0xac] sm:$0xf] }
 0x2df   :  { %v3842_v36 = vor.u32 %v4232_v5, %v3839_v17  ;;  %v3791_v5 = vld [vmem:[%s6857_s5 + $0x58] sm:$0xf0]  ;;  %v5510_v24 = vpop.f32.mrf.mxu1 }
 0x2e0   :  { %6924 = vst [vmem:[#allocation10_spill] sm:$0xff] %v5510_v24 }
 0x2e1   :  { %1272 = vmatmul.bf16.vlgmr.msrb.gmra.mxu3 %v5116_v9  ;;  %v3826_v9 = vor.u32 %v4228_v31, %v3823_v39  ;;  %v3794_v31 = vor.u32 %v4220_v3, %v3791_v5  ;;  %v4306_v3 = vld [vmem:[%s6861_s8 + $0x1f4] sm:$0xf0] }
 0x2e2   :  { %1846 = vmatpush.bf16.msra.mxu3 %v3874_v63  ;;  %v5483_v63 = vpop.f32.mrf.mxu0 }
 0x2e3   :  { %v5512_v39 = vpop.f32.mrf.mxu2 }
 0x2e4   :  { %6925 = vst [vmem:[#allocation11_spill] sm:$0xff] %v5512_v39  ;;  %v1221_v41 = vpop.f32.mrf.mxu3  ;;  %v4288_v39 = vld [vmem:[%s6861_s8 + $0x164] sm:$0xf0] }
 0x2e5   :  { %v4054_v30 = vor.u32 %v4288_v39, %v4053_v23 }
 0x2e6   :  { %1847 = vmatpush.bf16.msra.mxu3 %v3858_v51  ;;  %v3807_v51 = vld [vmem:[%s6857_s5 + $0x78] sm:$0xf0] }
 0x2e7   :  { %v3810_v52 = vor.u32 %v4224_v1, %v3807_v51  ;;  %v3775_v1 = vld [vmem:[%s6857_s5 + $0x38] sm:$0xf0]  ;;  %v5554_v42 = vpop.f32.mrf.mxu1  ;;  %2696 = vmatpush.bf16.msra.mxu2 %v4054_v30  ;;  %v4304_v30 = vld [vmem:[%s6861_s8 + $0x1e4] sm:$0xf0] }
 0x2ea   :  { %1848 = vmatpush.bf16.msra.mxu3 %v3842_v36  ;;  %v5508_v17 = vpop.f32.mrf.mxu0  ;;  %v1209_v36 = vadd.f32 %v1208_v33, %v789_v37  ;;  %v4212_v33 = vld [vmem:[%s6857_s5 + $0xc] sm:$0xf]  ;;  %v3759_v37 = vld [vmem:[%s6857_s5 + $0x18] sm:$0xf0] }
 0x2eb   :  { %v5562_v24 = vpop.f32.mrf.mxu2 }
 0x2ec   :  { %v1222_v51 = vadd.f32 %v1221_v41, %v1209_v36  ;;  %v1223_v4 = vpop.f32.mrf.mxu3  ;;  %6927 = vst [vmem:[#allocation13_spill] sm:$0xff] %v5562_v24 }
 0x2ed   :  { %v3925_v4 = vld [vmem:[%s6861_s8 + $0x60] sm:$0xf] }
 0x2ee   :  { %1849 = vmatpush.bf16.msra.mxu3 %v3826_v9  ;;  %v4216_v9 = vld [vmem:[%s6857_s5 + $0x2c] sm:$0xf]  ;;  %v1313_v62 = vrot.slane %v1222_v51, 7  ;;  %v3762_v51 = vor.u32 %v4212_v33, %v3759_v37  ;;  %v4117_v33 = vld [vmem:[%s6861_s8 + $0x1e0] sm:$0xf] }
 0x2ef   :  { %v3778_v61 = vor.u32 %v4216_v9, %v3775_v1  ;;  %v4118_v37 = vor.u32 %v4304_v30, %v4117_v33  ;;  %v4045_v30 = vld [vmem:[%s6861_s8 + $0x150] sm:$0xf] }
 0x2f0   :  { %v5534_v41 = vsel %vm138_vm0, %v5401_v56, %v1313_v62  ;;  %v5538_v5 = vsel %vm828_vm3, %v5401_v56, %v1313_v62  ;;  %v5542_v36 = vsel %vm830_vm4, %v5401_v56, %v1313_v62  ;;  %v5550_v9 = vsel %vm834_vm6, %v5401_v56, %v1313_v62 }
 0x2f1   :  { %6926 = vst [vmem:[#allocation12_spill] sm:$0xff] %v5550_v9  ;;  %v5585_v39 = vsel %vm836_vm7, %v5401_v56, %v1313_v62 }
 0x2f2   :  { %1850 = vmatpush.bf16.msra.mxu3 %v3810_v52  ;;  %v4125_v52 = vld [vmem:[%s6861_s8 + $0x1f0] sm:$0xf]  ;;  %v5552_v1 = vpop.f32.mrf.mxu0  ;;  %6928 = vst [vmem:[#allocation14_spill] sm:$0xff] %v5585_v39 }
 0x2f3   :  { %v4126_v46 = vor.u32 %v4306_v3, %v4125_v52 }
 0x2f6   :  { %1851 = vmatpush.bf16.msra.mxu3 %v3794_v31  ;;  %v5546_v31 = vsel %vm832_vm5, %v5401_v56, %v1313_v62 }
 0x2fa   :  { %1852 = vmatpush.bf16.msra.mxu3 %v3778_v61  ;;  %v4256_v61 = vld [vmem:[%s6861_s8 + $0x64] sm:$0xf0]  ;;  %v5587_v3 = vpop.f32.mrf.mxu0 }
 0x2fb   :  { %v3926_v23 = vor.u32 %v4256_v61, %v3925_v4  ;;  %v5591_v4 = vpop.f32.mrf.mxu2  ;;  %v5595_v61 = vsel %vm838_vm8, %v5401_v56, %v1313_v62 }
 0x2fc   :  { %6929 = vst [vmem:[#allocation15_spill] sm:$0xff] %v5595_v61 }
 0x2fd   :  { %2518 = vmatpush.bf16.msra.mxu0 %v3926_v23  ;;  %v5608_v23 = vsel %vm1340_vm10, %v1313_v62, %v5401_v56  ;;  %v3917_v62 = vld [vmem:[%s6861_s8 + $0x50] sm:$0xf]  ;;  %v4254_v56 = vld [vmem:[%s6861_s8 + $0x54] sm:$0xf0] }
 0x2fe   :  { %1853 = vmatpush.bf16.msra.mxu3 %v3762_v51  ;;  %v5589_v51 = vpop.f32.mrf.mxu1  ;;  %6933 = vst [vmem:[#allocation19_spill] sm:$0xff] %v5608_v23  ;;  %v4270_v23 = vld [vmem:[%s6861_s8 + $0xd4] sm:$0xf0] }
 0x301   :  { %1854 = vmatmul.bf16.vlgmr.msra.gmra.mxu3 %v4542_v25  ;;  %v3989_v25 = vld [vmem:[%s6861_s8 + $0xe0] sm:$0xf] }
 0x302   :  { %2784 = vmatpush.bf16.msrb.mxu3 %v4126_v46  ;;  %v4272_v46 = vld [vmem:[%s6861_s8 + $0xe4] sm:$0xf0]  ;;  %v5597_v9 = vpop.f32.mrf.mxu0 }
 0x303   :  { %v3990_v52 = vor.u32 %v4272_v46, %v3989_v25  ;;  %6930 = vst [vmem:[#allocation16_spill] sm:$0xff] %v5597_v9  ;;  %v5603_v33 = vpop.f32.mrf.mxu2  ;;  %v4286_v25 = vld [vmem:[%s6861_s8 + $0x154] sm:$0xf0] }
 0x304   :  { %v5601_v39 = vpop.f32.mrf.mxu3  ;;  %6932 = vst [vmem:[#allocation18_spill] sm:$0xff] %v5603_v33  ;;  %v4046_v46 = vor.u32 %v4286_v25, %v4045_v30  ;;  %v4109_v30 = vld [vmem:[%s6861_s8 + $0x1d0] sm:$0xf] }
 0x305   :  { %2607 = vmatpush.bf16.msra.mxu1 %v3990_v52 }
 0x306   :  { %2785 = vmatpush.bf16.msrb.mxu3 %v4118_v37  ;;  %v5599_v24 = vpop.f32.mrf.mxu1  ;;  %2697 = vmatpush.bf16.msra.mxu2 %v4046_v46  ;;  %v3918_v46 = vor.u32 %v4254_v56, %v3917_v62 }
 0x307   :  { %6931 = vst [vmem:[#allocation17_spill] sm:$0xff] %v5599_v24 }
 0x308   :  { %2519 = vmatpush.bf16.msra.mxu0 %v3918_v46 }
 0x30a   :  { %v5616_v37 = vpop.f32.mrf.mxu0 }
 0x30b   :  { %6934 = vst [vmem:[#allocation20_spill] sm:$0xff] %v5616_v37 }
 0x30c   :  { %v1236_v52 = vpop.f32.mrf.mxu3 }
 0x30d   :  { %v4302_v52 = vld [vmem:[%s6861_s8 + $0x1d4] sm:$0xf0] }
 0x30e   :  { %v5618_v61 = vpop.f32.mrf.mxu1  ;;  %v4110_v33 = vor.u32 %v4302_v52, %v4109_v30  ;;  %v4037_v30 = vld [vmem:[%s6861_s8 + $0x140] sm:$0xf] }
 0x30f   :  { %6935 = vst [vmem:[#allocation21_spill] sm:$0xff] %v5618_v61 }
 0x310   :  { %2786 = vmatpush.bf16.msrb.mxu3 %v4110_v33 }
 0x311   :  { %1859 = vmatmul.bf16.gmra.mxu3 %v4555_v35  ;;  %v5620_v35 = vpop.f32.mrf.mxu2 }
 0x312   :  { %6936 = vst [vmem:[#allocation22_spill] sm:$0xff] %v5620_v35  ;;  %v5632_v25 = vpop.f32.mrf.mxu0 }
 0x313   :  { %6937 = vst [vmem:[#allocation23_spill] sm:$0xff] %v5632_v25 }
 0x316   :  { %v5643_v35 = vpop.f32.mrf.mxu1 }
 0x317   :  { %6938 = vst [vmem:[#allocation24_spill] sm:$0xff] %v5643_v35 }
 0x319   :  { %v5645_v24 = vpop.f32.mrf.mxu2 }
 0x31a   :  { %6939 = vst [vmem:[#allocation25_spill] sm:$0xff] %v5645_v24  ;;  %v5647_v62 = vpop.f32.mrf.mxu0  ;;  %v4252_v24 = vld [vmem:[%s6861_s8 + $0x44] sm:$0xf0] }
 0x31b   :  { %6940 = vst [vmem:[#allocation26_spill] sm:$0xff] %v5647_v62  ;;  %v790_v62 = vperm.slane %v5380_v11, 2 }
 0x31e   :  { %v5649_v56 = vpop.f32.mrf.mxu1 }
 0x31f   :  { %6941 = vst [vmem:[#allocation27_spill] sm:$0xff] %v5649_v56 }
 0x321   :  { %1864 = vmatmul.bf16.gmra.mxu3 %v4568_v45  ;;  %v3981_v45 = vld [vmem:[%s6861_s8 + $0xd0] sm:$0xf]  ;;  %v5653_v37 = vpop.f32.mrf.mxu2 }
 0x322   :  { %v3982_v61 = vor.u32 %v4270_v23, %v3981_v45  ;;  %6942 = vst [vmem:[#allocation28_spill] sm:$0xff] %v5653_v37  ;;  %v4284_v23 = vld [vmem:[%s6861_s8 + $0x144] sm:$0xf0]  ;;  %v5662_v46 = vpop.f32.mrf.mxu0 }
 0x323   :  { %v4038_v33 = vor.u32 %v4284_v23, %v4037_v30  ;;  %6943 = vst [vmem:[#allocation29_spill] sm:$0xff] %v5662_v46  ;;  %v3973_v30 = vld [vmem:[%s6861_s8 + $0xc0] sm:$0xf] }
 0x324   :  { %2608 = vmatpush.bf16.msra.mxu1 %v3982_v61  ;;  %v5651_v25 = vpop.f32.mrf.mxu3 }
 0x325   :  { %2698 = vmatpush.bf16.msra.mxu2 %v4038_v33 }
 0x326   :  { %v5664_v52 = vpop.f32.mrf.mxu1 }
 0x327   :  { %6944 = vst [vmem:[#allocation30_spill] sm:$0xff] %v5664_v52  ;;  %v4268_v52 = vld [vmem:[%s6861_s8 + $0xc4] sm:$0xf0] }
 0x328   :  { %v3974_v46 = vor.u32 %v4268_v52, %v3973_v30  ;;  %v4266_v52 = vld [vmem:[%s6861_s8 + $0xb4] sm:$0xf0] }
 0x329   :  { %v5666_v45 = vpop.f32.mrf.mxu2 }
 0x32a   :  { %6945 = vst [vmem:[#allocation31_spill] sm:$0xff] %v5666_v45  ;;  %v5668_v37 = vpop.f32.mrf.mxu0  ;;  %v4300_v45 = vld [vmem:[%s6861_s8 + $0x1c4] sm:$0xf0]  ;;  %2609 = vmatpush.bf16.msra.mxu1 %v3974_v46  ;;  %v4282_v46 = vld [vmem:[%s6861_s8 + $0x134] sm:$0xf0] }
 0x32b   :  { %6946 = vst [vmem:[#allocation32_spill] sm:$0xff] %v5668_v37 }
 0x32c   :  { %v1249_v61 = vpop.f32.mrf.mxu3 }
 0x32d   :  { %v4101_v61 = vld [vmem:[%s6861_s8 + $0x1c0] sm:$0xf] }
 0x32e   :  { %v5679_v23 = vpop.f32.mrf.mxu1  ;;  %v4102_v37 = vor.u32 %v4300_v45, %v4101_v61  ;;  %v4248_v61 = vld [vmem:[%s6861_s8 + $0x24] sm:$0xf0] }
 0x32f   :  { %6947 = vst [vmem:[#allocation33_spill] sm:$0xff] %v5679_v23 }
 0x330   :  { %2787 = vmatpush.bf16.msrb.mxu3 %v4102_v37  ;;  %v4029_v37 = vld [vmem:[%s6861_s8 + $0x130] sm:$0xf] }
 0x331   :  { %1869 = vmatmul.bf16.gmra.mxu3 %v4581_v55  ;;  %v3909_v55 = vld [vmem:[%s6861_s8 + $0x40] sm:$0xf]  ;;  %v5691_v56 = vpop.f32.mrf.mxu2  ;;  %v4030_v30 = vor.u32 %v4282_v46, %v4029_v37 }
 0x332   :  { %v3910_v33 = vor.u32 %v4252_v24, %v3909_v55  ;;  %6948 = vst [vmem:[#allocation34_spill] sm:$0xff] %v5691_v56  ;;  %v4250_v24 = vld [vmem:[%s6861_s8 + $0x34] sm:$0xf0]  ;;  %v3965_v55 = vld [vmem:[%s6861_s8 + $0xb0] sm:$0xf]  ;;  %v5729_v37 = vpop.f32.mrf.mxu0 }
 0x333   :  { %v3966_v45 = vor.u32 %v4266_v52, %v3965_v55  ;;  %2699 = vmatpush.bf16.msra.mxu2 %v4030_v30  ;;  %v4264_v55 = vld [vmem:[%s6861_s8 + $0xa4] sm:$0xf0]  ;;  %6949 = vst [vmem:[#allocation35_spill] sm:$0xff] %v5729_v37  ;;  %v3949_v37 = vld [vmem:[%s6861_s8 + $0x90] sm:$0xf] }
 0x334   :  { %2520 = vmatpush.bf16.msra.mxu0 %v3910_v33  ;;  %v3893_v33 = vld [vmem:[%s6861_s8 + $0x20] sm:$0xf]  ;;  %v4280_v52 = vld [vmem:[%s6861_s8 + $0x124] sm:$0xf0] }
 0x335   :  { %2610 = vmatpush.bf16.msra.mxu1 %v3966_v45 }
 0x336   :  { %v5731_v56 = vpop.f32.mrf.mxu1 }
 0x337   :  { %6950 = vst [vmem:[#allocation36_spill] sm:$0xff] %v5731_v56 }
 0x339   :  { %v5742_v35 = vpop.f32.mrf.mxu2 }
 0x33a   :  { %6951 = vst [vmem:[#allocation37_spill] sm:$0xff] %v5742_v35 }
 0x341   :  { %1874 = vmatmul.bf16.gmra.mxu3 %v4612_v10  ;;  %v3901_v10 = vld [vmem:[%s6861_s8 + $0x30] sm:$0xf] }
 0x342   :  { %v3902_v23 = vor.u32 %v4250_v24, %v3901_v10  ;;  %v3957_v10 = vld [vmem:[%s6861_s8 + $0xa0] sm:$0xf]  ;;  %v3894_v24 = vor.u32 %v4248_v61, %v3893_v33  ;;  %v3885_v33 = vld [vmem:[%s6861_s8 + $0x10] sm:$0xf]  ;;  %v4246_v61 = vld [vmem:[%s6861_s8 + $0x14] sm:$0xf0] }
 0x343   :  { %v3958_v45 = vor.u32 %v4264_v55, %v3957_v10  ;;  %v3886_v10 = vor.u32 %v4246_v61, %v3885_v33  ;;  %v4013_v55 = vld [vmem:[%s6861_s8 + $0x110] sm:$0xf]  ;;  %v4244_v33 = vld [vmem:[%s6861_s8 + $0x4] sm:$0xf0]  ;;  %v3941_v61 = vld [vmem:[%s6861_s8 + $0x80] sm:$0xf] }
 0x344   :  { %2521 = vmatpush.bf16.msra.mxu0 %v3902_v23  ;;  %v4021_v23 = vld [vmem:[%s6861_s8 + $0x120] sm:$0xf]  ;;  %v1260_v46 = vpop.f32.mrf.mxu3 }
 0x345   :  { %v4022_v30 = vor.u32 %v4280_v52, %v4021_v23  ;;  %2611 = vmatpush.bf16.msra.mxu1 %v3958_v45  ;;  %v4278_v23 = vld [vmem:[%s6861_s8 + $0x114] sm:$0xf0] }
 0x346   :  { %v4014_v45 = vor.u32 %v4278_v23, %v4013_v55 }
 0x347   :  { %2700 = vmatpush.bf16.msra.mxu2 %v4022_v30  ;;  %v3877_v30 = vld [vmem:[%s6861_s8] sm:$0xf] }
 0x348   :  { %2522 = vmatpush.bf16.msra.mxu0 %v3894_v24  ;;  %v4262_v24 = vld [vmem:[%s6861_s8 + $0x94] sm:$0xf0]  ;;  %v3878_v35 = vor.u32 %v4244_v33, %v3877_v30  ;;  %v5776_v30 = vpop.f32.mrf.mxu2 }
 0x349   :  { %v3950_v52 = vor.u32 %v4262_v24, %v3949_v37  ;;  %v4260_v37 = vld [vmem:[%s6861_s8 + $0x84] sm:$0xf0]  ;;  %6953 = vst [vmem:[#allocation39_spill] sm:$0xff] %v5776_v30 }
 0x34a   :  { %v4276_v24 = vld [vmem:[%s6861_s8 + $0x104] sm:$0xf0]  ;;  %v3942_v23 = vor.u32 %v4260_v37, %v3941_v61  ;;  %v4298_v61 = vld [vmem:[%s6861_s8 + $0x1b4] sm:$0xf0]  ;;  %v791_v37 = vperm.slane %v5380_v11, 3 }
 0x34b   :  { %2612 = vmatpush.bf16.msra.mxu1 %v3950_v52  ;;  %2701 = vmatpush.bf16.msra.mxu2 %v4014_v45  ;;  %v5772_v45 = vpop.f32.mrf.mxu0 }
 0x34c   :  { %2523 = vmatpush.bf16.msra.mxu0 %v3886_v10  ;;  %v4005_v10 = vld [vmem:[%s6861_s8 + $0x100] sm:$0xf]  ;;  %v1262_v55 = vpop.f32.mrf.mxu3 }
 0x34d   :  { %v4006_v52 = vor.u32 %v4276_v24, %v4005_v10  ;;  %v1235_v24 = vadd.f32 %v5601_v39, %v790_v62 }
 0x34f   :  { %2613 = vmatpush.bf16.msra.mxu1 %v3942_v23  ;;  %2702 = vmatpush.bf16.msra.mxu2 %v4006_v52  ;;  %v1248_v55 = vadd.f32 %v5651_v25, %v1235_v24  ;;  %v1261_v23 = vadd.f32 %v1260_v46, %v791_v37 }
 0x350   :  { %2524 = vmatpush.bf16.msra.mxu0 %v3878_v35  ;;  %v5783_v9 = vpop.f32.mrf.mxu2  ;;  %v4093_v35 = vld [vmem:[%s6861_s8 + $0x1b0] sm:$0xf] }
 0x351   :  { %1879 = vmatmul.bf16.gmra.mxu3 %v4649_v34  ;;  %v5774_v34 = vpop.f32.mrf.mxu1  ;;  %6956 = vst [vmem:[#allocation42_spill] sm:$0xff] %v5783_v9  ;;  %v4094_v10 = vor.u32 %v4298_v61, %v4093_v35 }
 0x352   :  { %6952 = vst [vmem:[#allocation38_spill] sm:$0xff] %v5774_v34 }
 0x353   :  { %v5778_v33 = vpop.f32.mrf.mxu0  ;;  %2788 = vmatpush.bf16.msrb.mxu3 %v4094_v10 }
 0x354   :  { %6954 = vst [vmem:[#allocation40_spill] sm:$0xff] %v5778_v33  ;;  %v5799_v33 = vrot.slane %v1248_v55, 6 }
 0x358   :  { %v5803_v34 = vpop.f32.mrf.mxu2 }
 0x359   :  { %v5780_v56 = vpop.f32.mrf.mxu1  ;;  %6959 = vst [vmem:[#allocation45_spill] sm:$0xff] %v5803_v34 }
 0x35a   :  { %6955 = vst [vmem:[#allocation41_spill] sm:$0xff] %v5780_v56 }
 0x35b   :  { %v5795_v9 = vpop.f32.mrf.mxu0 }
 0x35c   :  { %6957 = vst [vmem:[#allocation43_spill] sm:$0xff] %v5795_v9 }
 0x361   :  { %1884 = vmatmul.bf16.gmra.mxu3 %v4668_v49  ;;  %v5797_v56 = vpop.f32.mrf.mxu1 }
 0x362   :  { %6958 = vst [vmem:[#allocation44_spill] sm:$0xff] %v5797_v56 }
 0x364   :  { %v1273_v52 = vpop.f32.mrf.mxu3 }
 0x365   :  { %v1274_v49 = vadd.f32 %v1273_v52, %v1261_v23 }
 0x367   :  { %v5801_v30 = vrot.slane %v1274_v49, 5 }
 0x369   :  { %v1317_v11 = vsel %vm830_vm4, %v5799_v33, %v5801_v30  ;;  %v1320_v39 = vsel %vm832_vm5, %v5799_v33, %v5801_v30  ;;  %v1325_v25 = vsel %vm834_vm6, %v5799_v33, %v5801_v30  ;;  %v1330_v55 = vsel %vm836_vm7, %v5799_v33, %v5801_v30 }
 0x36a   :  { %v1318_v62 = vsel %vm139_vm1, %v5534_v41, %v1317_v11  ;;  %v1322_v37 = vsel %vm1321_vm11, %v5538_v5, %v1320_v39  ;;  %v1327_v24 = vsel %vm1326_vm12, %v5542_v36, %v1325_v25  ;;  %v5829_v25 = vpop.f32.mrf.mxu0  ;;  %vm1347_vm1 = vcmask 1045504  }
 0x36b   :  { %v1355_v46 = vperm.slane %v1318_v62, 0  ;;  %v1356_v35 = vperm.slane %v1318_v62, 1  ;;  %v1357_v61 = vperm.slane %v1318_v62, 2  ;;  %v1323_v39 = vrot.slane %v1322_v37, 1 }
 0x36c   :  { %v1275_v10 = vpop.f32.mrf.mxu3 }
 0x36d   :  { %v1589_v23 = vadd.f32 %v4897_v53, %v1355_v46  ;;  %v1591_v52 = vadd.f32 %v4904_v13, %v1355_v46  ;;  %v1678_v49 = vadd.f32 %v5151_v7, %v1356_v35  ;;  %v1680_v41 = vadd.f32 %v5170_v38, %v1356_v35  ;;  %v5831_v13 = vpop.f32.mrf.mxu1 }
 0x36e   :  { %v1767_v5 = vadd.f32 %v5153_v22, %v1357_v61  ;;  %v1769_v11 = vadd.f32 %v5178_v28, %v1357_v61  ;;  %v1594_v36 = vadd.f32 %v4923_v27, %v1355_v46  ;;  %v1596_v38 = vadd.f32 %v4940_v8, %v1355_v46 }
 0x36f   :  { %v1935_v10 = vmax.f32 %v1589_v23, 0.0  ;;  %v1939_v34 = vmax.f32 %v1591_v52, 0.0  ;;  %v1936_v53 = vmax.f32 %v1678_v49, 0.0  ;;  %v1940_v56 = vmax.f32 %v1680_v41, 0.0  ;;  %v5842_v23 = vpop.f32.mrf.mxu2 }
 0x370   :  { %v1937_v7 = vmax.f32 %v1767_v5, 0.0  ;;  %v1941_v9 = vmax.f32 %v1769_v11, 0.0  ;;  %v1683_v27 = vadd.f32 %v5192_v59, %v1356_v35  ;;  %v1685_v37 = vadd.f32 %v5216_v16, %v1356_v35 }
 0x371   :  { %1889 = vmatmul.bf16.gmra.mxu3 %v4675_v58  ;;  %v1332_v58 = vsel %vm1331_vm13, %v5546_v31, %v1330_v55  ;;  %v5836_v22 = vpack.c.bf16 %v1939_v34, %v1935_v10  ;;  %v5838_v28 = vpack.c.bf16 %v1940_v56, %v1936_v53  ;;  %v5846_v49 = vperm.slane %v1318_v62, 3 }
 0x372   :  { %v5844_v52 = vpack.c.bf16 %v1941_v9, %v1937_v7  ;;  %v1772_v41 = vadd.f32 %v5194_v0, %v1357_v61  ;;  %v1774_v8 = vadd.f32 %v5218_v26, %v1357_v61  ;;  %v1943_v31 = vmax.f32 %v1594_v36, 0.0 }
 0x373   :  { %6960 = vst [vmem:[#allocation46_spill] sm:$0xff] %v5836_v22  ;;  %2525 = vmatmul.bf16.vlgmr.msra.gmra.mxu0 %v5836_v22  ;;  %2614 = vmatmul.bf16.vlgmr.msra.gmra.mxu1 %v5838_v28  ;;  %v1359_v56 = vperm.slane %v1323_v39, 0  ;;  %v1360_v34 = vperm.slane %v1323_v39, 1  ;;  %v5852_v59 = vrot.slane %v1327_v24, 2  ;;  %v1947_v16 = vmax.f32 %v1596_v38, 0.0  ;;  %v6998_v22 = vld [vmem:[#allocation32_spill] sm:$0xff] }
 0x374   :  { %6961 = vst [vmem:[#allocation47_spill] sm:$0xff] %v5838_v28  ;;  %2703 = vmatmul.bf16.vlgmr.msra.gmra.mxu2 %v5844_v52  ;;  %v1944_v9 = vmax.f32 %v1683_v27, 0.0  ;;  %v1948_v46 = vmax.f32 %v1685_v37, 0.0  ;;  %v1361_v62 = vperm.slane %v1323_v39, 2  ;;  %v1945_v35 = vmax.f32 %v1772_v41, 0.0  ;;  %v5865_v37 = vpop.f32.mrf.mxu0 }
 0x375   :  { %6962 = vst [vmem:[#allocation48_spill] sm:$0xff] %v5844_v52  ;;  %v1599_v0 = vadd.f32 %v4968_v32, %v1359_v56  ;;  %v1601_v26 = vadd.f32 %v4994_v60, %v1359_v56  ;;  %v1688_v61 = vadd.f32 %v5241_v40, %v1360_v34  ;;  %v1949_v55 = vmax.f32 %v1774_v8, 0.0  ;;  %v6997_v52 = vld [vmem:[#allocation29_spill] sm:$0xff] }
 0x376   :  { %v1690_v5 = vadd.f32 %v5257_v54, %v1360_v34  ;;  %v1777_v11 = vadd.f32 %v5243_v43, %v1361_v62  ;;  %v1779_v24 = vadd.f32 %v5259_v19, %v1361_v62  ;;  %v5862_v7 = vadd.f32 %v5021_v18, %v1359_v56  ;;  %v5879_v18 = vpop.f32.mrf.mxu1 }
 0x377   :  { %v1951_v36 = vmax.f32 %v1599_v0, 0.0  ;;  %v1955_v10 = vmax.f32 %v1601_v26, 0.0  ;;  %v1952_v53 = vmax.f32 %v1688_v61, 0.0  ;;  %v1606_v60 = vadd.f32 %v5042_v50, %v1359_v56  ;;  %v5896_v0 = vpop.f32.mrf.mxu2 }
 0x378   :  { %v1956_v38 = vmax.f32 %v1690_v5, 0.0  ;;  %v1953_v27 = vmax.f32 %v1777_v11, 0.0  ;;  %v1957_v32 = vmax.f32 %v1779_v24, 0.0  ;;  %v5867_v40 = vpack.c.bf16 %v1947_v16, %v1943_v31  ;;  %v4296_v5 = vld [vmem:[%s6861_s8 + $0x1a4] sm:$0xf0] }
 0x379   :  { %v5870_v54 = vadd.f32 %v5281_v15, %v1360_v34  ;;  %v5872_v43 = vrot.slane %v1332_v58, 3  ;;  %v5877_v19 = vsel %vm838_vm8, %v5799_v33, %v5801_v30  ;;  %v5881_v41 = vpack.c.bf16 %v1948_v46, %v1944_v9 }
 0x37a   :  { %6963 = vst [vmem:[#allocation49_spill] sm:$0xff] %v5867_v40  ;;  %v5883_v8 = vpack.c.bf16 %v1949_v55, %v1945_v35  ;;  %v5885_v50 = vpack.c.bf16 %v1955_v10, %v1951_v36  ;;  %v5887_v31 = vperm.slane %v1323_v39, 3  ;;  %v5889_v56 = vpack.c.bf16 %v1956_v38, %v1952_v53 }
 0x37b   :  { %6964 = vst [vmem:[#allocation50_spill] sm:$0xff] %v5881_v41  ;;  %v1959_v15 = vmax.f32 %v5862_v7, 0.0  ;;  %v5893_v58 = vadd.f32 %v5304_v44, %v1360_v34  ;;  %v1363_v16 = vperm.slane %v5852_v59, 0  ;;  %v5898_v26 = vpack.c.bf16 %v1957_v32, %v1953_v27  ;;  %v4085_v34 = vld [vmem:[%s6861_s8 + $0x1a0] sm:$0xf] }
 0x37c   :  { %6965 = vst [vmem:[#allocation51_spill] sm:$0xff] %v5883_v8  ;;  %v1963_v9 = vmax.f32 %v1606_v60, 0.0  ;;  %v1364_v46 = vperm.slane %v5852_v59, 1  ;;  %v1365_v35 = vperm.slane %v5852_v59, 2  ;;  %v5904_v61 = vadd.f32 %v5289_v12, %v1361_v62 }
 0x37d   :  { %6966 = vst [vmem:[#allocation52_spill] sm:$0xff] %v5885_v50  ;;  %v1609_v55 = vadd.f32 %v5416_v14, %v1363_v16  ;;  %v1611_v44 = vadd.f32 %v5446_v57, %v1363_v16  ;;  %v4086_v36 = vor.u32 %v4296_v5, %v4085_v34  ;;  %v5921_v60 = vadd.f32 %v5307_v47, %v1361_v62  ;;  %v5933_v5 = vpop.f32.mrf.mxu0 }
 0x37e   :  { %6967 = vst [vmem:[#allocation53_spill] sm:$0xff] %v5889_v56  ;;  %v1698_v11 = vadd.f32 %v5424_v29, %v1364_v46  ;;  %v1700_v24 = vadd.f32 %v5448_v6, %v1364_v46  ;;  %v1787_v12 = vadd.f32 %v5426_v21, %v1365_v35  ;;  %v1789_v14 = vadd.f32 %v5456_v20, %v1365_v35 }
 0x37f   :  { %6968 = vst [vmem:[#allocation54_spill] sm:$0xff] %v5898_v26  ;;  %v1971_v10 = vmax.f32 %v1611_v44, 0.0  ;;  %2789 = vmatpush.bf16.msrb.mxu3 %v4086_v36  ;;  %v1614_v21 = vadd.f32 %v5483_v63, %v1363_v16  ;;  %v1616_v6 = vadd.f32 %v5508_v17, %v1363_v16  ;;  %v1703_v44 = vadd.f32 %v5485_v48, %v1364_v46  ;;  %v6970_v63 = vld [vmem:[#allocation10_spill] sm:$0xff]  ;;  %v6971_v17 = vld [vmem:[#allocation9_spill] sm:$0xff] }
 0x380   :  { %v1968_v53 = vmax.f32 %v1698_v11, 0.0  ;;  %v1972_v7 = vmax.f32 %v1700_v24, 0.0  ;;  %v1969_v38 = vmax.f32 %v1787_v12, 0.0  ;;  %v1973_v27 = vmax.f32 %v1789_v14, 0.0  ;;  %v5939_v24 = vpop.f32.mrf.mxu1  ;;  %v6972_v14 = vld [vmem:[#allocation11_spill] sm:$0xff] }
 0x381   :  { %1894 = vmatmul.bf16.gmra.mxu3 %v4682_v2  ;;  %v1967_v2 = vmax.f32 %v1609_v55, 0.0  ;;  %v1975_v47 = vmax.f32 %v1614_v21, 0.0  ;;  %v1979_v62 = vmax.f32 %v1616_v6, 0.0  ;;  %v1705_v11 = vadd.f32 %v6970_v63, %v1364_v46  ;;  %v5949_v46 = vpop.f32.mrf.mxu2 }
 0x382   :  { %v5928_v34 = vpack.c.bf16 %v1972_v7, %v1968_v53  ;;  %v5930_v55 = vpack.c.bf16 %v1973_v27, %v1969_v38  ;;  %v1792_v16 = vadd.f32 %v6971_v17, %v1365_v35  ;;  %v5942_v12 = vpack.c.bf16 %v1963_v9, %v1959_v15 }
 0x383   :  { %v5923_v29 = vpack.c.bf16 %v1971_v10, %v1967_v2  ;;  %2530 = vmatmul.bf16.gmra.mxu0 %v5867_v40  ;;  %2619 = vmatmul.bf16.gmra.mxu1 %v5881_v41  ;;  %v1976_v48 = vmax.f32 %v1703_v44, 0.0  ;;  %v1794_v36 = vadd.f32 %v6972_v14, %v1365_v35  ;;  %v1367_v2 = vperm.slane %v5872_v43, 0 }
 0x384   :  { %v1855_v32 = vpop.f32.mrf.mxu3  ;;  %6969 = vst [vmem:[#allocation55_spill] sm:$0xff] %v5930_v55  ;;  %2708 = vmatmul.bf16.gmra.mxu2 %v5883_v8  ;;  %v5946_v10 = vpack.c.bf16 %v1979_v62, %v1975_v47  ;;  %v1980_v53 = vmax.f32 %v1705_v11, 0.0  ;;  %v1977_v7 = vmax.f32 %v1792_v16, 0.0  ;;  %v1368_v38 = vperm.slane %v5872_v43, 1  ;;  %v6973_v11 = vld [vmem:[#allocation13_spill] sm:$0xff] }
 0x385   :  { %v1856_v20 = vadd.f32 %v1855_v32, %v5846_v49  ;;  %v1981_v27 = vmax.f32 %v1794_v36, 0.0  ;;  %v1619_v32 = vadd.f32 %v5552_v1, %v1367_v2  ;;  %v1621_v21 = vadd.f32 %v5587_v3, %v1367_v2  ;;  %v6974_v36 = vld [vmem:[#allocation16_spill] sm:$0xff] }
 0x386   :  { %v1369_v15 = vperm.slane %v5872_v43, 2  ;;  %v5954_v6 = vpack.c.bf16 %v1980_v53, %v1976_v48  ;;  %v1708_v35 = vadd.f32 %v5554_v42, %v1368_v38  ;;  %v1710_v44 = vadd.f32 %v5589_v51, %v1368_v38  ;;  %v6975_v53 = vld [vmem:[#allocation20_spill] sm:$0xff] }
 0x387   :  { %v1938_v9 = vmax.f32 %v1856_v20, 0.0  ;;  %v5958_v47 = vpack.c.bf16 %v1981_v27, %v1977_v7  ;;  %v1983_v62 = vmax.f32 %v1619_v32, 0.0  ;;  %v1987_v63 = vmax.f32 %v1621_v21, 0.0  ;;  %v6976_v21 = vld [vmem:[#allocation17_spill] sm:$0xff] }
 0x388   :  { %v1797_v17 = vadd.f32 %v6973_v11, %v1369_v15  ;;  %v1984_v14 = vmax.f32 %v1708_v35, 0.0  ;;  %v1988_v1 = vmax.f32 %v1710_v44, 0.0  ;;  %v1799_v3 = vadd.f32 %v5591_v4, %v1369_v15  ;;  %v6977_v44 = vld [vmem:[#allocation21_spill] sm:$0xff]  ;;  %v6978_v4 = vld [vmem:[#allocation18_spill] sm:$0xff] }
 0x389   :  { %v1624_v57 = vadd.f32 %v6974_v36, %v1367_v2  ;;  %v5964_v48 = vpack.c.bf16 %v1987_v63, %v1983_v62  ;;  %v1626_v51 = vadd.f32 %v6975_v53, %v1367_v2  ;;  %v1713_v11 = vadd.f32 %v6976_v21, %v1368_v38  ;;  %v5972_v36 = vpop.f32.mrf.mxu0  ;;  %v6979_v63 = vld [vmem:[#allocation22_spill] sm:$0xff]  ;;  %v6980_v2 = vld [vmem:[#allocation12_spill] sm:$0xff] }
 0x38a   :  { %v1985_v42 = vmax.f32 %v1797_v17, 0.0  ;;  %v5967_v7 = vpack.c.bf16 %v1988_v1, %v1984_v14  ;;  %v1989_v27 = vmax.f32 %v1799_v3, 0.0  ;;  %v1715_v8 = vadd.f32 %v6977_v44, %v1368_v38  ;;  %v6982_v3 = vld [vmem:[#allocation2_spill] sm:$0xff] }
 0x38b   :  { %v1991_v32 = vmax.f32 %v1624_v57, 0.0  ;;  %v1995_v35 = vmax.f32 %v1626_v51, 0.0  ;;  %v1802_v41 = vadd.f32 %v6978_v4, %v1369_v15  ;;  %v1992_v62 = vmax.f32 %v1713_v11, 0.0  ;;  %v5980_v57 = vpop.f32.mrf.mxu1 }
 0x38c   :  { %v1857_v16 = vpop.f32.mrf.mxu3  ;;  %v1804_v17 = vadd.f32 %v6979_v63, %v1369_v15  ;;  %v1337_v14 = vsel %vm1336_vm14, %v6980_v2, %v5877_v19  ;;  %v1341_v15 = vsel %vm1340_vm10, %v5801_v30, %v5799_v33  ;;  %v6987_v4 = vmax.f32 %v5870_v54, 0.0  ;;  %v6993_v54 = vld [vmem:[#allocation27_spill] sm:$0xff] }
 0x38d   :  { %v1858_v20 = vadd.f32 %v1857_v16, %v5846_v49  ;;  %v5974_v16 = vpack.c.bf16 %v1989_v27, %v1985_v42  ;;  %v5985_v38 = vpack.c.bf16 %v1995_v35, %v1991_v32  ;;  %v1993_v53 = vmax.f32 %v1802_v41, 0.0  ;;  %v5992_v27 = vpop.f32.mrf.mxu2 }
 0x38e   :  { %v1997_v51 = vmax.f32 %v1804_v17, 0.0  ;;  %v5987_v42 = vrot.slane %v1337_v14, 4  ;;  %v1346_v32 = vsel %vm138_vm0, %v5799_v33, %v5801_v30  ;;  %v1961_v17 = vmax.f32 %v5904_v61, 0.0  ;;  %v6989_v14 = vld [vmem:[#allocation23_spill] sm:$0xff] }
 0x38f   :  { %v1942_v39 = vmax.f32 %v1858_v20, 0.0  ;;  %v1996_v20 = vmax.f32 %v1715_v8, 0.0  ;;  %v1965_v2 = vmax.f32 %v5921_v60, 0.0  ;;  %vm1352_vm0 = vcmask 1046529  }
 0x390   :  { %6983 = vst [vmem:[#allocation9_spill] sm:$0xff] %v5987_v42  ;;  %v6000_v8 = vpack.c.bf16 %v1997_v51, %v1993_v53  ;;  %v1371_v21 = vperm.slane %v5987_v42, 0  ;;  %v1372_v11 = vperm.slane %v5987_v42, 1  ;;  %v1373_v35 = vperm.slane %v5987_v42, 2  ;;  %v6991_v51 = vld [vmem:[#allocation24_spill] sm:$0xff] }
 0x391   :  { %v5982_v1 = vpack.c.bf16 %v1942_v39, %v1938_v9  ;;  %1899 = vmatmul.bf16.gmra.mxu3 %v6982_v3  ;;  %v5994_v19 = vpack.c.bf16 %v1996_v20, %v1992_v62  ;;  %v6985_v39 = vld [vmem:[#allocation14_spill] sm:$0xff]  ;;  %v6988_v62 = vmax.f32 %v5893_v58, 0.0 }
 0x392   :  { %v1343_v9 = vsel %vm1342_vm15, %v6985_v39, %v1341_v15  ;;  %6986 = vst [vmem:[#allocation13_spill] sm:$0xff] %v6000_v8  ;;  %v1629_v3 = vadd.f32 %v6989_v14, %v1371_v21  ;;  %v6990_v20 = vld [vmem:[#allocation26_spill] sm:$0xff]  ;;  %v1718_v15 = vadd.f32 %v6991_v51, %v1372_v11  ;;  %v1720_v58 = vadd.f32 %v6993_v54, %v1372_v11  ;;  %v7001_v8 = vld [vmem:[#allocation33_spill] sm:$0xff] }
 0x393   :  { %6981 = vst [vmem:[#allocation10_spill] sm:$0xff] %v5982_v1  ;;  %v6012_v63 = vpack.c.bf16 %v6988_v62, %v6987_v4  ;;  %2535 = vmatmul.bf16.gmra.mxu0 %v5885_v50  ;;  %2624 = vmatmul.bf16.gmra.mxu1 %v5889_v56  ;;  %v1631_v53 = vadd.f32 %v6990_v20, %v1371_v21  ;;  %v6021_v39 = vrot.slane %v1343_v9, 5  ;;  %v6995_v4 = vld [vmem:[#allocation28_spill] sm:$0xff]  ;;  %v6996_v62 = vld [vmem:[#allocation15_spill] sm:$0xff]  ;;  %v7000_v1 = vld [vmem:[#allocation30_spill] sm:$0xff] }
 0x394   :  { %6984 = vst [vmem:[#allocation11_spill] sm:$0xff] %v5994_v19  ;;  %v1860_v41 = vpop.f32.mrf.mxu3  ;;  %2713 = vmatmul.bf16.gmra.mxu2 %v5898_v26  ;;  %v1809_v60 = vadd.f32 %v6995_v4, %v1373_v35  ;;  %v1348_v50 = vsel %vm1347_vm1, %v1346_v32, %v6996_v62  ;;  %v1999_v56 = vmax.f32 %v1629_v3, 0.0  ;;  %v2000_v14 = vmax.f32 %v1718_v15, 0.0  ;;  %v6031_v26 = vpop.f32.mrf.mxu0  ;;  %v7004_v15 = vld [vmem:[#allocation31_spill] sm:$0xff] }
 0x395   :  { %v6006_v44 = vadd.f32 %v1860_v41, %v5846_v49  ;;  %6992 = vst [vmem:[#allocation16_spill] sm:$0xff] %v6021_v39  ;;  %v6994_v41 = vld [vmem:[#allocation25_spill] sm:$0xff]  ;;  %v2003_v40 = vmax.f32 %v1631_v53, 0.0  ;;  %v1634_v20 = vadd.f32 %v6997_v52, %v1371_v21  ;;  %v2004_v28 = vmax.f32 %v1720_v58, 0.0  ;;  %v6037_v32 = vpop.f32.mrf.mxu1  ;;  %v6046_v62 = vpop.f32.mrf.mxu2 }
 0x396   :  { %v1807_v61 = vadd.f32 %v6994_v41, %v1373_v35  ;;  %v2005_v9 = vmax.f32 %v1809_v60, 0.0  ;;  %v1636_v42 = vadd.f32 %v6998_v22, %v1371_v21  ;;  %v1723_v4 = vadd.f32 %v7000_v1, %v1372_v11  ;;  %v7005_v60 = vld [vmem:[#allocation34_spill] sm:$0xff] }
 0x397   :  { %v6033_v54 = vpack.c.bf16 %v2003_v40, %v1999_v56  ;;  %v2007_v41 = vmax.f32 %v1634_v20, 0.0  ;;  %v1725_v19 = vadd.f32 %v7001_v8, %v1372_v11  ;;  %v6039_v3 = vpack.c.bf16 %v2004_v28, %v2000_v14  ;;  %v7008_v20 = vld [vmem:[#allocation35_spill] sm:$0xff] }
 0x398   :  { %v2001_v51 = vmax.f32 %v1807_v61, 0.0  ;;  %v2011_v52 = vmax.f32 %v1636_v42, 0.0  ;;  %v1812_v58 = vadd.f32 %v7004_v15, %v1373_v35  ;;  %v2008_v22 = vmax.f32 %v1723_v4, 0.0  ;;  %v7010_v15 = vld [vmem:[#allocation38_spill] sm:$0xff] }
 0x399   :  { %6999 = vst [vmem:[#allocation20_spill] sm:$0xff] %v6033_v54  ;;  %v2012_v21 = vmax.f32 %v1725_v19, 0.0  ;;  %v1814_v40 = vadd.f32 %v7005_v60, %v1373_v35  ;;  %v1375_v56 = vperm.slane %v6021_v39, 0  ;;  %v1376_v11 = vperm.slane %v6021_v39, 1 }
 0x39a   :  { %7002 = vst [vmem:[#allocation17_spill] sm:$0xff] %v6039_v3  ;;  %v6041_v53 = vpack.c.bf16 %v2005_v9, %v2001_v51  ;;  %v6051_v8 = vpack.c.bf16 %v2011_v52, %v2007_v41  ;;  %v2009_v28 = vmax.f32 %v1812_v58, 0.0  ;;  %v6058_v35 = vpack.c.bf16 %v1965_v2, %v1961_v17  ;;  %v7009_v9 = vld [vmem:[#allocation36_spill] sm:$0xff]  ;;  %v4294_v17 = vld [vmem:[%s6861_s8 + $0x194] sm:$0xf0] }
 0x39b   :  { %v6054_v42 = vpack.c.bf16 %v2012_v21, %v2008_v22  ;;  %v2013_v14 = vmax.f32 %v1814_v40, 0.0  ;;  %v1639_v51 = vadd.f32 %v7008_v20, %v1375_v56  ;;  %v1641_v19 = vadd.f32 %v5772_v45, %v1375_v56  ;;  %v7012_v22 = vld [vmem:[#allocation3_spill] sm:$0xff]  ;;  %v4077_v45 = vld [vmem:[%s6861_s8 + $0x190] sm:$0xf]  ;;  %v7013_v40 = vld [vmem:[#allocation37_spill] sm:$0xff] }
 0x39c   :  { %7003 = vst [vmem:[#allocation21_spill] sm:$0xff] %v6041_v53  ;;  %v1862_v61 = vpop.f32.mrf.mxu3  ;;  %v1728_v4 = vadd.f32 %v7009_v9, %v1376_v11  ;;  %v1730_v60 = vadd.f32 %v7010_v15, %v1376_v11  ;;  %v7017_v15 = vld [vmem:[#allocation43_spill] sm:$0xff]  ;;  %v6083_v3 = vpop.f32.mrf.mxu0 }
 0x39d   :  { %v6049_v1 = vadd.f32 %v1862_v61, %v5846_v49  ;;  %7006 = vst [vmem:[#allocation18_spill] sm:$0xff] %v6051_v8  ;;  %v1377_v49 = vperm.slane %v6021_v39, 2  ;;  %v6063_v41 = vpack.c.bf16 %v2013_v14, %v2009_v28  ;;  %v2015_v52 = vmax.f32 %v1639_v51, 0.0  ;;  %v7014_v28 = vld [vmem:[#allocation39_spill] sm:$0xff]  ;;  %v7019_v8 = vld [vmem:[#allocation41_spill] sm:$0xff] }
 0x39e   :  { %7007 = vst [vmem:[#allocation22_spill] sm:$0xff] %v6054_v42  ;;  %v2019_v58 = vmax.f32 %v1641_v19, 0.0  ;;  %v6065_v61 = vrot.slane %v1348_v50, 6  ;;  %v2016_v2 = vmax.f32 %v1728_v4, 0.0  ;;  %v2020_v21 = vmax.f32 %v1730_v60, 0.0  ;;  %v7016_v50 = vld [vmem:[#allocation40_spill] sm:$0xff] }
 0x39f   :  { %7011 = vst [vmem:[#allocation12_spill] sm:$0xff] %v6063_v41  ;;  %v1817_v20 = vadd.f32 %v7013_v40, %v1377_v49  ;;  %v1819_v14 = vadd.f32 %v7014_v28, %v1377_v49  ;;  %v4078_v51 = vor.u32 %v4294_v17, %v4077_v45  ;;  %v1644_v9 = vadd.f32 %v7016_v50, %v1375_v56  ;;  %v7020_v28 = vld [vmem:[#allocation44_spill] sm:$0xff]  ;;  %v6087_v17 = vpop.f32.mrf.mxu1 }
 0x3a0   :  { %v6076_v19 = vpack.c.bf16 %v2019_v58, %v2015_v52  ;;  %v6080_v39 = vpack.c.bf16 %v2020_v21, %v2016_v2  ;;  %v1733_v53 = vadd.f32 %v7019_v8, %v1376_v11  ;;  %v1735_v45 = vadd.f32 %v7020_v28, %v1376_v11  ;;  %v7021_v52 = vld [vmem:[#allocation42_spill] sm:$0xff] }
 0x3a1   :  { %1904 = vmatmul.bf16.gmra.mxu3 %v7012_v22  ;;  %v1646_v22 = vadd.f32 %v7017_v15, %v1375_v56  ;;  %v2017_v41 = vmax.f32 %v1817_v20, 0.0  ;;  %v2021_v42 = vmax.f32 %v1819_v14, 0.0  ;;  %v2023_v60 = vmax.f32 %v1644_v9, 0.0  ;;  %v7023_v20 = vld [vmem:[#allocation45_spill] sm:$0xff]  ;;  %v6100_v9 = vpop.f32.mrf.mxu2 }
 0x3a2   :  { %7015 = vst [vmem:[#allocation2_spill] sm:$0xff] %v6076_v19  ;;  %2790 = vmatpush.bf16.msrb.mxu3 %v4078_v51  ;;  %v1822_v58 = vadd.f32 %v7021_v52, %v1377_v49  ;;  %v2024_v21 = vmax.f32 %v1733_v53, 0.0  ;;  %v1824_v8 = vadd.f32 %v7023_v20, %v1377_v49  ;;  %v2028_v51 = vmax.f32 %v1735_v45, 0.0 }
 0x3a3   :  { %7018 = vst [vmem:[#allocation14_spill] sm:$0xff] %v6080_v39  ;;  %v2027_v40 = vmax.f32 %v1646_v22, 0.0  ;;  %v6092_v2 = vpack.c.bf16 %v2021_v42, %v2017_v41  ;;  %2540 = vmatmul.bf16.gmra.mxu0 %v5942_v12  ;;  %2629 = vmatmul.bf16.gmra.mxu1 %v6012_v63  ;;  %v1379_v50 = vperm.slane %v6065_v61, 0  ;;  %v1950_v15 = vmax.f32 %v6049_v1, 0.0 }
 0x3a4   :  { %v1865_v4 = vpop.f32.mrf.mxu3  ;;  %v2025_v11 = vmax.f32 %v1822_v58, 0.0  ;;  %2718 = vmatmul.bf16.gmra.mxu2 %v6058_v35  ;;  %v2029_v42 = vmax.f32 %v1824_v8, 0.0  ;;  %v1380_v53 = vperm.slane %v6065_v61, 1  ;;  %v1381_v49 = vperm.slane %v6065_v61, 2 }
 0x3a5   :  { %v6090_v56 = vadd.f32 %v1865_v4, %v5887_v31  ;;  %7022 = vst [vmem:[#allocation23_spill] sm:$0xff] %v6092_v2  ;;  %v6097_v14 = vpack.c.bf16 %v2027_v40, %v2023_v60  ;;  %v1946_v41 = vmax.f32 %v6006_v44, 0.0  ;;  %v6107_v22 = vpack.c.bf16 %v2028_v51, %v2024_v21 }
 0x3a6   :  { %v1649_v4 = vadd.f32 %v5829_v25, %v1379_v50  ;;  %v1651_v60 = vadd.f32 %v5865_v37, %v1379_v50  ;;  %v6111_v40 = vpack.c.bf16 %v2029_v42, %v2025_v11  ;;  %v1738_v28 = vadd.f32 %v5831_v13, %v1380_v53 }
 0x3a7   :  { %7024 = vst [vmem:[#allocation26_spill] sm:$0xff] %v6097_v14  ;;  %v1740_v1 = vadd.f32 %v5879_v18, %v1380_v53  ;;  %v1827_v45 = vadd.f32 %v5842_v23, %v1381_v49  ;;  %v1829_v20 = vadd.f32 %v5896_v0, %v1381_v49  ;;  %v1654_v44 = vadd.f32 %v5933_v5, %v1379_v50 }
 0x3a8   :  { %7025 = vst [vmem:[#allocation24_spill] sm:$0xff] %v6107_v22  ;;  %v2031_v52 = vmax.f32 %v1649_v4, 0.0  ;;  %v2035_v58 = vmax.f32 %v1651_v60, 0.0  ;;  %v6118_v21 = vpack.c.bf16 %v1950_v15, %v1946_v41  ;;  %v2032_v8 = vmax.f32 %v1738_v28, 0.0  ;;  %v1663_v15 = vpop.f32.mrf.mxu0 }
 0x3a9   :  { %v2036_v25 = vmax.f32 %v1740_v1, 0.0  ;;  %v2033_v51 = vmax.f32 %v1827_v45, 0.0  ;;  %v2037_v42 = vmax.f32 %v1829_v20, 0.0  ;;  %v1656_v13 = vadd.f32 %v5972_v36, %v1379_v50  ;;  %v1752_v45 = vpop.f32.mrf.mxu1 }
 0x3aa   :  { %7026 = vst [vmem:[#allocation27_spill] sm:$0xff] %v6118_v21  ;;  %v6120_v11 = vpack.c.bf16 %v2035_v58, %v2031_v52  ;;  %v2039_v18 = vmax.f32 %v1654_v44, 0.0  ;;  %v1743_v0 = vadd.f32 %v5939_v24, %v1380_v53  ;;  %v1745_v5 = vadd.f32 %v5980_v57, %v1380_v53  ;;  %v1841_v57 = vpop.f32.mrf.mxu2  ;;  %v7031_v53 = vld [vmem:[#allocation4_spill] sm:$0xff] }
 0x3ab   :  { %v6126_v4 = vpack.c.bf16 %v2036_v25, %v2032_v8  ;;  %v6130_v41 = vpack.c.bf16 %v2037_v42, %v2033_v51  ;;  %v2043_v60 = vmax.f32 %v1656_v13, 0.0  ;;  %v1832_v28 = vadd.f32 %v5949_v46, %v1381_v49  ;;  %v7033_v46 = vld [vmem:[#allocation19_spill] sm:$0xff] }
 0x3ac   :  { %v1867_v37 = vpop.f32.mrf.mxu3  ;;  %7027 = vst [vmem:[#allocation25_spill] sm:$0xff] %v6120_v11  ;;  %v1834_v1 = vadd.f32 %v5992_v27, %v1381_v49  ;;  %v2040_v36 = vmax.f32 %v1743_v0, 0.0  ;;  %v2044_v50 = vmax.f32 %v1745_v5, 0.0  ;;  %v1351_v52 = vsel %vm828_vm3, %v5799_v33, %v5801_v30 }
 0x3ad   :  { %v6124_v23 = vadd.f32 %v1867_v37, %v5887_v31  ;;  %7028 = vst [vmem:[#allocation28_spill] sm:$0xff] %v6126_v4  ;;  %v6137_v58 = vpack.c.bf16 %v2043_v60, %v2039_v18  ;;  %v2041_v24 = vmax.f32 %v1832_v28, 0.0  ;;  %v1353_v8 = vsel %vm1352_vm0, %v1351_v52, %v7033_v46 }
 0x3ae   :  { %7029 = vst [vmem:[#allocation15_spill] sm:$0xff] %v6130_v41  ;;  %v2045_v20 = vmax.f32 %v1834_v1, 0.0  ;;  %v6140_v44 = vpack.c.bf16 %v2044_v50, %v2040_v36  ;;  %v6145_v49 = vrot.slane %v1353_v8, 7 }
 0x3af   :  { %7030 = vst [vmem:[#allocation29_spill] sm:$0xff] %v6137_v58 }
 0x3b0   :  { %7032 = vst [vmem:[#allocation32_spill] sm:$0xff] %v6140_v44  ;;  %v6143_v27 = vpack.c.bf16 %v2045_v20, %v2041_v24  ;;  %v1383_v51 = vperm.slane %v6145_v49, 0  ;;  %v1384_v30 = vperm.slane %v6145_v49, 1  ;;  %v1385_v33 = vperm.slane %v6145_v49, 2  ;;  %v1665_v28 = vpop.f32.mrf.mxu0 }
 0x3b1   :  { %1909 = vmatmul.bf16.gmra.mxu3 %v7031_v53  ;;  %v1754_v24 = vpop.f32.mrf.mxu1 }
 0x3b2   :  { %7034 = vst [vmem:[#allocation30_spill] sm:$0xff] %v6143_v27  ;;  %v1659_v42 = vadd.f32 %v6031_v26, %v1383_v51  ;;  %v1661_v13 = vadd.f32 %v6083_v3, %v1383_v51  ;;  %v1748_v18 = vadd.f32 %v6037_v32, %v1384_v30  ;;  %v1750_v0 = vadd.f32 %v6087_v17, %v1384_v30  ;;  %v1843_v17 = vpop.f32.mrf.mxu2 }
 0x3b3   :  { %2545 = vmatmul.bf16.gmra.mxu0 %v5923_v29  ;;  %2634 = vmatmul.bf16.gmra.mxu1 %v5928_v34  ;;  %v1837_v5 = vadd.f32 %v6046_v62, %v1385_v33  ;;  %v1839_v60 = vadd.f32 %v6100_v9, %v1385_v33  ;;  %v1664_v52 = vadd.f32 %v1663_v15, %v1383_v51 }
 0x3b4   :  { %v1870_v25 = vpop.f32.mrf.mxu3  ;;  %2723 = vmatmul.bf16.gmra.mxu2 %v5930_v55  ;;  %v2047_v1 = vmax.f32 %v1659_v42, 0.0  ;;  %v2051_v36 = vmax.f32 %v1661_v13, 0.0  ;;  %v2048_v50 = vmax.f32 %v1748_v18, 0.0  ;;  %v2052_v20 = vmax.f32 %v1750_v0, 0.0 }
 0x3b5   :  { %v1871_v37 = vadd.f32 %v1870_v25, %v5887_v31  ;;  %v2049_v26 = vmax.f32 %v1837_v5, 0.0  ;;  %v2053_v53 = vmax.f32 %v1839_v60, 0.0  ;;  %v1666_v3 = vadd.f32 %v1665_v28, %v1383_v51 }
 0x3b6   :  { %v6160_v46 = vpack.c.bf16 %v2051_v36, %v2047_v1  ;;  %v2055_v32 = vmax.f32 %v1664_v52, 0.0  ;;  %v1753_v8 = vadd.f32 %v1752_v45, %v1384_v30  ;;  %v1755_v25 = vadd.f32 %v1754_v24, %v1384_v30 }
 0x3b7   :  { %v6162_v55 = vpack.c.bf16 %v2052_v20, %v2048_v50  ;;  %v6164_v62 = vpack.c.bf16 %v2053_v53, %v2049_v26  ;;  %v2059_v9 = vmax.f32 %v1666_v3, 0.0  ;;  %v1842_v42 = vadd.f32 %v1841_v57, %v1385_v33  ;;  %v7041_v57 = vld [vmem:[#allocation5_spill] sm:$0xff]  ;;  %v7042_v3 = vld [vmem:[#allocation6_spill] sm:$0xff] }
 0x3b8   :  { %v1958_v13 = vmax.f32 %v6124_v23, 0.0  ;;  %v2056_v18 = vmax.f32 %v1753_v8, 0.0  ;;  %v2060_v0 = vmax.f32 %v1755_v25, 0.0  ;;  %v1844_v5 = vadd.f32 %v1843_v17, %v1385_v33  ;;  %v4069_v23 = vld [vmem:[%s6861_s8 + $0x180] sm:$0xf] }
 0x3b9   :  { %7035 = vst [vmem:[#allocation33_spill] sm:$0xff] %v6162_v55  ;;  %v6168_v60 = vpack.c.bf16 %v2059_v9, %v2055_v32  ;;  %v2057_v28 = vmax.f32 %v1842_v42, 0.0  ;;  %v1954_v45 = vmax.f32 %v6090_v56, 0.0  ;;  %v1366_v56 = vperm.slane %v5852_v59, 3  ;;  %v4289_v42 = vld [vmem:[%s6861_s8 + $0x174] sm:$0xf] }
 0x3ba   :  { %7036 = vst [vmem:[#allocation31_spill] sm:$0xff] %v6164_v62  ;;  %v6171_v30 = vpack.c.bf16 %v2060_v0, %v2056_v18  ;;  %v2061_v1 = vmax.f32 %v1844_v5, 0.0  ;;  %v1962_v32 = vmax.f32 %v1871_v37, 0.0  ;;  %v4063_v37 = vld [vmem:[%s6861_s8 + $0x178] sm:$0xf0]  ;;  %v1370_v18 = vperm.slane %v5872_v43, 3 }
 0x3bb   :  { %7037 = vst [vmem:[#allocation34_spill] sm:$0xff] %v6168_v60  ;;  %v6173_v36 = vpack.c.bf16 %v1958_v13, %v1954_v45  ;;  %v4066_v13 = vor.u32 %v4289_v42, %v4063_v37  ;;  %v4257_v0 = vld [vmem:[%s6861_s8 + $0x74] sm:$0xf]  ;;  %v3935_v5 = vld [vmem:[%s6861_s8 + $0x78] sm:$0xf0] }
 0x3bc   :  { %v1872_v15 = vpop.f32.mrf.mxu3  ;;  %7038 = vst [vmem:[#allocation35_spill] sm:$0xff] %v6171_v30  ;;  %v6175_v50 = vpack.c.bf16 %v2061_v1, %v2057_v28  ;;  %v3938_v45 = vor.u32 %v4257_v0, %v3935_v5  ;;  %v4127_v1 = vld [vmem:[%s6861_s8 + $0x1f8] sm:$0xf0] }
 0x3bd   :  { %v1873_v51 = vadd.f32 %v1872_v15, %v5887_v31  ;;  %7039 = vst [vmem:[#allocation36_spill] sm:$0xff] %v6173_v36  ;;  %v4292_v31 = vld [vmem:[%s6861_s8 + $0x184] sm:$0xf0]  ;;  %3051 = vmatpush.bf16.msrb.mxu2 %v4066_v13 }
 0x3be   :  { %7040 = vst [vmem:[#allocation38_spill] sm:$0xff] %v6175_v50  ;;  %v4070_v33 = vor.u32 %v4292_v31, %v4069_v23  ;;  %v7043_v15 = vld [vmem:[#allocation7_spill] sm:$0xff]  ;;  %2873 = vmatpush.bf16.msrb.mxu0 %v3938_v45 }
 0x3bf   :  { %v1966_v53 = vmax.f32 %v1873_v51, 0.0  ;;  %v4305_v51 = vld [vmem:[%s6861_s8 + $0x1f4] sm:$0xf]  ;;  %v7044_v31 = vld [vmem:[#allocation11_spill] sm:$0xff] }
 0x3c0   :  { %2791 = vmatpush.bf16.msrb.mxu3 %v4070_v33  ;;  %v4130_v23 = vor.u32 %v4305_v51, %v4127_v1  ;;  %v4273_v33 = vld [vmem:[%s6861_s8 + $0xf4] sm:$0xf]  ;;  %v7049_v51 = vld [vmem:[#allocation17_spill] sm:$0xff] }
 0x3c1   :  { %1914 = vmatmul.bf16.gmra.mxu3 %v7041_v57  ;;  %v6189_v25 = vpack.c.bf16 %v1966_v53, %v1962_v32 }
 0x3c3   :  { %2550 = vmatmul.bf16.gmra.mxu0 %v5946_v10  ;;  %2639 = vmatmul.bf16.gmra.mxu1 %v5954_v6 }
 0x3c4   :  { %v1875_v52 = vpop.f32.mrf.mxu3  ;;  %2728 = vmatmul.bf16.gmra.mxu2 %v5958_v47  ;;  %3140 = vmatpush.bf16.msra.mxu3 %v4130_v23 }
 0x3c5   :  { %v1876_v24 = vadd.f32 %v1875_v52, %v1366_v56 }
 0x3c7   :  { %v1970_v52 = vmax.f32 %v1876_v24, 0.0  ;;  %v7048_v24 = vld [vmem:[#allocation8_spill] sm:$0xff] }
 0x3cc   :  { %v1877_v20 = vpop.f32.mrf.mxu3 }
 0x3cd   :  { %v1878_v26 = vadd.f32 %v1877_v20, %v1366_v56  ;;  %v7045_v20 = vld [vmem:[#allocation13_spill] sm:$0xff] }
 0x3cf   :  { %v1974_v43 = vmax.f32 %v1878_v26, 0.0 }
 0x3d1   :  { %1919 = vmatmul.bf16.gmra.mxu3 %v7042_v3  ;;  %v6225_v53 = vpack.c.bf16 %v1974_v43, %v1970_v52 }
 0x3d3   :  { %2555 = vmatmul.bf16.gmra.mxu0 %v5964_v48  ;;  %2644 = vmatmul.bf16.gmra.mxu1 %v5967_v7  ;;  %7046 = vst [vmem:[#allocation3_spill] sm:$0xff] %v6225_v53 }
 0x3d4   :  { %v1880_v8 = vpop.f32.mrf.mxu3  ;;  %2733 = vmatmul.bf16.gmra.mxu2 %v5974_v16 }
 0x3d5   :  { %v1881_v17 = vadd.f32 %v1880_v8, %v1366_v56  ;;  %v6232_v8 = vld [vmem:[%s6862_s9] sm:$0x3] }
 0x3d6   :  { %7047 = vst [vmem:[#allocation37_spill] sm:$0xff] %v6232_v8 }
 0x3d7   :  { %v1978_v43 = vmax.f32 %v1881_v17, 0.0  ;;  %v4055_v17 = vld [vmem:[%s6861_s8 + $0x168] sm:$0xf0] }
 0x3dc   :  { %v1882_v59 = vpop.f32.mrf.mxu3 }
 0x3dd   :  { %v1883_v9 = vadd.f32 %v1882_v59, %v1366_v56  ;;  %v3999_v56 = vld [vmem:[%s6861_s8 + $0xf8] sm:$0xf0]  ;;  %v6235_v59 = vperm.slane %v6232_v8, 0 }
 0x3de   :  { %v4002_v26 = vor.u32 %v4273_v33, %v3999_v56 }
 0x3df   :  { %v1982_v45 = vmax.f32 %v1883_v9, 0.0 }
 0x3e0   :  { %2962 = vmatpush.bf16.msrb.mxu1 %v4002_v26 }
 0x3e1   :  { %1924 = vmatmul.bf16.gmra.mxu3 %v7043_v15 }
 0x3e3   :  { %2560 = vmatmul.bf16.gmra.mxu0 %v5985_v38  ;;  %2649 = vmatmul.bf16.gmra.mxu1 %v7044_v31 }
 0x3e4   :  { %v1885_v28 = vpop.f32.mrf.mxu3  ;;  %2738 = vmatmul.bf16.gmra.mxu2 %v7045_v20 }
 0x3e5   :  { %v6214_v57 = vadd.f32 %v1885_v28, %v1370_v18  ;;  %v7050_v28 = vld [vmem:[#allocation21_spill] sm:$0xff] }
 0x3ec   :  { %v1887_v3 = vpop.f32.mrf.mxu3 }
 0x3ed   :  { %v6227_v32 = vadd.f32 %v1887_v3, %v1370_v18 }
 0x3ef   :  { %v1990_v8 = vmax.f32 %v6227_v32, 0.0 }
 0x3f0   :  { %v2526_v42 = vpop.f32.mrf.mxu0  ;;  %v2615_v37 = vpop.f32.mrf.mxu1 }
 0x3f1   :  { %1929 = vmatmul.bf16.gmra.mxu3 %v7048_v24  ;;  %v2527_v13 = vadd.f32 %v2526_v42, %v6235_v59  ;;  %v6249_v24 = vpack.c.bf16 %v1982_v45, %v1978_v43 }
 0x3f3   :  { %v2616_v5 = vadd.f32 %v2615_v37, %v2527_v13  ;;  %2565 = vmatmul.bf16.gmra.mxu0 %v6033_v54  ;;  %2654 = vmatmul.bf16.gmra.mxu1 %v7049_v51  ;;  %7051 = vst [vmem:[#allocation39_spill] sm:$0xff] %v6249_v24  ;;  %v4287_v37 = vld [vmem:[%s6861_s8 + $0x164] sm:$0xf] }
 0x3f4   :  { %v1890_v15 = vpop.f32.mrf.mxu3  ;;  %2743 = vmatmul.bf16.gmra.mxu2 %v7050_v28  ;;  %v4058_v9 = vor.u32 %v4287_v37, %v4055_v17  ;;  %v7052_v13 = vld [vmem:[#allocation10_spill] sm:$0xff] }
 0x3f5   :  { %v6239_v0 = vadd.f32 %v1890_v15, %v1370_v18  ;;  %v7055_v28 = vld [vmem:[#allocation22_spill] sm:$0xff] }
 0x3f6   :  { %3052 = vmatpush.bf16.msrb.mxu2 %v4058_v9  ;;  %v4271_v51 = vld [vmem:[%s6861_s8 + $0xe4] sm:$0xf] }
 0x3f7   :  { %v2704_v1 = vpop.f32.mrf.mxu2 }
 0x3f8   :  { %v6244_v23 = vadd.f32 %v2704_v1, %v2616_v5  ;;  %v2528_v33 = vpop.f32.mrf.mxu0  ;;  %v2617_v56 = vpop.f32.mrf.mxu1  ;;  %v7053_v5 = vld [vmem:[#allocation9_spill] sm:$0xff] }
 0x3f9   :  { %v2529_v52 = vadd.f32 %v2528_v33, %v6235_v59  ;;  %v1374_v1 = vperm.slane %v7053_v5, 3  ;;  %v4255_v33 = vld [vmem:[%s6861_s8 + $0x64] sm:$0xf] }
 0x3fb   :  { %v2618_v42 = vadd.f32 %v2617_v56, %v2529_v52  ;;  %v3927_v56 = vld [vmem:[%s6861_s8 + $0x68] sm:$0xf0]  ;;  %v4303_v52 = vld [vmem:[%s6861_s8 + $0x1e4] sm:$0xf] }
 0x3fc   :  { %v1892_v26 = vpop.f32.mrf.mxu3  ;;  %v3930_v17 = vor.u32 %v4255_v33, %v3927_v56  ;;  %v7056_v33 = vld [vmem:[#allocation12_spill] sm:$0xff] }
 0x3fd   :  { %v6247_v3 = vadd.f32 %v1892_v26, %v1370_v18 }
 0x3fe   :  { %2874 = vmatpush.bf16.msrb.mxu0 %v3930_v17 }
 0x3ff   :  { %v2706_v15 = vpop.f32.mrf.mxu2 }
 0x400   :  { %v6259_v18 = vadd.f32 %v2706_v15, %v2618_v42  ;;  %v2531_v45 = vpop.f32.mrf.mxu0  ;;  %v2620_v43 = vpop.f32.mrf.mxu1  ;;  %v4119_v42 = vld [vmem:[%s6861_s8 + $0x1e8] sm:$0xf0] }
 0x401   :  { %2792 = vmatmul.bf16.vlgmr.msrb.gmra.mxu3 %v7052_v13  ;;  %v2532_v26 = vadd.f32 %v2531_v45, %v6235_v59  ;;  %v4122_v15 = vor.u32 %v4303_v52, %v4119_v42  ;;  %v7054_v13 = vld [vmem:[#allocation18_spill] sm:$0xff]  ;;  %v3991_v45 = vld [vmem:[%s6861_s8 + $0xe8] sm:$0xf0] }
 0x402   :  { %v3994_v56 = vor.u32 %v4271_v51, %v3991_v45 }
 0x403   :  { %v2621_v5 = vadd.f32 %v2620_v43, %v2532_v26  ;;  %2570 = vmatmul.bf16.gmra.mxu0 %v7054_v13  ;;  %2659 = vmatmul.bf16.gmra.mxu1 %v7055_v28 }
 0x404   :  { %v1895_v37 = vpop.f32.mrf.mxu3  ;;  %2748 = vmatmul.bf16.gmra.mxu2 %v7056_v33  ;;  %3141 = vmatpush.bf16.msra.mxu3 %v4122_v15 }
 0x405   :  { %v6274_v9 = vadd.f32 %v1895_v37, %v1374_v1  ;;  %2963 = vmatpush.bf16.msrb.mxu1 %v3994_v56 }
 0x407   :  { %v2709_v52 = vpop.f32.mrf.mxu2 }
 0x408   :  { %v6285_v43 = vadd.f32 %v2709_v52, %v2621_v5  ;;  %v2533_v26 = vpop.f32.mrf.mxu0  ;;  %v2622_v37 = vpop.f32.mrf.mxu1  ;;  %v1986_v5 = vmax.f32 %v6214_v57, 0.0 }
 0x409   :  { %v2534_v42 = vadd.f32 %v2533_v26, %v6235_v59 }
 0x40b   :  { %v2623_v54 = vadd.f32 %v2622_v37, %v2534_v42 }
 0x40c   :  { %v1897_v28 = vpop.f32.mrf.mxu3 }
 0x40d   :  { %v6288_v13 = vadd.f32 %v1897_v28, %v1374_v1  ;;  %v6300_v28 = vpack.c.bf16 %v1990_v8, %v1986_v5  ;;  %v4047_v8 = vld [vmem:[%s6861_s8 + $0x158] sm:$0xf0] }
 0x40f   :  { %v2711_v33 = vpop.f32.mrf.mxu2  ;;  %7057 = vst [vmem:[#allocation40_spill] sm:$0xff] %v6300_v28 }
 0x410   :  { %v6292_v17 = vadd.f32 %v2711_v33, %v2623_v54  ;;  %v2536_v51 = vpop.f32.mrf.mxu0  ;;  %v2625_v15 = vpop.f32.mrf.mxu1 }
 0x411   :  { %2797 = vmatmul.bf16.gmra.mxu3 %v6118_v21  ;;  %v2537_v45 = vadd.f32 %v2536_v51, %v6235_v59 }
 0x413   :  { %v2626_v26 = vadd.f32 %v2625_v15, %v2537_v45  ;;  %2575 = vmatmul.bf16.gmra.mxu0 %v6076_v19  ;;  %2664 = vmatmul.bf16.gmra.mxu1 %v6080_v39  ;;  %v4285_v15 = vld [vmem:[%s6861_s8 + $0x154] sm:$0xf] }
 0x414   :  { %v1900_v56 = vpop.f32.mrf.mxu3  ;;  %2753 = vmatmul.bf16.gmra.mxu2 %v6092_v2  ;;  %v4050_v5 = vor.u32 %v4285_v15, %v4047_v8  ;;  %v4301_v15 = vld [vmem:[%s6861_s8 + $0x1d4] sm:$0xf] }
 0x415   :  { %v6296_v52 = vadd.f32 %v1900_v56, %v1374_v1  ;;  %v4269_v39 = vld [vmem:[%s6861_s8 + $0xd4] sm:$0xf] }
 0x416   :  { %3053 = vmatpush.bf16.msrb.mxu2 %v4050_v5 }
 0x417   :  { %v2714_v54 = vpop.f32.mrf.mxu2 }
 0x418   :  { %v6303_v32 = vadd.f32 %v2714_v54, %v2626_v26  ;;  %v2538_v33 = vpop.f32.mrf.mxu0  ;;  %v2627_v37 = vpop.f32.mrf.mxu1  ;;  %v7058_v26 = vld [vmem:[#allocation16_spill] sm:$0xff] }
 0x419   :  { %v2539_v57 = vadd.f32 %v2538_v33, %v6235_v59  ;;  %v1378_v54 = vperm.slane %v7058_v26, 3 }
 0x41b   :  { %v2628_v56 = vadd.f32 %v2627_v37, %v2539_v57  ;;  %v4253_v37 = vld [vmem:[%s6861_s8 + $0x54] sm:$0xf]  ;;  %v3919_v57 = vld [vmem:[%s6861_s8 + $0x58] sm:$0xf0] }
 0x41c   :  { %v1902_v42 = vpop.f32.mrf.mxu3  ;;  %v3922_v5 = vor.u32 %v4253_v37, %v3919_v57  ;;  %v1998_v37 = vmax.f32 %v6247_v3, 0.0 }
 0x41d   :  { %v6306_v51 = vadd.f32 %v1902_v42, %v1374_v1 }
 0x41e   :  { %2875 = vmatpush.bf16.msrb.mxu0 %v3922_v5 }
 0x41f   :  { %v2716_v45 = vpop.f32.mrf.mxu2 }
 0x420   :  { %v6316_v33 = vadd.f32 %v2716_v45, %v2628_v56  ;;  %v2541_v1 = vpop.f32.mrf.mxu0  ;;  %v2630_v42 = vpop.f32.mrf.mxu1  ;;  %v4111_v56 = vld [vmem:[%s6861_s8 + $0x1d8] sm:$0xf0] }
 0x421   :  { %2802 = vmatmul.bf16.gmra.mxu3 %v6173_v36  ;;  %v2542_v8 = vadd.f32 %v2541_v1, %v6235_v59  ;;  %v4114_v36 = vor.u32 %v4301_v15, %v4111_v56  ;;  %v3983_v1 = vld [vmem:[%s6861_s8 + $0xd8] sm:$0xf0] }
 0x422   :  { %v3986_v57 = vor.u32 %v4269_v39, %v3983_v1 }
 0x423   :  { %v2631_v2 = vadd.f32 %v2630_v42, %v2542_v8  ;;  %2580 = vmatmul.bf16.gmra.mxu0 %v6097_v14  ;;  %2669 = vmatmul.bf16.gmra.mxu1 %v6107_v22  ;;  %v1994_v42 = vmax.f32 %v6239_v0, 0.0 }
 0x424   :  { %v1905_v26 = vpop.f32.mrf.mxu3  ;;  %2758 = vmatmul.bf16.gmra.mxu2 %v6111_v40  ;;  %3142 = vmatpush.bf16.msra.mxu3 %v4114_v36 }
 0x425   :  { %v6331_v45 = vadd.f32 %v1905_v26, %v1378_v54  ;;  %2964 = vmatpush.bf16.msrb.mxu1 %v3986_v57  ;;  %v6346_v22 = vpack.c.bf16 %v1998_v37, %v1994_v42 }
 0x427   :  { %v2719_v15 = vpop.f32.mrf.mxu2  ;;  %7059 = vst [vmem:[#allocation43_spill] sm:$0xff] %v6346_v22 }
 0x428   :  { %v6344_v8 = vadd.f32 %v2719_v15, %v2631_v2  ;;  %v2543_v26 = vpop.f32.mrf.mxu0  ;;  %v2632_v56 = vpop.f32.mrf.mxu1 }
 0x429   :  { %v2544_v14 = vadd.f32 %v2543_v26, %v6235_v59 }
 0x42b   :  { %v2633_v3 = vadd.f32 %v2632_v56, %v2544_v14  ;;  %v2002_v14 = vmax.f32 %v6274_v9, 0.0  ;;  %v4039_v9 = vld [vmem:[%s6861_s8 + $0x148] sm:$0xf0] }
 0x42c   :  { %v1907_v19 = vpop.f32.mrf.mxu3 }
 0x42d   :  { %v6349_v21 = vadd.f32 %v1907_v19, %v1378_v54  ;;  %v2006_v19 = vmax.f32 %v6288_v13, 0.0  ;;  %v4283_v13 = vld [vmem:[%s6861_s8 + $0x144] sm:$0xf] }
 0x42f   :  { %v2721_v39 = vpop.f32.mrf.mxu2 }
 0x430   :  { %v6352_v36 = vadd.f32 %v2721_v39, %v2633_v3  ;;  %v2546_v0 = vpop.f32.mrf.mxu0  ;;  %v2635_v5 = vpop.f32.mrf.mxu1  ;;  %v6364_v3 = vpack.c.bf16 %v2006_v19, %v2002_v14  ;;  %v6377_v19 = vperm.slane %v6065_v61, 3 }
 0x431   :  { %2807 = vmatmul.bf16.gmra.mxu3 %v6189_v25  ;;  %v2547_v2 = vadd.f32 %v2546_v0, %v6235_v59 }
 0x432   :  { %7060 = vst [vmem:[#allocation41_spill] sm:$0xff] %v6364_v3 }
 0x433   :  { %v2636_v37 = vadd.f32 %v2635_v5, %v2547_v2  ;;  %2585 = vmatmul.bf16.gmra.mxu0 %v6120_v11  ;;  %2674 = vmatmul.bf16.gmra.mxu1 %v6126_v4 }
 0x434   :  { %v1910_v1 = vpop.f32.mrf.mxu3  ;;  %2763 = vmatmul.bf16.gmra.mxu2 %v6130_v41 }
 0x435   :  { %v6355_v57 = vadd.f32 %v1910_v1, %v1378_v54  ;;  %v4042_v1 = vor.u32 %v4283_v13, %v4039_v9 }
 0x437   :  { %v2724_v42 = vpop.f32.mrf.mxu2  ;;  %3054 = vmatpush.bf16.msrb.mxu2 %v4042_v1 }
 0x438   :  { %v6362_v15 = vadd.f32 %v2724_v42, %v2636_v37  ;;  %v2548_v26 = vpop.f32.mrf.mxu0  ;;  %v2637_v56 = vpop.f32.mrf.mxu1 }
 0x439   :  { %v2549_v39 = vadd.f32 %v2548_v26, %v6235_v59  ;;  %v4251_v26 = vld [vmem:[%s6861_s8 + $0x44] sm:$0xf] }
 0x43b   :  { %v2638_v2 = vadd.f32 %v2637_v56, %v2549_v39  ;;  %v3911_v56 = vld [vmem:[%s6861_s8 + $0x48] sm:$0xf0]  ;;  %v4299_v39 = vld [vmem:[%s6861_s8 + $0x1c4] sm:$0xf] }
 0x43c   :  { %v1912_v0 = vpop.f32.mrf.mxu3  ;;  %v3914_v13 = vor.u32 %v4251_v26, %v3911_v56  ;;  %v2014_v26 = vmax.f32 %v6306_v51, 0.0  ;;  %v3967_v51 = vld [vmem:[%s6861_s8 + $0xb8] sm:$0xf0] }
 0x43d   :  { %v6367_v5 = vadd.f32 %v1912_v0, %v1378_v54 }
 0x43e   :  { %2876 = vmatpush.bf16.msrb.mxu0 %v3914_v13  ;;  %v2010_v13 = vmax.f32 %v6296_v52, 0.0 }
 0x43f   :  { %v2726_v37 = vpop.f32.mrf.mxu2 }
 0x440   :  { %v6379_v14 = vadd.f32 %v2726_v37, %v2638_v2  ;;  %v2551_v54 = vpop.f32.mrf.mxu0  ;;  %v2640_v42 = vpop.f32.mrf.mxu1  ;;  %v4103_v2 = vld [vmem:[%s6861_s8 + $0x1c8] sm:$0xf0] }
 0x441   :  { %2812 = vmatmul.bf16.gmra.mxu3 %v6225_v53  ;;  %v2552_v61 = vadd.f32 %v2551_v54, %v6235_v59  ;;  %v4106_v1 = vor.u32 %v4299_v39, %v4103_v2  ;;  %v4267_v53 = vld [vmem:[%s6861_s8 + $0xc4] sm:$0xf]  ;;  %v3975_v54 = vld [vmem:[%s6861_s8 + $0xc8] sm:$0xf0]  ;;  %v3903_v39 = vld [vmem:[%s6861_s8 + $0x38] sm:$0xf0] }
 0x442   :  { %v3978_v56 = vor.u32 %v4267_v53, %v3975_v54  ;;  %v4281_v53 = vld [vmem:[%s6861_s8 + $0x134] sm:$0xf] }
 0x443   :  { %v2641_v37 = vadd.f32 %v2640_v42, %v2552_v61  ;;  %2590 = vmatmul.bf16.gmra.mxu0 %v6137_v58  ;;  %2679 = vmatmul.bf16.gmra.mxu1 %v6140_v44  ;;  %v4249_v42 = vld [vmem:[%s6861_s8 + $0x34] sm:$0xf]  ;;  %v6428_v58 = vpack.c.bf16 %v2014_v26, %v2010_v13  ;;  %v4263_v26 = vld [vmem:[%s6861_s8 + $0xa4] sm:$0xf] }
 0x444   :  { %v1915_v0 = vpop.f32.mrf.mxu3  ;;  %2768 = vmatmul.bf16.gmra.mxu2 %v6143_v27  ;;  %3143 = vmatpush.bf16.msra.mxu3 %v4106_v1  ;;  %v3906_v61 = vor.u32 %v4249_v42, %v3903_v39  ;;  %v4031_v1 = vld [vmem:[%s6861_s8 + $0x138] sm:$0xf0] }
 0x445   :  { %v6395_v9 = vadd.f32 %v1915_v0, %v6377_v19  ;;  %v4265_v0 = vld [vmem:[%s6861_s8 + $0xb4] sm:$0xf]  ;;  %2965 = vmatpush.bf16.msrb.mxu1 %v3978_v56  ;;  %v4034_v42 = vor.u32 %v4281_v53, %v4031_v1  ;;  %v3887_v53 = vld [vmem:[%s6861_s8 + $0x18] sm:$0xf0] }
 0x446   :  { %v3970_v2 = vor.u32 %v4265_v0, %v3967_v51  ;;  %2877 = vmatpush.bf16.msrb.mxu0 %v3906_v61  ;;  %v4247_v0 = vld [vmem:[%s6861_s8 + $0x24] sm:$0xf]  ;;  %v4023_v61 = vld [vmem:[%s6861_s8 + $0x128] sm:$0xf0]  ;;  %v4245_v51 = vld [vmem:[%s6861_s8 + $0x14] sm:$0xf] }
 0x447   :  { %v2729_v54 = vpop.f32.mrf.mxu2  ;;  %3055 = vmatpush.bf16.msrb.mxu2 %v4034_v42  ;;  %v4261_v1 = vld [vmem:[%s6861_s8 + $0x94] sm:$0xf] }
 0x448   :  { %v6426_v39 = vadd.f32 %v2729_v54, %v2641_v37  ;;  %v2553_v27 = vpop.f32.mrf.mxu0  ;;  %v2642_v44 = vpop.f32.mrf.mxu1  ;;  %v3895_v37 = vld [vmem:[%s6861_s8 + $0x28] sm:$0xf0]  ;;  %v3951_v54 = vld [vmem:[%s6861_s8 + $0x98] sm:$0xf0]  ;;  %v4277_v42 = vld [vmem:[%s6861_s8 + $0x114] sm:$0xf] }
 0x449   :  { %v2554_v41 = vadd.f32 %v2553_v27, %v6235_v59  ;;  %2966 = vmatpush.bf16.msrb.mxu1 %v3970_v2  ;;  %v3898_v27 = vor.u32 %v4247_v0, %v3895_v37  ;;  %v3890_v2 = vor.u32 %v4245_v51, %v3887_v53  ;;  %v4015_v37 = vld [vmem:[%s6861_s8 + $0x118] sm:$0xf0] }
 0x44a   :  { %v4018_v53 = vor.u32 %v4277_v42, %v4015_v37  ;;  %v4275_v42 = vld [vmem:[%s6861_s8 + $0x104] sm:$0xf]  ;;  %v4007_v37 = vld [vmem:[%s6861_s8 + $0x108] sm:$0xf0] }
 0x44b   :  { %v2643_v56 = vadd.f32 %v2642_v44, %v2554_v41  ;;  %v4279_v41 = vld [vmem:[%s6861_s8 + $0x124] sm:$0xf]  ;;  %2878 = vmatpush.bf16.msrb.mxu0 %v3898_v27 }
 0x44c   :  { %v1917_v4 = vpop.f32.mrf.mxu3  ;;  %v4026_v13 = vor.u32 %v4279_v41, %v4023_v61  ;;  %v3954_v41 = vor.u32 %v4261_v1, %v3951_v54  ;;  %v2022_v1 = vmax.f32 %v6349_v21, 0.0  ;;  %v3943_v54 = vld [vmem:[%s6861_s8 + $0x88] sm:$0xf0]  ;;  %v2018_v21 = vmax.f32 %v6331_v45, 0.0 }
 0x44d   :  { %v6432_v52 = vadd.f32 %v1917_v4, %v6377_v19  ;;  %v3959_v4 = vld [vmem:[%s6861_s8 + $0xa8] sm:$0xf0] }
 0x44e   :  { %v3962_v44 = vor.u32 %v4263_v26, %v3959_v4  ;;  %3056 = vmatpush.bf16.msrb.mxu2 %v4026_v13  ;;  %v4259_v13 = vld [vmem:[%s6861_s8 + $0x84] sm:$0xf] }
 0x44f   :  { %v2731_v0 = vpop.f32.mrf.mxu2  ;;  %2879 = vmatpush.bf16.msrb.mxu0 %v3890_v2 }
 0x450   :  { %2967 = vmatpush.bf16.msrb.mxu1 %v3962_v44  ;;  %v6471_v26 = vadd.f32 %v2731_v0, %v2643_v56  ;;  %v2556_v27 = vpop.f32.mrf.mxu0  ;;  %v2645_v4 = vpop.f32.mrf.mxu1  ;;  %v4243_v56 = vld [vmem:[%s6861_s8 + $0x4] sm:$0xf]  ;;  %v3879_v44 = vld [vmem:[%s6861_s8 + $0x8] sm:$0xf0]  ;;  %v3946_v0 = vor.u32 %v4259_v13, %v3943_v54 }
 0x451   :  { %2817 = vmatmul.bf16.gmra.mxu3 %v6249_v24  ;;  %v2557_v61 = vadd.f32 %v2556_v27, %v6235_v59  ;;  %v3882_v2 = vor.u32 %v4243_v56, %v3879_v44  ;;  %v4010_v27 = vor.u32 %v4275_v42, %v4007_v37  ;;  %v6502_v56 = vpack.c.bf16 %v2022_v1, %v2018_v21  ;;  %v4297_v1 = vld [vmem:[%s6861_s8 + $0x1b4] sm:$0xf] }
 0x452   :  { %3057 = vmatpush.bf16.msrb.mxu2 %v4018_v53  ;;  %v1386_v37 = vperm.slane %v6145_v49, 3  ;;  %v2030_v49 = vmax.f32 %v6367_v5, 0.0 }
 0x453   :  { %v2646_v11 = vadd.f32 %v2645_v4, %v2557_v61  ;;  %2595 = vmatmul.bf16.gmra.mxu0 %v6160_v46  ;;  %2684 = vmatmul.bf16.gmra.mxu1 %v6162_v55  ;;  %v7067_v55 = vld [vmem:[#allocation52_spill] sm:$0xff] }
 0x454   :  { %v1920_v51 = vpop.f32.mrf.mxu3  ;;  %2773 = vmatmul.bf16.gmra.mxu2 %v6164_v62  ;;  %2968 = vmatpush.bf16.msrb.mxu1 %v3954_v41 }
 0x455   :  { %v6475_v24 = vadd.f32 %v1920_v51, %v6377_v19  ;;  %2880 = vmatpush.bf16.msrb.mxu0 %v3882_v2 }
 0x456   :  { %3058 = vmatpush.bf16.msrb.mxu2 %v4010_v27 }
 0x457   :  { %v2734_v4 = vpop.f32.mrf.mxu2 }
 0x458   :  { %v6500_v41 = vadd.f32 %v2734_v4, %v2646_v11  ;;  %v2558_v61 = vpop.f32.mrf.mxu0  ;;  %v2647_v51 = vpop.f32.mrf.mxu1  ;;  %2969 = vmatpush.bf16.msrb.mxu1 %v3946_v0  ;;  %v4095_v0 = vld [vmem:[%s6861_s8 + $0x1b8] sm:$0xf0] }
 0x459   :  { %v2559_v44 = vadd.f32 %v2558_v61, %v6235_v59  ;;  %v4098_v27 = vor.u32 %v4297_v1, %v4095_v0 }
 0x45b   :  { %v2648_v54 = vadd.f32 %v2647_v51, %v2559_v44  ;;  %3144 = vmatpush.bf16.msra.mxu3 %v4098_v27  ;;  %v2026_v51 = vmax.f32 %v6355_v57, 0.0 }
 0x45c   :  { %v1922_v53 = vpop.f32.mrf.mxu3 }
 0x45d   :  { %v6506_v13 = vadd.f32 %v1922_v53, %v6377_v19 }
 0x45f   :  { %v2736_v45 = vpop.f32.mrf.mxu2 }
 0x460   :  { %v6509_v2 = vadd.f32 %v2736_v45, %v2648_v54  ;;  %v2561_v11 = vpop.f32.mrf.mxu0  ;;  %v2650_v42 = vpop.f32.mrf.mxu1 }
 0x461   :  { %2822 = vmatmul.bf16.gmra.mxu3 %v6300_v28  ;;  %v2562_v19 = vadd.f32 %v2561_v11, %v6235_v59  ;;  %v6528_v11 = vpack.c.bf16 %v2030_v49, %v2026_v51  ;;  %v7061_v51 = vld [vmem:[#allocation46_spill] sm:$0xff] }
 0x463   :  { %v2651_v61 = vadd.f32 %v2650_v42, %v2562_v19  ;;  %2600 = vmatmul.bf16.gmra.mxu0 %v6168_v60  ;;  %2689 = vmatmul.bf16.gmra.mxu1 %v6171_v30 }
 0x464   :  { %v1925_v21 = vpop.f32.mrf.mxu3  ;;  %2778 = vmatmul.bf16.gmra.mxu2 %v6175_v50 }
 0x465   :  { %v6519_v4 = vadd.f32 %v1925_v21, %v1386_v37 }
 0x467   :  { %v2739_v44 = vpop.f32.mrf.mxu2 }
 0x468   :  { %v6526_v53 = vadd.f32 %v2739_v44, %v2651_v61  ;;  %v2563_v54 = vpop.f32.mrf.mxu0  ;;  %v2652_v45 = vpop.f32.mrf.mxu1 }
 0x469   :  { %v2564_v42 = vadd.f32 %v2563_v54, %v6235_v59  ;;  %v7062_v54 = vld [vmem:[#allocation47_spill] sm:$0xff] }
 0x46b   :  { %v2653_v19 = vadd.f32 %v2652_v45, %v2564_v42  ;;  %v7063_v45 = vld [vmem:[#allocation48_spill] sm:$0xff]  ;;  %v2034_v42 = vmax.f32 %v6395_v9, 0.0 }
 0x46c   :  { %v1927_v1 = vpop.f32.mrf.mxu3 }
 0x46d   :  { %v6531_v0 = vadd.f32 %v1927_v1, %v1386_v37  ;;  %v2038_v1 = vmax.f32 %v6432_v52, 0.0 }
 0x46f   :  { %v2741_v5 = vpop.f32.mrf.mxu2 }
 0x470   :  { %v6534_v21 = vadd.f32 %v2741_v5, %v2653_v19  ;;  %v2566_v27 = vpop.f32.mrf.mxu0  ;;  %v2655_v57 = vpop.f32.mrf.mxu1 }
 0x471   :  { %2827 = vmatmul.bf16.gmra.mxu3 %v6346_v22  ;;  %v2567_v61 = vadd.f32 %v2566_v27, %v6235_v59  ;;  %v6546_v27 = vpack.c.bf16 %v2038_v1, %v2034_v42  ;;  %v7064_v42 = vld [vmem:[#allocation49_spill] sm:$0xff] }
 0x473   :  { %v2656_v49 = vadd.f32 %v2655_v57, %v2567_v61  ;;  %2881 = vmatmul.bf16.vlgmr.msrb.gmra.mxu0 %v7061_v51  ;;  %2970 = vmatmul.bf16.vlgmr.msrb.gmra.mxu1 %v7062_v54 }
 0x474   :  { %v1930_v44 = vpop.f32.mrf.mxu3  ;;  %3059 = vmatmul.bf16.vlgmr.msrb.gmra.mxu2 %v7063_v45 }
 0x475   :  { %v6537_v50 = vadd.f32 %v1930_v44, %v1386_v37 }
 0x477   :  { %v2744_v19 = vpop.f32.mrf.mxu2 }
 0x478   :  { %v6544_v5 = vadd.f32 %v2744_v19, %v2656_v49  ;;  %v2568_v22 = vpop.f32.mrf.mxu0  ;;  %v2657_v30 = vpop.f32.mrf.mxu1 }
 0x479   :  { %v2569_v44 = vadd.f32 %v2568_v22, %v6235_v59  ;;  %v7065_v22 = vld [vmem:[#allocation50_spill] sm:$0xff] }
 0x47b   :  { %v2658_v51 = vadd.f32 %v2657_v30, %v2569_v44  ;;  %v7066_v30 = vld [vmem:[#allocation51_spill] sm:$0xff]  ;;  %v2042_v44 = vmax.f32 %v6475_v24, 0.0 }
 0x47c   :  { %v1932_v57 = vpop.f32.mrf.mxu3 }
 0x47d   :  { %v6549_v61 = vadd.f32 %v1932_v57, %v1386_v37  ;;  %v2046_v37 = vmax.f32 %v6506_v13, 0.0 }
 0x47f   :  { %v2746_v52 = vpop.f32.mrf.mxu2 }
 0x480   :  { %v6552_v54 = vadd.f32 %v2746_v52, %v2658_v51  ;;  %v2571_v45 = vpop.f32.mrf.mxu0  ;;  %v2660_v9 = vpop.f32.mrf.mxu1 }
 0x481   :  { %2832 = vmatmul.bf16.gmra.mxu3 %v6364_v3  ;;  %v2572_v49 = vadd.f32 %v2571_v45, %v6235_v59  ;;  %v4087_v45 = vld [vmem:[%s6861_s8 + $0x1a8] sm:$0xf0] }
 0x483   :  { %v2661_v1 = vadd.f32 %v2660_v9, %v2572_v49  ;;  %2886 = vmatmul.bf16.gmra.mxu0 %v7064_v42  ;;  %2975 = vmatmul.bf16.gmra.mxu1 %v7065_v22  ;;  %v6569_v9 = vpack.c.bf16 %v2046_v37, %v2042_v44 }
 0x484   :  { %v2793_v19 = vpop.f32.mrf.mxu3  ;;  %3064 = vmatmul.bf16.gmra.mxu2 %v7066_v30 }
 0x485   :  { %v2794_v60 = vadd.f32 %v2793_v19, %v6244_v23  ;;  %v4295_v23 = vld [vmem:[%s6861_s8 + $0x1a4] sm:$0xf] }
 0x486   :  { %v4090_v19 = vor.u32 %v4295_v23, %v4087_v45  ;;  %v7068_v23 = vld [vmem:[#allocation53_spill] sm:$0xff]  ;;  %v2050_v45 = vmax.f32 %v6519_v4, 0.0 }
 0x487   :  { %v2749_v57 = vpop.f32.mrf.mxu2 }
 0x488   :  { %v6561_v51 = vadd.f32 %v2749_v57, %v2661_v1  ;;  %v2573_v52 = vpop.f32.mrf.mxu0  ;;  %v2662_v3 = vpop.f32.mrf.mxu1  ;;  %3145 = vmatpush.bf16.msra.mxu3 %v4090_v19 }
 0x489   :  { %v2574_v13 = vadd.f32 %v2573_v52, %v6235_v59 }
 0x48b   :  { %v2663_v1 = vadd.f32 %v2662_v3, %v2574_v13  ;;  %v7069_v3 = vld [vmem:[#allocation54_spill] sm:$0xff] }
 0x48c   :  { %v2795_v49 = vpop.f32.mrf.mxu3 }
 0x48d   :  { %v2796_v24 = vadd.f32 %v2795_v49, %v6259_v18  ;;  %v2054_v18 = vmax.f32 %v6531_v0, 0.0 }
 0x48f   :  { %v3229_v42 = vmax.f32 %v2794_v60, %v2796_v24  ;;  %v2751_v22 = vpop.f32.mrf.mxu2 }
 0x490   :  { %v6574_v30 = vadd.f32 %v2751_v22, %v2663_v1  ;;  %v2576_v57 = vpop.f32.mrf.mxu0  ;;  %v2665_v28 = vpop.f32.mrf.mxu1  ;;  %v6585_v1 = vpack.c.bf16 %v2054_v18, %v2050_v45  ;;  %v2058_v18 = vmax.f32 %v6537_v50, 0.0 }
 0x491   :  { %2837 = vmatmul.bf16.gmra.mxu3 %v6428_v58  ;;  %v2577_v62 = vadd.f32 %v2576_v57, %v6235_v59 }
 0x493   :  { %v2666_v52 = vadd.f32 %v2665_v28, %v2577_v62  ;;  %2891 = vmatmul.bf16.gmra.mxu0 %v7067_v55  ;;  %2980 = vmatmul.bf16.gmra.mxu1 %v7068_v23 }
 0x494   :  { %v2798_v37 = vpop.f32.mrf.mxu3  ;;  %3069 = vmatmul.bf16.gmra.mxu2 %v7069_v3 }
 0x495   :  { %v2799_v44 = vadd.f32 %v2798_v37, %v6285_v43 }
 0x497   :  { %v3230_v60 = vmax.f32 %v3229_v42, %v2799_v44  ;;  %v2754_v13 = vpop.f32.mrf.mxu2 }
 0x498   :  { %v6583_v49 = vadd.f32 %v2754_v13, %v2666_v52  ;;  %v2578_v19 = vpop.f32.mrf.mxu0  ;;  %v2667_v24 = vpop.f32.mrf.mxu1 }
 0x499   :  { %v2579_v62 = vadd.f32 %v2578_v19, %v6235_v59 }
 0x49b   :  { %v2668_v28 = vadd.f32 %v2667_v24, %v2579_v62 }
 0x49c   :  { %v2800_v43 = vpop.f32.mrf.mxu3 }
 0x49d   :  { %v2801_v55 = vadd.f32 %v2800_v43, %v6292_v17  ;;  %v2062_v17 = vmax.f32 %v6549_v61, 0.0 }
 0x49f   :  { %v3231_v22 = vmax.f32 %v3230_v60, %v2801_v55  ;;  %v2756_v0 = vpop.f32.mrf.mxu2  ;;  %v6601_v19 = vpack.c.bf16 %v2062_v17, %v2058_v18 }
 0x4a0   :  { %v6590_v42 = vadd.f32 %v2756_v0, %v2668_v28  ;;  %v2581_v4 = vpop.f32.mrf.mxu0  ;;  %v2670_v57 = vpop.f32.mrf.mxu1 }
 0x4a1   :  { %2842 = vmatmul.bf16.gmra.mxu3 %v6502_v56  ;;  %v2582_v37 = vadd.f32 %v2581_v4, %v6235_v59 }
 0x4a3   :  { %v2671_v23 = vadd.f32 %v2670_v57, %v2582_v37  ;;  %2896 = vmatmul.bf16.gmra.mxu0 %v5942_v12  ;;  %2985 = vmatmul.bf16.gmra.mxu1 %v6012_v63  ;;  %v4293_v63 = vld [vmem:[%s6861_s8 + $0x194] sm:$0xf] }
 0x4a4   :  { %v2803_v44 = vpop.f32.mrf.mxu3  ;;  %3074 = vmatmul.bf16.gmra.mxu2 %v6058_v35  ;;  %v4079_v35 = vld [vmem:[%s6861_s8 + $0x198] sm:$0xf0] }
 0x4a5   :  { %v2804_v52 = vadd.f32 %v2803_v44, %v6303_v32  ;;  %v4082_v61 = vor.u32 %v4293_v63, %v4079_v35  ;;  %v3232_v44 = vrot.slane %v3231_v22, 4 }
 0x4a7   :  { %v2759_v60 = vpop.f32.mrf.mxu2  ;;  %3146 = vmatpush.bf16.msra.mxu3 %v4082_v61  ;;  %v3233_v18 = vmax.f32 %v3231_v22, %v3232_v44 }
 0x4a8   :  { %v6599_v3 = vadd.f32 %v2759_v60, %v2671_v23  ;;  %v2583_v45 = vpop.f32.mrf.mxu0  ;;  %v2672_v13 = vpop.f32.mrf.mxu1  ;;  %v7070_v23 = vld [vmem:[#allocation55_spill] sm:$0xff] }
 0x4a9   :  { %v2584_v32 = vadd.f32 %v2583_v45, %v6235_v59  ;;  %v3234_v63 = vrot.slane %v3233_v18, 2 }
 0x4ab   :  { %v2673_v50 = vadd.f32 %v2672_v13, %v2584_v32 }
 0x4ac   :  { %v2805_v24 = vpop.f32.mrf.mxu3 }
 0x4ad   :  { %v2806_v12 = vadd.f32 %v2805_v24, %v6316_v33 }
 0x4af   :  { %v3247_v62 = vmax.f32 %v2804_v52, %v2806_v12  ;;  %v2761_v43 = vpop.f32.mrf.mxu2 }
 0x4b0   :  { %v6612_v55 = vadd.f32 %v2761_v43, %v2673_v50  ;;  %v2586_v28 = vpop.f32.mrf.mxu0  ;;  %v2675_v0 = vpop.f32.mrf.mxu1  ;;  %v3235_v50 = vmax.f32 %v3233_v18, %v3234_v63 }
 0x4b1   :  { %2847 = vmatmul.bf16.gmra.mxu3 %v6528_v11  ;;  %v2587_v33 = vadd.f32 %v2586_v28, %v6235_v59 }
 0x4b3   :  { %v2676_v37 = vadd.f32 %v2675_v0, %v2587_v33  ;;  %2901 = vmatmul.bf16.gmra.mxu0 %v5923_v29  ;;  %2990 = vmatmul.bf16.gmra.mxu1 %v5928_v34 }
 0x4b4   :  { %v2808_v4 = vpop.f32.mrf.mxu3  ;;  %3079 = vmatmul.bf16.gmra.mxu2 %v7070_v23 }
 0x4b5   :  { %v2809_v57 = vadd.f32 %v2808_v4, %v6344_v8 }
 0x4b7   :  { %v3248_v52 = vmax.f32 %v3247_v62, %v2809_v57  ;;  %v2764_v17 = vpop.f32.mrf.mxu2  ;;  %v3236_v57 = vrot.slane %v3235_v50, 1 }
 0x4b8   :  { %v6619_v60 = vadd.f32 %v2764_v17, %v2676_v37  ;;  %v2588_v45 = vpop.f32.mrf.mxu0  ;;  %v2677_v13 = vpop.f32.mrf.mxu1 }
 0x4b9   :  { %v2589_v32 = vadd.f32 %v2588_v45, %v6235_v59  ;;  %v3237_v23 = vmax.f32 %v3235_v50, %v3236_v57 }
 0x4bb   :  { %v2678_v12 = vadd.f32 %v2677_v13, %v2589_v32 }
 0x4bc   :  { %v2810_v24 = vpop.f32.mrf.mxu3 }
 0x4bd   :  { %v2811_v8 = vadd.f32 %v2810_v24, %v6352_v36 }
 0x4bf   :  { %v3249_v29 = vmax.f32 %v3248_v52, %v2811_v8  ;;  %v2766_v34 = vpop.f32.mrf.mxu2 }
 0x4c0   :  { %v6624_v62 = vadd.f32 %v2766_v34, %v2678_v12  ;;  %v2591_v22 = vpop.f32.mrf.mxu0  ;;  %v2680_v43 = vpop.f32.mrf.mxu1 }
 0x4c1   :  { %v3250_v35 = vrot.slane %v3249_v29, 4  ;;  %2852 = vmatmul.bf16.gmra.mxu3 %v6546_v27  ;;  %v2592_v28 = vadd.f32 %v2591_v22, %v6235_v59 }
 0x4c3   :  { %v3251_v61 = vmax.f32 %v3249_v29, %v3250_v35  ;;  %v2681_v36 = vadd.f32 %v2680_v43, %v2592_v28  ;;  %2906 = vmatmul.bf16.gmra.mxu0 %v5946_v10  ;;  %2995 = vmatmul.bf16.gmra.mxu1 %v5954_v6  ;;  %v4291_v6 = vld [vmem:[%s6861_s8 + $0x184] sm:$0xf] }
 0x4c4   :  { %v2813_v0 = vpop.f32.mrf.mxu3  ;;  %3084 = vmatmul.bf16.gmra.mxu2 %v5958_v47  ;;  %v4071_v47 = vld [vmem:[%s6861_s8 + $0x188] sm:$0xf0] }
 0x4c5   :  { %v3252_v33 = vrot.slane %v3251_v61, 2  ;;  %v2814_v4 = vadd.f32 %v2813_v0, %v6362_v15  ;;  %v4074_v12 = vor.u32 %v4291_v6, %v4071_v47 }
 0x4c7   :  { %v3253_v37 = vmax.f32 %v3251_v61, %v3252_v33  ;;  %v2769_v52 = vpop.f32.mrf.mxu2  ;;  %3147 = vmatpush.bf16.msra.mxu3 %v4074_v12 }
 0x4c8   :  { %v6631_v18 = vadd.f32 %v2769_v52, %v2681_v36  ;;  %v2593_v45 = vpop.f32.mrf.mxu0  ;;  %v2682_v13 = vpop.f32.mrf.mxu1 }
 0x4c9   :  { %v3254_v44 = vrot.slane %v3253_v37, 1  ;;  %v2594_v32 = vadd.f32 %v2593_v45, %v6235_v59 }
 0x4cb   :  { %v3255_v17 = vmax.f32 %v3253_v37, %v3254_v44  ;;  %v2683_v8 = vadd.f32 %v2682_v13, %v2594_v32 }
 0x4cc   :  { %v2815_v15 = vpop.f32.mrf.mxu3 }
 0x4cd   :  { %v3389_v24 = vsel %vm828_vm3, %v3255_v17, %v3237_v23  ;;  %v2816_v10 = vadd.f32 %v2815_v15, %v6379_v14 }
 0x4cf   :  { %v3265_v63 = vmax.f32 %v2814_v4, %v2816_v10  ;;  %v2771_v29 = vpop.f32.mrf.mxu2 }
 0x4d0   :  { %v6643_v35 = vadd.f32 %v2771_v29, %v2683_v8  ;;  %v2596_v34 = vpop.f32.mrf.mxu0  ;;  %v2685_v50 = vpop.f32.mrf.mxu1 }
 0x4d1   :  { %2857 = vmatmul.bf16.gmra.mxu3 %v6569_v9  ;;  %v2597_v14 = vadd.f32 %v2596_v34, %v6235_v59 }
 0x4d3   :  { %v2686_v43 = vadd.f32 %v2685_v50, %v2597_v14  ;;  %2911 = vmatmul.bf16.gmra.mxu0 %v5964_v48  ;;  %3000 = vmatmul.bf16.gmra.mxu1 %v5967_v7 }
 0x4d4   :  { %v2818_v61 = vpop.f32.mrf.mxu3  ;;  %3089 = vmatmul.bf16.gmra.mxu2 %v5974_v16 }
 0x4d5   :  { %v2819_v22 = vadd.f32 %v2818_v61, %v6426_v39 }
 0x4d7   :  { %v3266_v28 = vmax.f32 %v3265_v63, %v2819_v22  ;;  %v2774_v0 = vpop.f32.mrf.mxu2 }
 0x4d8   :  { %v6650_v33 = vadd.f32 %v2774_v0, %v2686_v43  ;;  %v2598_v4 = vpop.f32.mrf.mxu0  ;;  %v2687_v36 = vpop.f32.mrf.mxu1 }
 0x4d9   :  { %v2599_v57 = vadd.f32 %v2598_v4, %v6235_v59 }
 0x4db   :  { %v2688_v52 = vadd.f32 %v2687_v36, %v2599_v57 }
 0x4dc   :  { %v2820_v37 = vpop.f32.mrf.mxu3 }
 0x4dd   :  { %v2821_v44 = vadd.f32 %v2820_v37, %v6471_v26  ;;  %v7072_v37 = vld [vmem:[#allocation20_spill] sm:$0xff] }
 0x4df   :  { %v3267_v39 = vmax.f32 %v3266_v28, %v2821_v44  ;;  %v2776_v48 = vpop.f32.mrf.mxu2 }
 0x4e0   :  { %v6655_v17 = vadd.f32 %v2776_v48, %v2688_v52  ;;  %v2601_v16 = vpop.f32.mrf.mxu0  ;;  %v2690_v45 = vpop.f32.mrf.mxu1  ;;  %v7074_v52 = vld [vmem:[#allocation21_spill] sm:$0xff] }
 0x4e1   :  { %v3268_v23 = vrot.slane %v3267_v39, 4  ;;  %2862 = vmatmul.bf16.gmra.mxu3 %v6585_v1  ;;  %v2602_v13 = vadd.f32 %v2601_v16, %v6235_v59 }
 0x4e3   :  { %v3269_v7 = vmax.f32 %v3267_v39, %v3268_v23  ;;  %v2691_v6 = vadd.f32 %v2690_v45, %v2602_v13  ;;  %2916 = vmatmul.bf16.gmra.mxu0 %v5985_v38  ;;  %3005 = vmatmul.bf16.gmra.mxu1 %v7044_v31  ;;  %v7071_v31 = vld [vmem:[#allocation37_spill] sm:$0xff] }
 0x4e4   :  { %v2823_v32 = vpop.f32.mrf.mxu3  ;;  %3094 = vmatmul.bf16.gmra.mxu2 %v7045_v20  ;;  %v6668_v43 = vperm.slane %v7071_v31, 1  ;;  %v7078_v31 = vld [vmem:[#allocation12_spill] sm:$0xff] }
 0x4e5   :  { %v3270_v15 = vrot.slane %v3269_v7, 2  ;;  %v2824_v10 = vadd.f32 %v2823_v32, %v6500_v41 }
 0x4e7   :  { %v3271_v26 = vmax.f32 %v3269_v7, %v3270_v15  ;;  %v2779_v8 = vpop.f32.mrf.mxu2 }
 0x4e8   :  { %v6662_v63 = vadd.f32 %v2779_v8, %v2691_v6  ;;  %v2603_v29 = vpop.f32.mrf.mxu0  ;;  %v2692_v34 = vpop.f32.mrf.mxu1 }
 0x4e9   :  { %v3272_v47 = vrot.slane %v3271_v26, 1  ;;  %v2604_v50 = vadd.f32 %v2603_v29, %v6235_v59 }
 0x4eb   :  { %v3273_v12 = vmax.f32 %v3271_v26, %v3272_v47  ;;  %v2693_v38 = vadd.f32 %v2692_v34, %v2604_v50 }
 0x4ec   :  { %v2825_v14 = vpop.f32.mrf.mxu3 }
 0x4ed   :  { %v3390_v41 = vsel %vm830_vm4, %v3273_v12, %v3389_v24  ;;  %v2826_v61 = vadd.f32 %v2825_v14, %v6509_v2  ;;  %v7073_v2 = vld [vmem:[#allocation17_spill] sm:$0xff] }
 0x4ef   :  { %v3283_v22 = vmax.f32 %v2824_v10, %v2826_v61  ;;  %v2781_v20 = vpop.f32.mrf.mxu2  ;;  %v7075_v10 = vld [vmem:[#allocation10_spill] sm:$0xff] }
 0x4f0   :  { %v6671_v28 = vadd.f32 %v2781_v20, %v2693_v38  ;;  %v2882_v0 = vpop.f32.mrf.mxu0  ;;  %v2971_v4 = vpop.f32.mrf.mxu1  ;;  %v7076_v38 = vld [vmem:[#allocation18_spill] sm:$0xff] }
 0x4f1   :  { %2867 = vmatmul.bf16.gmra.mxu3 %v6601_v19  ;;  %v2883_v36 = vadd.f32 %v2882_v0, %v6668_v43 }
 0x4f3   :  { %v2972_v24 = vadd.f32 %v2971_v4, %v2883_v36  ;;  %2921 = vmatmul.bf16.gmra.mxu0 %v7072_v37  ;;  %3010 = vmatmul.bf16.gmra.mxu1 %v7073_v2 }
 0x4f4   :  { %v2828_v59 = vpop.f32.mrf.mxu3  ;;  %3099 = vmatmul.bf16.gmra.mxu2 %v7074_v52 }
 0x4f5   :  { %v2829_v57 = vadd.f32 %v2828_v59, %v6526_v53 }
 0x4f7   :  { %v3284_v44 = vmax.f32 %v3283_v22, %v2829_v57  ;;  %v3060_v39 = vpop.f32.mrf.mxu2 }
 0x4f8   :  { %v6678_v23 = vadd.f32 %v3060_v39, %v2972_v24  ;;  %v2884_v48 = vpop.f32.mrf.mxu0  ;;  %v2973_v7 = vpop.f32.mrf.mxu1  ;;  %v7079_v39 = vld [vmem:[#allocation27_spill] sm:$0xff] }
 0x4f9   :  { %v2885_v16 = vadd.f32 %v2884_v48, %v6668_v43 }
 0x4fb   :  { %v2974_v32 = vadd.f32 %v2973_v7, %v2885_v16 }
 0x4fc   :  { %v2830_v45 = vpop.f32.mrf.mxu3 }
 0x4fd   :  { %v2831_v13 = vadd.f32 %v2830_v45, %v6534_v21  ;;  %v7077_v21 = vld [vmem:[#allocation22_spill] sm:$0xff] }
 0x4ff   :  { %v3285_v53 = vmax.f32 %v3284_v44, %v2831_v13  ;;  %v3062_v6 = vpop.f32.mrf.mxu2 }
 0x500   :  { %v6683_v47 = vadd.f32 %v3062_v6, %v2974_v32  ;;  %v2887_v8 = vpop.f32.mrf.mxu0  ;;  %v2976_v12 = vpop.f32.mrf.mxu1  ;;  %v7082_v6 = vld [vmem:[#allocation23_spill] sm:$0xff] }
 0x501   :  { %v3286_v15 = vrot.slane %v3285_v53, 4  ;;  %3148 = vmatmul.bf16.vlgmr.msra.gmra.mxu3 %v7075_v10  ;;  %v2888_v29 = vadd.f32 %v2887_v8, %v6668_v43  ;;  %v7080_v10 = vld [vmem:[#allocation2_spill] sm:$0xff] }
 0x503   :  { %v3287_v26 = vmax.f32 %v3285_v53, %v3286_v15  ;;  %v2977_v61 = vadd.f32 %v2976_v12, %v2888_v29  ;;  %2926 = vmatmul.bf16.gmra.mxu0 %v7076_v38  ;;  %3015 = vmatmul.bf16.gmra.mxu1 %v7077_v21  ;;  %v7083_v21 = vld [vmem:[#allocation36_spill] sm:$0xff] }
 0x504   :  { %v2833_v34 = vpop.f32.mrf.mxu3  ;;  %3104 = vmatmul.bf16.gmra.mxu2 %v7078_v31 }
 0x505   :  { %v3288_v50 = vrot.slane %v3287_v26, 2  ;;  %v2834_v14 = vadd.f32 %v2833_v34, %v6544_v5 }
 0x507   :  { %v3289_v22 = vmax.f32 %v3287_v26, %v3288_v50  ;;  %v3065_v0 = vpop.f32.mrf.mxu2 }
 0x508   :  { %v6690_v36 = vadd.f32 %v3065_v0, %v2977_v61  ;;  %v2889_v59 = vpop.f32.mrf.mxu0  ;;  %v2978_v57 = vpop.f32.mrf.mxu1 }
 0x509   :  { %v3290_v20 = vrot.slane %v3289_v22, 1  ;;  %v2890_v24 = vadd.f32 %v2889_v59, %v6668_v43 }
 0x50b   :  { %v3291_v4 = vmax.f32 %v3289_v22, %v3290_v20  ;;  %v2979_v44 = vadd.f32 %v2978_v57, %v2890_v24 }
 0x50c   :  { %v2835_v37 = vpop.f32.mrf.mxu3 }
 0x50d   :  { %v3391_v5 = vsel %vm832_vm5, %v3291_v4, %v3390_v41  ;;  %v2836_v2 = vadd.f32 %v2835_v37, %v6552_v54  ;;  %v7081_v41 = vld [vmem:[#allocation14_spill] sm:$0xff] }
 0x50f   :  { %v3301_v52 = vmax.f32 %v2834_v14, %v2836_v2  ;;  %v3067_v48 = vpop.f32.mrf.mxu2 }
 0x510   :  { %v6696_v7 = vadd.f32 %v3067_v48, %v2979_v44  ;;  %v2892_v16 = vpop.f32.mrf.mxu0  ;;  %v2981_v45 = vpop.f32.mrf.mxu1  ;;  %v7084_v44 = vld [vmem:[#allocation26_spill] sm:$0xff] }
 0x511   :  { %3153 = vmatmul.bf16.gmra.mxu3 %v7079_v39  ;;  %v2893_v13 = vadd.f32 %v2892_v16, %v6668_v43 }
 0x513   :  { %v2982_v15 = vadd.f32 %v2981_v45, %v2893_v13  ;;  %2931 = vmatmul.bf16.gmra.mxu0 %v7080_v10  ;;  %3020 = vmatmul.bf16.gmra.mxu1 %v7081_v41 }
 0x514   :  { %v2838_v32 = vpop.f32.mrf.mxu3  ;;  %3109 = vmatmul.bf16.gmra.mxu2 %v7082_v6 }
 0x515   :  { %v2839_v53 = vadd.f32 %v2838_v32, %v6561_v51 }
 0x517   :  { %v3302_v54 = vmax.f32 %v3301_v52, %v2839_v53  ;;  %v3070_v26 = vpop.f32.mrf.mxu2 }
 0x518   :  { %v6703_v8 = vadd.f32 %v3070_v26, %v2982_v15  ;;  %v2894_v12 = vpop.f32.mrf.mxu0  ;;  %v2983_v29 = vpop.f32.mrf.mxu1 }
 0x519   :  { %v2895_v34 = vadd.f32 %v2894_v12, %v6668_v43 }
 0x51b   :  { %v2984_v61 = vadd.f32 %v2983_v29, %v2895_v34 }
 0x51c   :  { %v2840_v50 = vpop.f32.mrf.mxu3 }
 0x51d   :  { %v2841_v14 = vadd.f32 %v2840_v50, %v6574_v30  ;;  %v7085_v30 = vld [vmem:[#allocation24_spill] sm:$0xff] }
 0x51f   :  { %v3303_v51 = vmax.f32 %v3302_v54, %v2841_v14  ;;  %v3072_v22 = vpop.f32.mrf.mxu2 }
 0x520   :  { %v6708_v20 = vadd.f32 %v3072_v22, %v2984_v61  ;;  %v2897_v0 = vpop.f32.mrf.mxu0  ;;  %v2986_v4 = vpop.f32.mrf.mxu1  ;;  %v7086_v61 = vld [vmem:[#allocation25_spill] sm:$0xff] }
 0x521   :  { %v3304_v38 = vrot.slane %v3303_v51, 4  ;;  %3158 = vmatmul.bf16.gmra.mxu3 %v7083_v21  ;;  %v2898_v59 = vadd.f32 %v2897_v0, %v6668_v43 }
 0x523   :  { %v3305_v31 = vmax.f32 %v3303_v51, %v3304_v38  ;;  %v2987_v2 = vadd.f32 %v2986_v4, %v2898_v59  ;;  %2936 = vmatmul.bf16.gmra.mxu0 %v7084_v44  ;;  %3025 = vmatmul.bf16.gmra.mxu1 %v7085_v30  ;;  %v7088_v51 = vld [vmem:[#allocation15_spill] sm:$0xff] }
 0x524   :  { %v2843_v57 = vpop.f32.mrf.mxu3  ;;  %3114 = vmatmul.bf16.gmra.mxu2 %v6111_v40 }
 0x525   :  { %v3306_v24 = vrot.slane %v3305_v31, 2  ;;  %v2844_v37 = vadd.f32 %v2843_v57, %v6583_v49 }
 0x527   :  { %v3307_v52 = vmax.f32 %v3305_v31, %v3306_v24  ;;  %v3075_v48 = vpop.f32.mrf.mxu2  ;;  %v7089_v24 = vld [vmem:[#allocation3_spill] sm:$0xff] }
 0x528   :  { %v6715_v45 = vadd.f32 %v3075_v48, %v2987_v2  ;;  %v2899_v13 = vpop.f32.mrf.mxu0  ;;  %v2988_v32 = vpop.f32.mrf.mxu1 }
 0x529   :  { %v3308_v39 = vrot.slane %v3307_v52, 1  ;;  %v2900_v53 = vadd.f32 %v2899_v13, %v6668_v43 }
 0x52b   :  { %v3309_v16 = vmax.f32 %v3307_v52, %v3308_v39  ;;  %v2989_v41 = vadd.f32 %v2988_v32, %v2900_v53  ;;  %v7090_v32 = vld [vmem:[#allocation29_spill] sm:$0xff]  ;;  %v7091_v53 = vld [vmem:[#allocation32_spill] sm:$0xff] }
 0x52c   :  { %v2845_v15 = vpop.f32.mrf.mxu3 }
 0x52d   :  { %v3392_v49 = vsel %vm834_vm6, %v3309_v16, %v3391_v5  ;;  %v2846_v10 = vadd.f32 %v2845_v15, %v6590_v42  ;;  %v7087_v5 = vld [vmem:[#allocation28_spill] sm:$0xff]  ;;  %v7092_v15 = vld [vmem:[#allocation30_spill] sm:$0xff] }
 0x52f   :  { %v3319_v54 = vmax.f32 %v2844_v37, %v2846_v10  ;;  %v3077_v6 = vpop.f32.mrf.mxu2 }
 0x530   :  { %v6721_v40 = vadd.f32 %v3077_v6, %v2989_v41  ;;  %v2902_v26 = vpop.f32.mrf.mxu0  ;;  %v2991_v12 = vpop.f32.mrf.mxu1 }
 0x531   :  { %3163 = vmatmul.bf16.gmra.mxu3 %v6189_v25  ;;  %v2903_v29 = vadd.f32 %v2902_v26, %v6668_v43 }
 0x533   :  { %v2992_v14 = vadd.f32 %v2991_v12, %v2903_v29  ;;  %2941 = vmatmul.bf16.gmra.mxu0 %v7086_v61  ;;  %3030 = vmatmul.bf16.gmra.mxu1 %v7087_v5 }
 0x534   :  { %v2848_v34 = vpop.f32.mrf.mxu3  ;;  %3119 = vmatmul.bf16.gmra.mxu2 %v7088_v51  ;;  %v7093_v51 = vld [vmem:[#allocation39_spill] sm:$0xff] }
 0x535   :  { %v2849_v50 = vadd.f32 %v2848_v34, %v6599_v3 }
 0x537   :  { %v3320_v42 = vmax.f32 %v3319_v54, %v2849_v50  ;;  %v3080_v38 = vpop.f32.mrf.mxu2 }
 0x538   :  { %v6728_v25 = vadd.f32 %v3080_v38, %v2992_v14  ;;  %v2904_v21 = vpop.f32.mrf.mxu0  ;;  %v2993_v22 = vpop.f32.mrf.mxu1 }
 0x539   :  { %v2905_v31 = vadd.f32 %v2904_v21, %v6668_v43 }
 0x53b   :  { %v2994_v59 = vadd.f32 %v2993_v22, %v2905_v31 }
 0x53c   :  { %v2850_v0 = vpop.f32.mrf.mxu3 }
 0x53d   :  { %v2851_v4 = vadd.f32 %v2850_v0, %v6612_v55 }
 0x53f   :  { %v3321_v3 = vmax.f32 %v3320_v42, %v2851_v4  ;;  %v3082_v37 = vpop.f32.mrf.mxu2 }
 0x540   :  { %v6733_v44 = vadd.f32 %v3082_v37, %v2994_v59  ;;  %v2907_v30 = vpop.f32.mrf.mxu0  ;;  %v2996_v52 = vpop.f32.mrf.mxu1 }
 0x541   :  { %v3322_v57 = vrot.slane %v3321_v3, 4  ;;  %3168 = vmatmul.bf16.gmra.mxu3 %v7089_v24  ;;  %v2908_v39 = vadd.f32 %v2907_v30, %v6668_v43 }
 0x543   :  { %v3323_v2 = vmax.f32 %v3321_v3, %v3322_v57  ;;  %v2997_v13 = vadd.f32 %v2996_v52, %v2908_v39  ;;  %2946 = vmatmul.bf16.gmra.mxu0 %v7090_v32  ;;  %3035 = vmatmul.bf16.gmra.mxu1 %v7091_v53 }
 0x544   :  { %v2853_v48 = vpop.f32.mrf.mxu3  ;;  %3124 = vmatmul.bf16.gmra.mxu2 %v7092_v15 }
 0x545   :  { %v3324_v16 = vrot.slane %v3323_v2, 2  ;;  %v2854_v14 = vadd.f32 %v2853_v48, %v6619_v60  ;;  %v7094_v60 = vld [vmem:[#allocation33_spill] sm:$0xff] }
 0x547   :  { %v3325_v55 = vmax.f32 %v3323_v2, %v3324_v16  ;;  %v3085_v41 = vpop.f32.mrf.mxu2 }
 0x548   :  { %v6739_v6 = vadd.f32 %v3085_v41, %v2997_v13  ;;  %v2909_v26 = vpop.f32.mrf.mxu0  ;;  %v2998_v12 = vpop.f32.mrf.mxu1  ;;  %v7096_v13 = vld [vmem:[#allocation40_spill] sm:$0xff] }
 0x549   :  { %v3326_v10 = vrot.slane %v3325_v55, 1  ;;  %v2910_v29 = vadd.f32 %v2909_v26, %v6668_v43 }
 0x54b   :  { %v3327_v54 = vmax.f32 %v3325_v55, %v3326_v10  ;;  %v2999_v5 = vadd.f32 %v2998_v12, %v2910_v29  ;;  %v7097_v12 = vld [vmem:[#allocation34_spill] sm:$0xff]  ;;  %v7098_v29 = vld [vmem:[#allocation35_spill] sm:$0xff] }
 0x54c   :  { %v2855_v34 = vpop.f32.mrf.mxu3 }
 0x54d   :  { %v3393_v50 = vsel %vm836_vm7, %v3327_v54, %v3392_v49  ;;  %v2856_v61 = vadd.f32 %v2855_v34, %v6624_v62  ;;  %v7095_v49 = vld [vmem:[#allocation31_spill] sm:$0xff]  ;;  %v7099_v34 = vld [vmem:[#allocation38_spill] sm:$0xff] }
 0x54f   :  { %v3337_v42 = vmax.f32 %v2854_v14, %v2856_v61  ;;  %v3087_v38 = vpop.f32.mrf.mxu2 }
 0x550   :  { %v6746_v21 = vadd.f32 %v3087_v38, %v2999_v5  ;;  %v2912_v22 = vpop.f32.mrf.mxu0  ;;  %v3001_v31 = vpop.f32.mrf.mxu1 }
 0x551   :  { %3173 = vmatmul.bf16.gmra.mxu3 %v7093_v51  ;;  %v2913_v0 = vadd.f32 %v2912_v22, %v6668_v43 }
 0x553   :  { %v3002_v3 = vadd.f32 %v3001_v31, %v2913_v0  ;;  %2951 = vmatmul.bf16.gmra.mxu0 %v6160_v46  ;;  %3040 = vmatmul.bf16.gmra.mxu1 %v7094_v60 }
 0x554   :  { %v2858_v4 = vpop.f32.mrf.mxu3  ;;  %3129 = vmatmul.bf16.gmra.mxu2 %v7095_v49 }
 0x555   :  { %v2859_v59 = vadd.f32 %v2858_v4, %v6631_v18 }
 0x557   :  { %v3338_v62 = vmax.f32 %v3337_v42, %v2859_v59  ;;  %v3090_v57 = vpop.f32.mrf.mxu2 }
 0x558   :  { %v6753_v24 = vadd.f32 %v3090_v57, %v3002_v3  ;;  %v2914_v37 = vpop.f32.mrf.mxu0  ;;  %v3003_v2 = vpop.f32.mrf.mxu1 }
 0x559   :  { %v2915_v30 = vadd.f32 %v2914_v37, %v6668_v43 }
 0x55b   :  { %v3004_v48 = vadd.f32 %v3003_v2, %v2915_v30 }
 0x55c   :  { %v2860_v52 = vpop.f32.mrf.mxu3 }
 0x55d   :  { %v2861_v39 = vadd.f32 %v2860_v52, %v6643_v35 }
 0x55f   :  { %v3339_v18 = vmax.f32 %v3338_v62, %v2861_v39  ;;  %v3092_v46 = vpop.f32.mrf.mxu2  ;;  %v7100_v62 = vld [vmem:[#allocation43_spill] sm:$0xff] }
 0x560   :  { %v6758_v53 = vadd.f32 %v3092_v46, %v3004_v48  ;;  %v2917_v55 = vpop.f32.mrf.mxu0  ;;  %v3006_v15 = vpop.f32.mrf.mxu1 }
 0x561   :  { %v3340_v16 = vrot.slane %v3339_v18, 4  ;;  %3178 = vmatmul.bf16.gmra.mxu3 %v7096_v13  ;;  %v2918_v10 = vadd.f32 %v2917_v55, %v6668_v43 }
 0x563   :  { %v3341_v32 = vmax.f32 %v3339_v18, %v3340_v16  ;;  %v3007_v26 = vadd.f32 %v3006_v15, %v2918_v10  ;;  %2956 = vmatmul.bf16.gmra.mxu0 %v7097_v12  ;;  %3045 = vmatmul.bf16.gmra.mxu1 %v7098_v29 }
 0x564   :  { %v2863_v41 = vpop.f32.mrf.mxu3  ;;  %3134 = vmatmul.bf16.gmra.mxu2 %v7099_v34 }
 0x565   :  { %v3342_v54 = vrot.slane %v3341_v32, 2  ;;  %v2864_v4 = vadd.f32 %v2863_v41, %v6650_v33  ;;  %v7101_v41 = vld [vmem:[#allocation41_spill] sm:$0xff] }
 0x567   :  { %v3343_v35 = vmax.f32 %v3341_v32, %v3342_v54  ;;  %v3095_v61 = vpop.f32.mrf.mxu2 }
 0x568   :  { %v6764_v42 = vadd.f32 %v3095_v61, %v3007_v26  ;;  %v2919_v51 = vpop.f32.mrf.mxu0  ;;  %v3008_v38 = vpop.f32.mrf.mxu1 }
 0x569   :  { %v3344_v14 = vrot.slane %v3343_v35, 1  ;;  %v2920_v22 = vadd.f32 %v2919_v51, %v6668_v43 }
 0x56b   :  { %v3345_v5 = vmax.f32 %v3343_v35, %v3344_v14  ;;  %v3009_v3 = vadd.f32 %v3008_v38, %v2920_v22 }
 0x56c   :  { %v2865_v31 = vpop.f32.mrf.mxu3 }
 0x56d   :  { %v3394_v0 = vsel %vm838_vm8, %v3345_v5, %v3393_v50  ;;  %v2866_v59 = vadd.f32 %v2865_v31, %v6655_v17 }
 0x56f   :  { %v3355_v60 = vmax.f32 %v2864_v4, %v2866_v59  ;;  %v3097_v49 = vpop.f32.mrf.mxu2 }
 0x570   :  { %v6771_v57 = vadd.f32 %v3097_v49, %v3009_v3  ;;  %v2922_v37 = vpop.f32.mrf.mxu0  ;;  %v3011_v2 = vpop.f32.mrf.mxu1 }
 0x571   :  { %3183 = vmatmul.bf16.gmra.mxu3 %v7100_v62  ;;  %v2923_v30 = vadd.f32 %v2922_v37, %v6668_v43 }
 0x573   :  { %v3012_v48 = vadd.f32 %v3011_v2, %v2923_v30 }
 0x574   :  { %v2868_v52 = vpop.f32.mrf.mxu3 }
 0x575   :  { %v2869_v39 = vadd.f32 %v2868_v52, %v6662_v63 }
 0x577   :  { %v3356_v50 = vmax.f32 %v3355_v60, %v2869_v39  ;;  %v3100_v18 = vpop.f32.mrf.mxu2 }
 0x578   :  { %v6775_v33 = vadd.f32 %v3100_v18, %v3012_v48  ;;  %v2924_v17 = vpop.f32.mrf.mxu0  ;;  %v3013_v16 = vpop.f32.mrf.mxu1 }
 0x579   :  { %v2925_v13 = vadd.f32 %v2924_v17, %v6668_v43 }
 0x57b   :  { %v3014_v55 = vadd.f32 %v3013_v16, %v2925_v13 }
 0x57c   :  { %v2870_v46 = vpop.f32.mrf.mxu3 }
 0x57d   :  { %v2871_v32 = vadd.f32 %v2870_v46, %v6671_v28 }
 0x57f   :  { %v3357_v15 = vmax.f32 %v3356_v50, %v2871_v32  ;;  %v3102_v54 = vpop.f32.mrf.mxu2 }
 0x580   :  { %v6780_v63 = vadd.f32 %v3102_v54, %v3014_v55  ;;  %v2927_v12 = vpop.f32.mrf.mxu0  ;;  %v3016_v29 = vpop.f32.mrf.mxu1 }
 0x581   :  { %v3358_v10 = vrot.slane %v3357_v15, 4  ;;  %3188 = vmatmul.bf16.gmra.mxu3 %v7101_v41  ;;  %v2928_v35 = vadd.f32 %v2927_v12, %v6668_v43 }
 0x583   :  { %v3359_v26 = vmax.f32 %v3357_v15, %v3358_v10  ;;  %v3017_v5 = vadd.f32 %v3016_v29, %v2928_v35 }
 0x584   :  { %v3149_v34 = vpop.f32.mrf.mxu3 }
 0x585   :  { %v3360_v14 = vrot.slane %v3359_v26, 2  ;;  %v3150_v61 = vadd.f32 %v3149_v34, %v6678_v23 }
 0x587   :  { %v3361_v51 = vmax.f32 %v3359_v26, %v3360_v14  ;;  %v3105_v38 = vpop.f32.mrf.mxu2 }
 0x588   :  { %v6784_v31 = vadd.f32 %v3105_v38, %v3017_v5  ;;  %v2929_v4 = vpop.f32.mrf.mxu0  ;;  %v3018_v59 = vpop.f32.mrf.mxu1 }
 0x589   :  { %v3362_v28 = vrot.slane %v3361_v51, 1  ;;  %v2930_v3 = vadd.f32 %v2929_v4, %v6668_v43 }
 0x58b   :  { %v3363_v22 = vmax.f32 %v3361_v51, %v3362_v28  ;;  %v3019_v37 = vadd.f32 %v3018_v59, %v2930_v3 }
 0x58c   :  { %v3151_v60 = vpop.f32.mrf.mxu3 }
 0x58d   :  { %v3395_v62 = vsel %vm840_vm9, %v3363_v22, %v3394_v0  ;;  %v3152_v49 = vadd.f32 %v3151_v60, %v6683_v47 }
 0x58e   :  { %3405 = vst [vmem:[%s6863_s10] sm:$0xff] %v3395_v62 }
 0x58f   :  { %v3238_v23 = vmax.f32 %v3150_v61, %v3152_v49  ;;  %v3107_v2 = vpop.f32.mrf.mxu2 }
 0x590   :  { %v6793_v30 = vadd.f32 %v3107_v2, %v3019_v37  ;;  %v2932_v52 = vpop.f32.mrf.mxu0  ;;  %v3021_v39 = vpop.f32.mrf.mxu1 }
 0x591   :  { %3193 = vmatmul.bf16.gmra.mxu3 %v6428_v58  ;;  %v2933_v48 = vadd.f32 %v2932_v52, %v6668_v43 }
 0x593   :  { %v3022_v18 = vadd.f32 %v3021_v39, %v2933_v48 }
 0x594   :  { %v3154_v50 = vpop.f32.mrf.mxu3 }
 0x595   :  { %v3155_v0 = vadd.f32 %v3154_v50, %v6690_v36 }
 0x597   :  { %v3239_v47 = vmax.f32 %v3238_v23, %v3155_v0  ;;  %v3110_v17 = vpop.f32.mrf.mxu2 }
 0x598   :  { %v6797_v16 = vadd.f32 %v3110_v17, %v3022_v18  ;;  %v2934_v13 = vpop.f32.mrf.mxu0  ;;  %v3023_v46 = vpop.f32.mrf.mxu1 }
 0x599   :  { %v2935_v32 = vadd.f32 %v2934_v13, %v6668_v43 }
 0x59b   :  { %v3024_v15 = vadd.f32 %v3023_v46, %v2935_v32 }
 0x59c   :  { %v3156_v58 = vpop.f32.mrf.mxu3 }
 0x59d   :  { %v3157_v55 = vadd.f32 %v3156_v58, %v6696_v7 }
 0x59f   :  { %v3240_v10 = vmax.f32 %v3239_v47, %v3157_v55  ;;  %v3112_v41 = vpop.f32.mrf.mxu2 }
 0x5a0   :  { %v6802_v54 = vadd.f32 %v3112_v41, %v3024_v15  ;;  %v2937_v36 = vpop.f32.mrf.mxu0  ;;  %v3026_v29 = vpop.f32.mrf.mxu1 }
 0x5a1   :  { %3198 = vmatmul.bf16.gmra.mxu3 %v6502_v56  ;;  %v2938_v26 = vadd.f32 %v2937_v36, %v6668_v43  ;;  %v3241_v38 = vrot.slane %v3240_v10, 4 }
 0x5a3   :  { %v3027_v34 = vadd.f32 %v3026_v29, %v2938_v26  ;;  %v3242_v4 = vmax.f32 %v3240_v10, %v3241_v38 }
 0x5a4   :  { %v3159_v12 = vpop.f32.mrf.mxu3 }
 0x5a5   :  { %v3160_v35 = vadd.f32 %v3159_v12, %v6703_v8  ;;  %v3243_v8 = vrot.slane %v3242_v4, 2 }
 0x5a7   :  { %v3115_v14 = vpop.f32.mrf.mxu2  ;;  %v3244_v49 = vmax.f32 %v3242_v4, %v3243_v8 }
 0x5a8   :  { %v6806_v61 = vadd.f32 %v3115_v14, %v3027_v34 }
 0x5a9   :  { %v3245_v2 = vrot.slane %v3244_v49, 1 }
 0x5ab   :  { %v3246_v39 = vmax.f32 %v3244_v49, %v3245_v2  ;;  %v3028_v2 = vpop.f32.mrf.mxu1 }
 0x5ac   :  { %v3161_v5 = vpop.f32.mrf.mxu3 }
 0x5ad   :  { %v3162_v7 = vadd.f32 %v3161_v5, %v6708_v20 }
 0x5af   :  { %v3256_v51 = vmax.f32 %v3160_v35, %v3162_v7 }
 0x5b1   :  { %3203 = vmatmul.bf16.gmra.mxu3 %v6528_v11 }
 0x5b4   :  { %v3164_v56 = vpop.f32.mrf.mxu3 }
 0x5b5   :  { %v3165_v28 = vadd.f32 %v3164_v56, %v6715_v45 }
 0x5b7   :  { %v3257_v22 = vmax.f32 %v3256_v51, %v3165_v28 }
 0x5bc   :  { %v3166_v59 = vpop.f32.mrf.mxu3 }
 0x5bd   :  { %v3167_v3 = vadd.f32 %v3166_v59, %v6721_v40 }
 0x5bf   :  { %v3258_v60 = vmax.f32 %v3257_v22, %v3167_v3 }
 0x5c1   :  { %v3259_v62 = vrot.slane %v3258_v60, 4  ;;  %3208 = vmatmul.bf16.gmra.mxu3 %v6546_v27 }
 0x5c3   :  { %v3260_v37 = vmax.f32 %v3258_v60, %v3259_v62 }
 0x5c4   :  { %v3169_v20 = vpop.f32.mrf.mxu3 }
 0x5c5   :  { %v3261_v23 = vrot.slane %v3260_v37, 2  ;;  %v3170_v11 = vadd.f32 %v3169_v20, %v6728_v25 }
 0x5c7   :  { %v3262_v52 = vmax.f32 %v3260_v37, %v3261_v23  ;;  %v2939_v37 = vpop.f32.mrf.mxu0 }
 0x5c9   :  { %v3263_v45 = vrot.slane %v3262_v52, 1 }
 0x5cb   :  { %v3264_v48 = vmax.f32 %v3262_v52, %v3263_v45  ;;  %v3117_v45 = vpop.f32.mrf.mxu2 }
 0x5cc   :  { %v3171_v50 = vpop.f32.mrf.mxu3 }
 0x5cd   :  { %v3396_v0 = vsel %vm828_vm3, %v3264_v48, %v3246_v39  ;;  %v3172_v40 = vadd.f32 %v3171_v50, %v6733_v44 }
 0x5cf   :  { %v3274_v18 = vmax.f32 %v3170_v11, %v3172_v40  ;;  %v2942_v48 = vpop.f32.mrf.mxu0  ;;  %v3031_v40 = vpop.f32.mrf.mxu1 }
 0x5d1   :  { %3213 = vmatmul.bf16.gmra.mxu3 %v6569_v9 }
 0x5d4   :  { %v3174_v27 = vpop.f32.mrf.mxu3 }
 0x5d5   :  { %v3175_v47 = vadd.f32 %v3174_v27, %v6739_v6 }
 0x5d7   :  { %v3275_v17 = vmax.f32 %v3274_v18, %v3175_v47  ;;  %v3120_v18 = vpop.f32.mrf.mxu2  ;;  %v2940_v47 = vadd.f32 %v2939_v37, %v6668_v43 }
 0x5dc   :  { %v3176_v13 = vpop.f32.mrf.mxu3 }
 0x5dd   :  { %v3177_v25 = vadd.f32 %v3176_v13, %v6746_v21 }
 0x5df   :  { %v3276_v46 = vmax.f32 %v3275_v17, %v3177_v25  ;;  %v3029_v25 = vadd.f32 %v3028_v2, %v2940_v47 }
 0x5e1   :  { %v3277_v32 = vrot.slane %v3276_v46, 4  ;;  %3218 = vmatmul.bf16.gmra.mxu3 %v6585_v1 }
 0x5e3   :  { %v3278_v58 = vmax.f32 %v3276_v46, %v3277_v32  ;;  %v3118_v46 = vadd.f32 %v3117_v45, %v3029_v25  ;;  %v3033_v32 = vpop.f32.mrf.mxu1 }
 0x5e4   :  { %v3179_v55 = vpop.f32.mrf.mxu3 }
 0x5e5   :  { %v3279_v15 = vrot.slane %v3278_v58, 2  ;;  %v3180_v10 = vadd.f32 %v3179_v55, %v6753_v24 }
 0x5e7   :  { %v3280_v44 = vmax.f32 %v3278_v58, %v3279_v15  ;;  %v3122_v58 = vpop.f32.mrf.mxu2 }
 0x5e9   :  { %v3281_v41 = vrot.slane %v3280_v44, 1 }
 0x5eb   :  { %v3282_v36 = vmax.f32 %v3280_v44, %v3281_v41 }
 0x5ec   :  { %v3181_v9 = vpop.f32.mrf.mxu3 }
 0x5ed   :  { %v3397_v26 = vsel %vm830_vm4, %v3282_v36, %v3396_v0  ;;  %v3182_v6 = vadd.f32 %v3181_v9, %v6758_v53  ;;  %v3036_v9 = vpop.f32.mrf.mxu1 }
 0x5ef   :  { %v3292_v12 = vmax.f32 %v3180_v10, %v3182_v6  ;;  %v3125_v6 = vpop.f32.mrf.mxu2 }
 0x5f1   :  { %3223 = vmatmul.bf16.gmra.mxu3 %v6601_v19 }
 0x5f4   :  { %v3184_v21 = vpop.f32.mrf.mxu3 }
 0x5f5   :  { %v3185_v29 = vadd.f32 %v3184_v21, %v6764_v42 }
 0x5f7   :  { %v3293_v1 = vmax.f32 %v3292_v12, %v3185_v29 }
 0x5fc   :  { %v3186_v35 = vpop.f32.mrf.mxu3 }
 0x5fd   :  { %v3187_v34 = vadd.f32 %v3186_v35, %v6771_v57 }
 0x5ff   :  { %v3294_v14 = vmax.f32 %v3293_v1, %v3187_v34  ;;  %v3038_v34 = vpop.f32.mrf.mxu1 }
 0x601   :  { %v3295_v24 = vrot.slane %v3294_v14, 4 }
 0x603   :  { %v3296_v5 = vmax.f32 %v3294_v14, %v3295_v24  ;;  %v3127_v14 = vpop.f32.mrf.mxu2 }
 0x604   :  { %v3189_v7 = vpop.f32.mrf.mxu3 }
 0x605   :  { %v3297_v51 = vrot.slane %v3296_v5, 2  ;;  %v3190_v56 = vadd.f32 %v3189_v7, %v6775_v33 }
 0x607   :  { %v3298_v28 = vmax.f32 %v3296_v5, %v3297_v51  ;;  %v3041_v7 = vpop.f32.mrf.mxu1 }
 0x609   :  { %v3299_v38 = vrot.slane %v3298_v28, 1 }
 0x60b   :  { %v3300_v53 = vmax.f32 %v3298_v28, %v3299_v38  ;;  %v3130_v51 = vpop.f32.mrf.mxu2 }
 0x60c   :  { %v3191_v22 = vpop.f32.mrf.mxu3 }
 0x60d   :  { %v3398_v19 = vsel %vm832_vm5, %v3300_v53, %v3397_v26  ;;  %v3192_v4 = vadd.f32 %v3191_v22, %v6780_v63  ;;  %v2943_v53 = vadd.f32 %v2942_v48, %v6668_v43 }
 0x60f   :  { %v3310_v42 = vmax.f32 %v3190_v56, %v3192_v4 }
 0x614   :  { %v3194_v59 = vpop.f32.mrf.mxu3 }
 0x615   :  { %v3195_v3 = vadd.f32 %v3194_v59, %v6784_v31  ;;  %v3132_v59 = vpop.f32.mrf.mxu2 }
 0x617   :  { %v3311_v57 = vmax.f32 %v3310_v42, %v3195_v3 }
 0x61c   :  { %v3196_v8 = vpop.f32.mrf.mxu3 }
 0x61d   :  { %v3197_v60 = vadd.f32 %v3196_v8, %v6793_v30  ;;  %v3135_v48 = vpop.f32.mrf.mxu2 }
 0x61f   :  { %v3312_v62 = vmax.f32 %v3311_v57, %v3197_v60  ;;  %v3032_v57 = vadd.f32 %v3031_v40, %v2943_v53 }
 0x621   :  { %v3313_v49 = vrot.slane %v3312_v62, 4 }
 0x623   :  { %v3314_v33 = vmax.f32 %v3312_v62, %v3313_v49  ;;  %v3121_v62 = vadd.f32 %v3120_v18, %v3032_v57 }
 0x624   :  { %v3199_v20 = vpop.f32.mrf.mxu3 }
 0x625   :  { %v3315_v23 = vrot.slane %v3314_v33, 2  ;;  %v3200_v11 = vadd.f32 %v3199_v20, %v6797_v16  ;;  %v2944_v16 = vpop.f32.mrf.mxu0 }
 0x626   :  { %v2945_v38 = vadd.f32 %v2944_v16, %v6668_v43 }
 0x627   :  { %v3316_v52 = vmax.f32 %v3314_v33, %v3315_v23 }
 0x628   :  { %v3034_v4 = vadd.f32 %v3033_v32, %v2945_v38 }
 0x629   :  { %v3317_v63 = vrot.slane %v3316_v52, 1 }
 0x62a   :  { %v3123_v8 = vadd.f32 %v3122_v58, %v3034_v4 }
 0x62b   :  { %v3318_v39 = vmax.f32 %v3316_v52, %v3317_v63 }
 0x62c   :  { %v3201_v50 = vpop.f32.mrf.mxu3 }
 0x62d   :  { %v3399_v31 = vsel %vm834_vm6, %v3318_v39, %v3398_v19  ;;  %v3202_v0 = vadd.f32 %v3201_v50, %v6802_v54  ;;  %v2947_v44 = vpop.f32.mrf.mxu0  ;;  %v3043_v19 = vpop.f32.mrf.mxu1 }
 0x62e   :  { %v2948_v22 = vadd.f32 %v2947_v44, %v6668_v43 }
 0x62f   :  { %v3328_v30 = vmax.f32 %v3200_v11, %v3202_v0 }
 0x630   :  { %v3037_v60 = vadd.f32 %v3036_v9, %v2948_v22 }
 0x632   :  { %v3126_v49 = vadd.f32 %v3125_v6, %v3037_v60 }
 0x634   :  { %v3204_v27 = vpop.f32.mrf.mxu3 }
 0x635   :  { %v3205_v17 = vadd.f32 %v3204_v27, %v6806_v61  ;;  %v2949_v29 = vpop.f32.mrf.mxu0  ;;  %v3046_v39 = vpop.f32.mrf.mxu1 }
 0x636   :  { %v2950_v42 = vadd.f32 %v2949_v29, %v6668_v43 }
 0x637   :  { %v3329_v13 = vmax.f32 %v3328_v30, %v3205_v17 }
 0x638   :  { %v3039_v37 = vadd.f32 %v3038_v34, %v2950_v42 }
 0x63a   :  { %v3128_v23 = vadd.f32 %v3127_v14, %v3039_v37 }
 0x63c   :  { %v3206_v55 = vpop.f32.mrf.mxu3 }
 0x63d   :  { %v3207_v15 = vadd.f32 %v3206_v55, %v3118_v46  ;;  %v2952_v24 = vpop.f32.mrf.mxu0 }
 0x63e   :  { %v2953_v30 = vadd.f32 %v2952_v24, %v6668_v43 }
 0x63f   :  { %v3330_v10 = vmax.f32 %v3329_v13, %v3207_v15  ;;  %v3048_v15 = vpop.f32.mrf.mxu1 }
 0x640   :  { %v3042_v16 = vadd.f32 %v3041_v7, %v2953_v30 }
 0x641   :  { %v3331_v41 = vrot.slane %v3330_v10, 4 }
 0x642   :  { %v3131_v32 = vadd.f32 %v3130_v51, %v3042_v16 }
 0x643   :  { %v3332_v54 = vmax.f32 %v3330_v10, %v3331_v41  ;;  %v3137_v10 = vpop.f32.mrf.mxu2 }
 0x644   :  { %v3209_v36 = vpop.f32.mrf.mxu3 }
 0x645   :  { %v3333_v26 = vrot.slane %v3332_v54, 2  ;;  %v2954_v28 = vpop.f32.mrf.mxu0  ;;  %v3210_v11 = vadd.f32 %v3209_v36, %v3121_v62 }
 0x647   :  { %v3334_v12 = vmax.f32 %v3332_v54, %v3333_v26 }
 0x649   :  { %v3335_v21 = vrot.slane %v3334_v12, 1 }
 0x64b   :  { %v3336_v61 = vmax.f32 %v3334_v12, %v3335_v21 }
 0x64c   :  { %v3211_v1 = vpop.f32.mrf.mxu3 }
 0x64d   :  { %v6837_v35 = vsel %vm836_vm7, %v3336_v61, %v3399_v31  ;;  %v2957_v33 = vpop.f32.mrf.mxu0  ;;  %v3212_v20 = vadd.f32 %v3211_v1, %v3123_v8  ;;  %v2955_v31 = vadd.f32 %v2954_v28, %v6668_v43 }
 0x64e   :  { %v2958_v40 = vadd.f32 %v2957_v33, %v6668_v43 }
 0x64f   :  { %v3346_v52 = vmax.f32 %v3210_v11, %v3212_v20  ;;  %v3044_v27 = vadd.f32 %v3043_v19, %v2955_v31 }
 0x650   :  { %v3047_v25 = vadd.f32 %v3046_v39, %v2958_v40 }
 0x651   :  { %v3133_v13 = vadd.f32 %v3132_v59, %v3044_v27 }
 0x652   :  { %v3136_v58 = vadd.f32 %v3135_v48, %v3047_v25 }
 0x654   :  { %v3214_v5 = vpop.f32.mrf.mxu3 }
 0x655   :  { %v3215_v2 = vadd.f32 %v3214_v5, %v3126_v49  ;;  %v2959_v18 = vpop.f32.mrf.mxu0 }
 0x656   :  { %v2960_v46 = vadd.f32 %v2959_v18, %v6668_v43 }
 0x657   :  { %v3347_v50 = vmax.f32 %v3346_v52, %v3215_v2 }
 0x658   :  { %v3049_v41 = vadd.f32 %v3048_v15, %v2960_v46 }
 0x65a   :  { %v3138_v9 = vadd.f32 %v3137_v10, %v3049_v41 }
 0x65c   :  { %v3216_v56 = vpop.f32.mrf.mxu3 }
 0x65d   :  { %v3217_v45 = vadd.f32 %v3216_v56, %v3128_v23 }
 0x65f   :  { %v3348_v0 = vmax.f32 %v3347_v50, %v3217_v45 }
 0x661   :  { %v3349_v47 = vrot.slane %v3348_v0, 4 }
 0x663   :  { %v3350_v44 = vmax.f32 %v3348_v0, %v3349_v47 }
 0x664   :  { %v3219_v3 = vpop.f32.mrf.mxu3 }
 0x665   :  { %v3220_v54 = vadd.f32 %v3219_v3, %v3131_v32  ;;  %v3351_v6 = vrot.slane %v3350_v44, 2 }
 0x667   :  { %v3352_v1 = vmax.f32 %v3350_v44, %v3351_v6 }
 0x669   :  { %v3353_v43 = vrot.slane %v3352_v1, 1 }
 0x66b   :  { %v3354_v7 = vmax.f32 %v3352_v1, %v3353_v43 }
 0x66c   :  { %v3221_v63 = vpop.f32.mrf.mxu3 }
 0x66d   :  { %v3222_v55 = vadd.f32 %v3221_v63, %v3133_v13  ;;  %v3401_v28 = vsel %vm838_vm8, %v3354_v7, %v6837_v35 }
 0x66f   :  { %v3364_v26 = vmax.f32 %v3220_v54, %v3222_v55 }
 0x674   :  { %v3224_v17 = vpop.f32.mrf.mxu3 }
 0x675   :  { %v3225_v36 = vadd.f32 %v3224_v17, %v3136_v58 }
 0x677   :  { %v3365_v21 = vmax.f32 %v3364_v26, %v3225_v36 }
 0x67c   :  { %v3226_v12 = vpop.f32.mrf.mxu3 }
 0x67d   :  { %v3227_v29 = vadd.f32 %v3226_v12, %v3138_v9 }
 0x67f   :  { %v3366_v61 = vmax.f32 %v3365_v21, %v3227_v29 }
 0x681   :  { %v3367_v34 = vrot.slane %v3366_v61, 4 }
 0x683   :  { %v3368_v14 = vmax.f32 %v3366_v61, %v3367_v34 }
 0x685   :  { %v3369_v24 = vrot.slane %v3368_v14, 2 }
 0x687   :  { %v3370_v5 = vmax.f32 %v3368_v14, %v3369_v24 }
 0x689   :  { %v3371_v51 = vrot.slane %v3370_v5, 1 }
 0x68b   :  { %v3372_v56 = vmax.f32 %v3370_v5, %v3371_v51 }
 0x68d   :  { %v3402_v38 = vsel %vm840_vm9, %v3372_v56, %v3401_v28 }
 0x68e   :  { %3406 = vst [vmem:[%s6863_s10 + $0x8] sm:$0xff] %v3402_v38 }

</bundles_post_ra>
